<compile_context>
chip_gen: v7x
topology: tpu7x:2x2x1
jax: 0.10.0
libtpu: 0.0.40
codegen_flags: <defaults>
</compile_context>

<pallas_src>
import functools

import jax
import jax.numpy as jnp
from jax.experimental import pallas as pl
from jax.experimental.pallas import tpu as pltpu

LANE = 128      # lane width: pad E, H, V to multiples of this
SUBLANE = 8     # sublane width: pad B to a multiple of this


# ---------------------------------------------------------------------------
# padding helpers (zero padding is exact for this LSTM: padded gate columns
# give sigmoid(0)=0.5 / tanh(0)=0, so padded h/c lanes stay exactly 0)
# ---------------------------------------------------------------------------
def _round_up(x, m):
    return (x + m - 1) // m * m


def _pad_to(a, axis, target):
    pad = target - a.shape[axis]
    if pad == 0:
        return a
    widths = [(0, 0)] * a.ndim
    widths[axis] = (0, pad)
    return jnp.pad(a, widths)


def _pad_gate_axis(w, H, Hp, axis):
    """Pad a 4H-sized axis to 4Hp while keeping PyTorch's [i|f|g|o] layout."""
    if Hp == H:
        return w
    shape = list(w.shape)
    w4 = w.reshape(shape[:axis] + [4, H] + shape[axis + 1:])
    w4 = _pad_to(w4, axis + 1, Hp)
    return w4.reshape(shape[:axis] + [4 * Hp] + shape[axis + 1:])


# ---------------------------------------------------------------------------
# Fused Pallas kernel: all LSTM layers + dense head, single invocation
# ---------------------------------------------------------------------------
def _fused_lstm_kernel(*refs, n_layers, seq_len, batch_p, hidden_p):
    T, Bp, Hp = seq_len, batch_p, hidden_p

    # --- unpack refs (inputs, outputs, scratch) ---------------------------
    it = iter(refs)
    x_ref = next(it)                                          # (T*Bp, Ep)
    layer_refs = [(next(it), next(it), next(it)) for _ in range(n_layers)]
    h0_ref = next(it)                                         # (L, Bp, Hp)
    c0_ref = next(it)                                         # (L, Bp, Hp)
    wd_ref = next(it)                                         # (Hp, Vp)
    bd_ref = next(it)                                         # (1, Vp)
    out_ref = next(it)                                        # (Bp, Vp)
    hn_ref = next(it)                                         # (L, Bp, Hp)
    cn_ref = next(it)                                         # (L, Bp, Hp)
    gates_sc = next(it)                                       # (T*Bp, 4Hp)
    act_sc = next(it)                                         # (T*Bp, Hp)

    h_last = None
    for l in range(n_layers):
        wih_ref, whh_ref, b_ref = layer_refs[l]

        # Hoisted input projection: one big MXU matmul over ALL timesteps,
        # completely outside the serial recurrence.
        # TODO(synk): cast matmul operands to bf16 on v6e/v7x for more MXU
        # throughput (kept f32 here to preserve the tight reference check).
        x_l = x_ref[...] if l == 0 else act_sc[...]
        gates_sc[...] = (
            jnp.dot(x_l, wih_ref[...], preferred_element_type=jnp.float32)
            + b_ref[...])

        whh = whh_ref[...]                                    # (Hp, 4Hp)
        h = h0_ref[l]                                         # (Bp, Hp)
        c = c0_ref[l]                                         # (Bp, Hp)

        # Serial recurrence: only h @ W_hh^T + precomputed gates per step.
        # T is static and small -> fully unrolled so MXU/VPU/EUP work of
        # adjacent steps can be co-issued.  For long T, switch to a chunked
        # lax.fori_loop(..., unroll=k).
        for t in range(T):
            row = t * Bp                                      # sublane-aligned
            gates = (gates_sc[pl.ds(row, Bp), :]
                     + jnp.dot(h, whh, preferred_element_type=jnp.float32))
            # Hp is a multiple of 128 -> each gate slice is lane-aligned.
            i_g = jax.nn.sigmoid(gates[:, 0 * Hp:1 * Hp])
            f_g = jax.nn.sigmoid(gates[:, 1 * Hp:2 * Hp])
            g_g = jnp.tanh(gates[:, 2 * Hp:3 * Hp])
            o_g = jax.nn.sigmoid(gates[:, 3 * Hp:4 * Hp])
            c = f_g * c + i_g * g_g
            h = o_g * jnp.tanh(c)
            act_sc[pl.ds(row, Bp), :] = h                     # next layer input

        hn_ref[l] = h
        cn_ref[l] = c
        h_last = h

    # Fused dense head on the last layer's final hidden state
    # (== output[:, -1] of the PyTorch module).  Vp is lane-dense (128).
    out_ref[...] = (jnp.dot(h_last, wd_ref[...],
                            preferred_element_type=jnp.float32) + bd_ref[...])


# ---------------------------------------------------------------------------
# ShawsLSTM model (parameters + forward), mirroring the PyTorch module
# ---------------------------------------------------------------------------
def init_params(key, vocab_size, output_size, embedding_dim, hidden_dim, n_layers):
    ks = jax.random.split(key, 2 + 4 * n_layers)
    scale = 0.1
    params = {
        "embedding": scale * jax.random.normal(ks[0], (vocab_size, embedding_dim),
                                               jnp.float32),
        "dense_w": scale * jax.random.normal(ks[1], (output_size, hidden_dim),
                                             jnp.float32),
        "dense_b": jnp.zeros((output_size,), jnp.float32),
        "lstm": [],
    }
    for l in range(n_layers):
        in_dim = embedding_dim if l == 0 else hidden_dim
        k0, k1, k2, k3 = ks[2 + 4 * l: 6 + 4 * l]
        params["lstm"].append({
            "w_ih": scale * jax.random.normal(k0, (4 * hidden_dim, in_dim), jnp.float32),
            "w_hh": scale * jax.random.normal(k1, (4 * hidden_dim, hidden_dim), jnp.float32),
            "b_ih": scale * jax.random.normal(k2, (4 * hidden_dim,), jnp.float32),
            "b_hh": scale * jax.random.normal(k3, (4 * hidden_dim,), jnp.float32),
        })
    return params


def init_hidden(n_layers, batch_size, hidden_dim):
    z = jnp.zeros((n_layers, batch_size, hidden_dim), jnp.float32)
    return (z, z)


def shaws_lstm_forward(params, nn_input, hidden):
    """Matches ShawsLSTM.forward: returns (output[:, -1], (h_n, c_n))."""
    n_layers = len(params["lstm"])
    tokens = nn_input.astype(jnp.int32)                       # (B, T)
    B, T = tokens.shape
    E = params["embedding"].shape[1]
    H = params["lstm"][0]["w_hh"].shape[1]
    V = params["dense_w"].shape[0]

    Ep = _round_up(E, LANE)
    Hp = _round_up(H, LANE)
    Vp = _round_up(V, LANE)
    Bp = _round_up(B, SUBLANE)

    # Embedding lookup (glue: gather in plain JAX), zero-padded to lane width,
    # laid out time-major with timestep-blocked rows.
    emb = _pad_to(params["embedding"].astype(jnp.float32), 1, Ep)
    x = jnp.take(emb, tokens, axis=0)                         # (B, T, Ep)
    x = jnp.transpose(x, (1, 0, 2))                           # (T, B, Ep)
    x = _pad_to(x, 1, Bp).reshape(T * Bp, Ep)                 # (T*Bp, Ep)

    # Per-layer weights: pre-transposed, gate-padded, input-dim padded.
    layer_inputs = []
    for l, p in enumerate(params["lstm"]):
        in_p = Ep if l == 0 else Hp
        wih_t = _pad_to(_pad_gate_axis(jnp.transpose(p["w_ih"]), H, Hp, 1), 0, in_p)
        whh_t = _pad_to(_pad_gate_axis(jnp.transpose(p["w_hh"]), H, Hp, 1), 0, Hp)
        bias = _pad_gate_axis((p["b_ih"] + p["b_hh"]).reshape(1, -1), H, Hp, 1)
        layer_inputs += [wih_t.astype(jnp.float32),
                         whh_t.astype(jnp.float32),
                         bias.astype(jnp.float32)]

    h0_all, c0_all = hidden
    h0p = _pad_to(_pad_to(h0_all.astype(jnp.float32), 2, Hp), 1, Bp)   # (L,Bp,Hp)
    c0p = _pad_to(_pad_to(c0_all.astype(jnp.float32), 2, Hp), 1, Bp)

    wd_t = _pad_to(_pad_to(jnp.transpose(params["dense_w"]).astype(jnp.float32),
                           0, Hp), 1, Vp)                              # (Hp, Vp)
    bd = _pad_to(params["dense_b"].astype(jnp.float32).reshape(1, -1), 1, Vp)

    kernel = functools.partial(_fused_lstm_kernel, n_layers=n_layers,
                               seq_len=T, batch_p=Bp, hidden_p=Hp)

    n_inputs = 1 + 3 * n_layers + 4
    vmem_spec = lambda: pl.BlockSpec(memory_space=pltpu.MemorySpace.VMEM)

    # Single fused pallas_call: no grid (everything fits in VMEM at these
    # sizes), so there is no per-timestep / per-layer launch or DMA overhead.
    # TODO(synk): for large B add a 'parallel' batch-tile grid axis so v7x's
    # second TensorCore is used; for H >= ~1024 tile the 4H gate axis or use
    # bf16 weights to fit v7x's 64 MiB VMEM.
    out, h_n, c_n = pl.pallas_call(
        kernel,
        out_shape=(jax.ShapeDtypeStruct((Bp, Vp), jnp.float32),
                   jax.ShapeDtypeStruct((n_layers, Bp, Hp), jnp.float32),
                   jax.ShapeDtypeStruct((n_layers, Bp, Hp), jnp.float32)),
        in_specs=[vmem_spec() for _ in range(n_inputs)],
        out_specs=(vmem_spec(), vmem_spec(), vmem_spec()),
        scratch_shapes=[pltpu.VMEM((T * Bp, 4 * Hp), jnp.float32),   # gates
                        pltpu.VMEM((T * Bp, Hp), jnp.float32)],      # activations
    )(x, *layer_inputs, h0p, c0p, wd_t, bd)

    # Strip padding.
    out = out[:B, :V]
    h_n = h_n[:, :B, :H]
    c_n = c_n[:, :B, :H]
    return out, (h_n, c_n)


# ---------------------------------------------------------------------------
# Pure-JAX reference (for correctness check)
# ---------------------------------------------------------------------------
def reference_forward(params, nn_input, hidden):
    tokens = nn_input.astype(jnp.int32)
    embed = jnp.take(params["embedding"], tokens, axis=0)     # (B, T, E)
    x = jnp.transpose(embed, (1, 0, 2))                       # (T, B, E)
    h0_all, c0_all = hidden
    H = h0_all.shape[-1]
    h_fs, c_fs = [], []
    for l, p in enumerate(params["lstm"]):
        def step(carry, x_t, p=p):
            h, c = carry
            g = (x_t @ p["w_ih"].T + p["b_ih"] + h @ p["w_hh"].T + p["b_hh"])
            i = jax.nn.sigmoid(g[:, 0 * H:1 * H])
            f = jax.nn.sigmoid(g[:, 1 * H:2 * H])
            gg = jnp.tanh(g[:, 2 * H:3 * H])
            o = jax.nn.sigmoid(g[:, 3 * H:4 * H])
            c = f * c + i * gg
            h = o * jnp.tanh(c)
            return (h, c), h
        (h_f, c_f), x = jax.lax.scan(step, (h0_all[l], c0_all[l]), x)
        h_fs.append(h_f)
        c_fs.append(c_f)
    last_h = x[-1]
    out = last_h @ params["dense_w"].T + params["dense_b"]
    return out, (jnp.stack(h_fs), jnp.stack(c_fs))


# ---------------------------------------------------------------------------
if __name__ == "__main__":
    # Small shapes implied by the forward: (batch, seq) int token input.
    vocab_size = 40
    output_size = vocab_size          # final view requires output_size == vocab_size
    embedding_dim = 32
    hidden_dim = 32
    n_layers = 2
    batch_size = 2
    seq_len = 8

    key = jax.random.PRNGKey(0)
    k_param, k_tok = jax.random.split(key)
    params = init_params(k_param, vocab_size, output_size,
                         embedding_dim, hidden_dim, n_layers)
    tokens = jax.random.randint(k_tok, (batch_size, seq_len), 0, vocab_size,
                                dtype=jnp.int32)
    hidden = init_hidden(n_layers, batch_size, hidden_dim)

    # TODO(synk): nn.LSTM inter-layer dropout is a train-time op; eval
    # semantics (no dropout) are implemented.
    fwd = jax.jit(shaws_lstm_forward)
    out, (h_n, c_n) = fwd(params, tokens, hidden)
    out = jax.block_until_ready(out)
    h_n = jax.block_until_ready(h_n)
    c_n = jax.block_until_ready(c_n)

    # Sanity-check against pure-JAX reference.
    ref_out, (ref_h, ref_c) = reference_forward(params, tokens, hidden)
    assert out.shape == (batch_size, vocab_size)
    assert h_n.shape == (n_layers, batch_size, hidden_dim)
    assert c_n.shape == (n_layers, batch_size, hidden_dim)
    assert jnp.allclose(out, ref_out, atol=1e-5, rtol=1e-5)
    assert jnp.allclose(h_n, ref_h, atol=1e-5, rtol=1e-5)
    assert jnp.allclose(c_n, ref_c, atol=1e-5, rtol=1e-5)

    print("KERNEL_OK")
</pallas_src>

<mosaic_0001>
module attributes {stable_mosaic.version = 11 : i64} {
  func.func @_fused_lstm_kernel(%arg0: memref<64x128xf32, #tpu.memory_space<vmem>>, %arg1: memref<128x512xf32, #tpu.memory_space<vmem>>, %arg2: memref<128x512xf32, #tpu.memory_space<vmem>>, %arg3: memref<1x512xf32, #tpu.memory_space<vmem>>, %arg4: memref<128x512xf32, #tpu.memory_space<vmem>>, %arg5: memref<128x512xf32, #tpu.memory_space<vmem>>, %arg6: memref<1x512xf32, #tpu.memory_space<vmem>>, %arg7: memref<2x8x128xf32, #tpu.memory_space<vmem>>, %arg8: memref<2x8x128xf32, #tpu.memory_space<vmem>>, %arg9: memref<128x128xf32, #tpu.memory_space<vmem>>, %arg10: memref<1x128xf32, #tpu.memory_space<vmem>>, %arg11: memref<8x128xf32, #tpu.memory_space<vmem>>, %arg12: memref<2x8x128xf32, #tpu.memory_space<vmem>>, %arg13: memref<2x8x128xf32, #tpu.memory_space<vmem>>, %arg14: memref<64x512xf32, #tpu.memory_space<vmem>>, %arg15: memref<64x128xf32, #tpu.memory_space<vmem>>) attributes {dimension_semantics = [], scalar_prefetch = 0 : i64, scratch_operands = 2 : i64, tpu.core_type = #tpu.core_type<tc>} {
    %c0 = arith.constant 0 : index
    %c0_0 = arith.constant 0 : index
    %0 = vector.load %arg0[%c0, %c0_0] : memref<64x128xf32, #tpu.memory_space<vmem>>, vector<64x128xf32>
    %c0_1 = arith.constant 0 : index
    %c0_2 = arith.constant 0 : index
    %1 = vector.load %arg1[%c0_1, %c0_2] : memref<128x512xf32, #tpu.memory_space<vmem>>, vector<128x512xf32>
    %cst = arith.constant dense<0.000000e+00> : vector<64x512xf32>
    %2 = tpu.matmul %0, %1, %cst {dimension_numbers = #tpu.dot_dimension_numbers<[1], [0], [0], [1], [0, 0, 1, 1], [], []>} : vector<64x128xf32>, vector<128x512xf32>, vector<64x512xf32> -> vector<64x512xf32>
    %c0_3 = arith.constant 0 : index
    %c0_4 = arith.constant 0 : index
    %3 = vector.load %arg3[%c0_3, %c0_4] : memref<1x512xf32, #tpu.memory_space<vmem>>, vector<1x512xf32>
    %4 = vector.broadcast %3 : vector<1x512xf32> to vector<64x512xf32>
    %5 = arith.addf %2, %4 : vector<64x512xf32>
    %c0_5 = arith.constant 0 : index
    %c0_6 = arith.constant 0 : index
    %6 = vector.load %arg14[%c0_5, %c0_6] : memref<64x512xf32, #tpu.memory_space<vmem>>, vector<64x512xf32>
    tpu.vector_store %arg14[%c0_5, %c0_6], %5 {strides = array<i32>} : memref<64x512xf32, #tpu.memory_space<vmem>>, vector<64x512xf32>,
    %c0_7 = arith.constant 0 : index
    %c0_8 = arith.constant 0 : index
    %7 = vector.load %arg2[%c0_7, %c0_8] : memref<128x512xf32, #tpu.memory_space<vmem>>, vector<128x512xf32>
    %c0_9 = arith.constant 0 : index
    %c0_10 = arith.constant 0 : index
    %c0_11 = arith.constant 0 : index
    %8 = vector.load %arg7[%c0_9, %c0_10, %c0_11] : memref<2x8x128xf32, #tpu.memory_space<vmem>>, vector<1x8x128xf32>
    %9 = vector.shape_cast %8 : vector<1x8x128xf32> to vector<8x128xf32>
    %c0_12 = arith.constant 0 : index
    %c0_13 = arith.constant 0 : index
    %c0_14 = arith.constant 0 : index
    %10 = vector.load %arg8[%c0_12, %c0_13, %c0_14] : memref<2x8x128xf32, #tpu.memory_space<vmem>>, vector<1x8x128xf32>
    %11 = vector.shape_cast %10 : vector<1x8x128xf32> to vector<8x128xf32>
    %c0_15 = arith.constant 0 : index
    %c0_16 = arith.constant 0 : index
    %12 = vector.load %arg14[%c0_15, %c0_16] : memref<64x512xf32, #tpu.memory_space<vmem>>, vector<8x512xf32>
    %cst_17 = arith.constant dense<0.000000e+00> : vector<8x512xf32>
    %13 = tpu.matmul %9, %7, %cst_17 {dimension_numbers = #tpu.dot_dimension_numbers<[1], [0], [0], [1], [0, 0, 1, 1], [], []>} : vector<8x128xf32>, vector<128x512xf32>, vector<8x512xf32> -> vector<8x512xf32>
    %14 = arith.addf %12, %13 : vector<8x512xf32>
    %15 = vector.extract_strided_slice %14 {offsets = [0, 0], sizes = [8, 128], strides = [1, 1]} : vector<8x512xf32> to vector<8x128xf32>
    %16 = arith.negf %15 : vector<8x128xf32>
    %17 = math.exp %16 : vector<8x128xf32>
    %cst_18 = arith.constant 1.000000e+00 : f32
    %18 = vector.broadcast %cst_18 : f32 to vector<8x128xf32>
    %19 = arith.addf %18, %17 : vector<8x128xf32>
    %20 = arith.divf %18, %19 : vector<8x128xf32>
    %21 = vector.extract_strided_slice %14 {offsets = [0, 128], sizes = [8, 128], strides = [1, 1]} : vector<8x512xf32> to vector<8x128xf32>
    %22 = arith.negf %21 : vector<8x128xf32>
    %23 = math.exp %22 : vector<8x128xf32>
    %cst_19 = arith.constant 1.000000e+00 : f32
    %24 = vector.broadcast %cst_19 : f32 to vector<8x128xf32>
    %25 = arith.addf %24, %23 : vector<8x128xf32>
    %26 = arith.divf %24, %25 : vector<8x128xf32>
    %27 = vector.extract_strided_slice %14 {offsets = [0, 256], sizes = [8, 128], strides = [1, 1]} : vector<8x512xf32> to vector<8x128xf32>
    %28 = math.tanh %27 : vector<8x128xf32>
    %29 = vector.extract_strided_slice %14 {offsets = [0, 384], sizes = [8, 128], strides = [1, 1]} : vector<8x512xf32> to vector<8x128xf32>
    %30 = arith.negf %29 : vector<8x128xf32>
    %31 = math.exp %30 : vector<8x128xf32>
    %cst_20 = arith.constant 1.000000e+00 : f32
    %32 = vector.broadcast %cst_20 : f32 to vector<8x128xf32>
    %33 = arith.addf %32, %31 : vector<8x128xf32>
    %34 = arith.divf %32, %33 : vector<8x128xf32>
    %35 = arith.mulf %26, %11 : vector<8x128xf32>
    %36 = arith.mulf %20, %28 : vector<8x128xf32>
    %37 = arith.addf %35, %36 : vector<8x128xf32>
    %38 = math.tanh %37 : vector<8x128xf32>
    %39 = arith.mulf %34, %38 : vector<8x128xf32>
    %c0_21 = arith.constant 0 : index
    %c0_22 = arith.constant 0 : index
    %40 = vector.load %arg15[%c0_21, %c0_22] : memref<64x128xf32, #tpu.memory_space<vmem>>, vector<8x128xf32>
    tpu.vector_store %arg15[%c0_21, %c0_22], %39 {strides = array<i32>} : memref<64x128xf32, #tpu.memory_space<vmem>>, vector<8x128xf32>,
    %c8 = arith.constant 8 : index
    %c0_23 = arith.constant 0 : index
    %41 = vector.load %arg14[%c8, %c0_23] : memref<64x512xf32, #tpu.memory_space<vmem>>, vector<8x512xf32>
    %cst_24 = arith.constant dense<0.000000e+00> : vector<8x512xf32>
    %42 = tpu.matmul %39, %7, %cst_24 {dimension_numbers = #tpu.dot_dimension_numbers<[1], [0], [0], [1], [0, 0, 1, 1], [], []>} : vector<8x128xf32>, vector<128x512xf32>, vector<8x512xf32> -> vector<8x512xf32>
    %43 = arith.addf %41, %42 : vector<8x512xf32>
    %44 = vector.extract_strided_slice %43 {offsets = [0, 0], sizes = [8, 128], strides = [1, 1]} : vector<8x512xf32> to vector<8x128xf32>
    %45 = arith.negf %44 : vector<8x128xf32>
    %46 = math.exp %45 : vector<8x128xf32>
    %cst_25 = arith.constant 1.000000e+00 : f32
    %47 = vector.broadcast %cst_25 : f32 to vector<8x128xf32>
    %48 = arith.addf %47, %46 : vector<8x128xf32>
    %49 = arith.divf %47, %48 : vector<8x128xf32>
    %50 = vector.extract_strided_slice %43 {offsets = [0, 128], sizes = [8, 128], strides = [1, 1]} : vector<8x512xf32> to vector<8x128xf32>
    %51 = arith.negf %50 : vector<8x128xf32>
    %52 = math.exp %51 : vector<8x128xf32>
    %cst_26 = arith.constant 1.000000e+00 : f32
    %53 = vector.broadcast %cst_26 : f32 to vector<8x128xf32>
    %54 = arith.addf %53, %52 : vector<8x128xf32>
    %55 = arith.divf %53, %54 : vector<8x128xf32>
    %56 = vector.extract_strided_slice %43 {offsets = [0, 256], sizes = [8, 128], strides = [1, 1]} : vector<8x512xf32> to vector<8x128xf32>
    %57 = math.tanh %56 : vector<8x128xf32>
    %58 = vector.extract_strided_slice %43 {offsets = [0, 384], sizes = [8, 128], strides = [1, 1]} : vector<8x512xf32> to vector<8x128xf32>
    %59 = arith.negf %58 : vector<8x128xf32>
    %60 = math.exp %59 : vector<8x128xf32>
    %cst_27 = arith.constant 1.000000e+00 : f32
    %61 = vector.broadcast %cst_27 : f32 to vector<8x128xf32>
    %62 = arith.addf %61, %60 : vector<8x128xf32>
    %63 = arith.divf %61, %62 : vector<8x128xf32>
    %64 = arith.mulf %55, %37 : vector<8x128xf32>
    %65 = arith.mulf %49, %57 : vector<8x128xf32>
    %66 = arith.addf %64, %65 : vector<8x128xf32>
    %67 = math.tanh %66 : vector<8x128xf32>
    %68 = arith.mulf %63, %67 : vector<8x128xf32>
    %c8_28 = arith.constant 8 : index
    %c0_29 = arith.constant 0 : index
    %69 = vector.load %arg15[%c8_28, %c0_29] : memref<64x128xf32, #tpu.memory_space<vmem>>, vector<8x128xf32>
    tpu.vector_store %arg15[%c8_28, %c0_29], %68 {strides = array<i32>} : memref<64x128xf32, #tpu.memory_space<vmem>>, vector<8x128xf32>,
    %c16 = arith.constant 16 : index
    %c0_30 = arith.constant 0 : index
    %70 = vector.load %arg14[%c16, %c0_30] : memref<64x512xf32, #tpu.memory_space<vmem>>, vector<8x512xf32>
    %cst_31 = arith.constant dense<0.000000e+00> : vector<8x512xf32>
    %71 = tpu.matmul %68, %7, %cst_31 {dimension_numbers = #tpu.dot_dimension_numbers<[1], [0], [0], [1], [0, 0, 1, 1], [], []>} : vector<8x128xf32>, vector<128x512xf32>, vector<8x512xf32> -> vector<8x512xf32>
    %72 = arith.addf %70, %71 : vector<8x512xf32>
    %73 = vector.extract_strided_slice %72 {offsets = [0, 0], sizes = [8, 128], strides = [1, 1]} : vector<8x512xf32> to vector<8x128xf32>
    %74 = arith.negf %73 : vector<8x128xf32>
    %75 = math.exp %74 : vector<8x128xf32>
    %cst_32 = arith.constant 1.000000e+00 : f32
    %76 = vector.broadcast %cst_32 : f32 to vector<8x128xf32>
    %77 = arith.addf %76, %75 : vector<8x128xf32>
    %78 = arith.divf %76, %77 : vector<8x128xf32>
    %79 = vector.extract_strided_slice %72 {offsets = [0, 128], sizes = [8, 128], strides = [1, 1]} : vector<8x512xf32> to vector<8x128xf32>
    %80 = arith.negf %79 : vector<8x128xf32>
    %81 = math.exp %80 : vector<8x128xf32>
    %cst_33 = arith.constant 1.000000e+00 : f32
    %82 = vector.broadcast %cst_33 : f32 to vector<8x128xf32>
    %83 = arith.addf %82, %81 : vector<8x128xf32>
    %84 = arith.divf %82, %83 : vector<8x128xf32>
    %85 = vector.extract_strided_slice %72 {offsets = [0, 256], sizes = [8, 128], strides = [1, 1]} : vector<8x512xf32> to vector<8x128xf32>
    %86 = math.tanh %85 : vector<8x128xf32>
    %87 = vector.extract_strided_slice %72 {offsets = [0, 384], sizes = [8, 128], strides = [1, 1]} : vector<8x512xf32> to vector<8x128xf32>
    %88 = arith.negf %87 : vector<8x128xf32>
    %89 = math.exp %88 : vector<8x128xf32>
    %cst_34 = arith.constant 1.000000e+00 : f32
    %90 = vector.broadcast %cst_34 : f32 to vector<8x128xf32>
    %91 = arith.addf %90, %89 : vector<8x128xf32>
    %92 = arith.divf %90, %91 : vector<8x128xf32>
    %93 = arith.mulf %84, %66 : vector<8x128xf32>
    %94 = arith.mulf %78, %86 : vector<8x128xf32>
    %95 = arith.addf %93, %94 : vector<8x128xf32>
    %96 = math.tanh %95 : vector<8x128xf32>
    %97 = arith.mulf %92, %96 : vector<8x128xf32>
    %c16_35 = arith.constant 16 : index
    %c0_36 = arith.constant 0 : index
    %98 = vector.load %arg15[%c16_35, %c0_36] : memref<64x128xf32, #tpu.memory_space<vmem>>, vector<8x128xf32>
    tpu.vector_store %arg15[%c16_35, %c0_36], %97 {strides = array<i32>} : memref<64x128xf32, #tpu.memory_space<vmem>>, vector<8x128xf32>,
    %c24 = arith.constant 24 : index
    %c0_37 = arith.constant 0 : index
    %99 = vector.load %arg14[%c24, %c0_37] : memref<64x512xf32, #tpu.memory_space<vmem>>, vector<8x512xf32>
    %cst_38 = arith.constant dense<0.000000e+00> : vector<8x512xf32>
    %100 = tpu.matmul %97, %7, %cst_38 {dimension_numbers = #tpu.dot_dimension_numbers<[1], [0], [0], [1], [0, 0, 1, 1], [], []>} : vector<8x128xf32>, vector<128x512xf32>, vector<8x512xf32> -> vector<8x512xf32>
    %101 = arith.addf %99, %100 : vector<8x512xf32>
    %102 = vector.extract_strided_slice %101 {offsets = [0, 0], sizes = [8, 128], strides = [1, 1]} : vector<8x512xf32> to vector<8x128xf32>
    %103 = arith.negf %102 : vector<8x128xf32>
    %104 = math.exp %103 : vector<8x128xf32>
    %cst_39 = arith.constant 1.000000e+00 : f32
    %105 = vector.broadcast %cst_39 : f32 to vector<8x128xf32>
    %106 = arith.addf %105, %104 : vector<8x128xf32>
    %107 = arith.divf %105, %106 : vector<8x128xf32>
    %108 = vector.extract_strided_slice %101 {offsets = [0, 128], sizes = [8, 128], strides = [1, 1]} : vector<8x512xf32> to vector<8x128xf32>
    %109 = arith.negf %108 : vector<8x128xf32>
    %110 = math.exp %109 : vector<8x128xf32>
    %cst_40 = arith.constant 1.000000e+00 : f32
    %111 = vector.broadcast %cst_40 : f32 to vector<8x128xf32>
    %112 = arith.addf %111, %110 : vector<8x128xf32>
    %113 = arith.divf %111, %112 : vector<8x128xf32>
    %114 = vector.extract_strided_slice %101 {offsets = [0, 256], sizes = [8, 128], strides = [1, 1]} : vector<8x512xf32> to vector<8x128xf32>
    %115 = math.tanh %114 : vector<8x128xf32>
    %116 = vector.extract_strided_slice %101 {offsets = [0, 384], sizes = [8, 128], strides = [1, 1]} : vector<8x512xf32> to vector<8x128xf32>
    %117 = arith.negf %116 : vector<8x128xf32>
    %118 = math.exp %117 : vector<8x128xf32>
    %cst_41 = arith.constant 1.000000e+00 : f32
    %119 = vector.broadcast %cst_41 : f32 to vector<8x128xf32>
    %120 = arith.addf %119, %118 : vector<8x128xf32>
    %121 = arith.divf %119, %120 : vector<8x128xf32>
    %122 = arith.mulf %113, %95 : vector<8x128xf32>
    %123 = arith.mulf %107, %115 : vector<8x128xf32>
    %124 = arith.addf %122, %123 : vector<8x128xf32>
    %125 = math.tanh %124 : vector<8x128xf32>
    %126 = arith.mulf %121, %125 : vector<8x128xf32>
    %c24_42 = arith.constant 24 : index
    %c0_43 = arith.constant 0 : index
    %127 = vector.load %arg15[%c24_42, %c0_43] : memref<64x128xf32, #tpu.memory_space<vmem>>, vector<8x128xf32>
    tpu.vector_store %arg15[%c24_42, %c0_43], %126 {strides = array<i32>} : memref<64x128xf32, #tpu.memory_space<vmem>>, vector<8x128xf32>,
    %c32 = arith.constant 32 : index
    %c0_44 = arith.constant 0 : index
    %128 = vector.load %arg14[%c32, %c0_44] : memref<64x512xf32, #tpu.memory_space<vmem>>, vector<8x512xf32>
    %cst_45 = arith.constant dense<0.000000e+00> : vector<8x512xf32>
    %129 = tpu.matmul %126, %7, %cst_45 {dimension_numbers = #tpu.dot_dimension_numbers<[1], [0], [0], [1], [0, 0, 1, 1], [], []>} : vector<8x128xf32>, vector<128x512xf32>, vector<8x512xf32> -> vector<8x512xf32>
    %130 = arith.addf %128, %129 : vector<8x512xf32>
    %131 = vector.extract_strided_slice %130 {offsets = [0, 0], sizes = [8, 128], strides = [1, 1]} : vector<8x512xf32> to vector<8x128xf32>
    %132 = arith.negf %131 : vector<8x128xf32>
    %133 = math.exp %132 : vector<8x128xf32>
    %cst_46 = arith.constant 1.000000e+00 : f32
    %134 = vector.broadcast %cst_46 : f32 to vector<8x128xf32>
    %135 = arith.addf %134, %133 : vector<8x128xf32>
    %136 = arith.divf %134, %135 : vector<8x128xf32>
    %137 = vector.extract_strided_slice %130 {offsets = [0, 128], sizes = [8, 128], strides = [1, 1]} : vector<8x512xf32> to vector<8x128xf32>
    %138 = arith.negf %137 : vector<8x128xf32>
    %139 = math.exp %138 : vector<8x128xf32>
    %cst_47 = arith.constant 1.000000e+00 : f32
    %140 = vector.broadcast %cst_47 : f32 to vector<8x128xf32>
    %141 = arith.addf %140, %139 : vector<8x128xf32>
    %142 = arith.divf %140, %141 : vector<8x128xf32>
    %143 = vector.extract_strided_slice %130 {offsets = [0, 256], sizes = [8, 128], strides = [1, 1]} : vector<8x512xf32> to vector<8x128xf32>
    %144 = math.tanh %143 : vector<8x128xf32>
    %145 = vector.extract_strided_slice %130 {offsets = [0, 384], sizes = [8, 128], strides = [1, 1]} : vector<8x512xf32> to vector<8x128xf32>
    %146 = arith.negf %145 : vector<8x128xf32>
    %147 = math.exp %146 : vector<8x128xf32>
    %cst_48 = arith.constant 1.000000e+00 : f32
    %148 = vector.broadcast %cst_48 : f32 to vector<8x128xf32>
    %149 = arith.addf %148, %147 : vector<8x128xf32>
    %150 = arith.divf %148, %149 : vector<8x128xf32>
    %151 = arith.mulf %142, %124 : vector<8x128xf32>
    %152 = arith.mulf %136, %144 : vector<8x128xf32>
    %153 = arith.addf %151, %152 : vector<8x128xf32>
    %154 = math.tanh %153 : vector<8x128xf32>
    %155 = arith.mulf %150, %154 : vector<8x128xf32>
    %c32_49 = arith.constant 32 : index
    %c0_50 = arith.constant 0 : index
    %156 = vector.load %arg15[%c32_49, %c0_50] : memref<64x128xf32, #tpu.memory_space<vmem>>, vector<8x128xf32>
    tpu.vector_store %arg15[%c32_49, %c0_50], %155 {strides = array<i32>} : memref<64x128xf32, #tpu.memory_space<vmem>>, vector<8x128xf32>,
    %c40 = arith.constant 40 : index
    %c0_51 = arith.constant 0 : index
    %157 = vector.load %arg14[%c40, %c0_51] : memref<64x512xf32, #tpu.memory_space<vmem>>, vector<8x512xf32>
    %cst_52 = arith.constant dense<0.000000e+00> : vector<8x512xf32>
    %158 = tpu.matmul %155, %7, %cst_52 {dimension_numbers = #tpu.dot_dimension_numbers<[1], [0], [0], [1], [0, 0, 1, 1], [], []>} : vector<8x128xf32>, vector<128x512xf32>, vector<8x512xf32> -> vector<8x512xf32>
    %159 = arith.addf %157, %158 : vector<8x512xf32>
    %160 = vector.extract_strided_slice %159 {offsets = [0, 0], sizes = [8, 128], strides = [1, 1]} : vector<8x512xf32> to vector<8x128xf32>
    %161 = arith.negf %160 : vector<8x128xf32>
    %162 = math.exp %161 : vector<8x128xf32>
    %cst_53 = arith.constant 1.000000e+00 : f32
    %163 = vector.broadcast %cst_53 : f32 to vector<8x128xf32>
    %164 = arith.addf %163, %162 : vector<8x128xf32>
    %165 = arith.divf %163, %164 : vector<8x128xf32>
    %166 = vector.extract_strided_slice %159 {offsets = [0, 128], sizes = [8, 128], strides = [1, 1]} : vector<8x512xf32> to vector<8x128xf32>
    %167 = arith.negf %166 : vector<8x128xf32>
    %168 = math.exp %167 : vector<8x128xf32>
    %cst_54 = arith.constant 1.000000e+00 : f32
    %169 = vector.broadcast %cst_54 : f32 to vector<8x128xf32>
    %170 = arith.addf %169, %168 : vector<8x128xf32>
    %171 = arith.divf %169, %170 : vector<8x128xf32>
    %172 = vector.extract_strided_slice %159 {offsets = [0, 256], sizes = [8, 128], strides = [1, 1]} : vector<8x512xf32> to vector<8x128xf32>
    %173 = math.tanh %172 : vector<8x128xf32>
    %174 = vector.extract_strided_slice %159 {offsets = [0, 384], sizes = [8, 128], strides = [1, 1]} : vector<8x512xf32> to vector<8x128xf32>
    %175 = arith.negf %174 : vector<8x128xf32>
    %176 = math.exp %175 : vector<8x128xf32>
    %cst_55 = arith.constant 1.000000e+00 : f32
    %177 = vector.broadcast %cst_55 : f32 to vector<8x128xf32>
    %178 = arith.addf %177, %176 : vector<8x128xf32>
    %179 = arith.divf %177, %178 : vector<8x128xf32>
    %180 = arith.mulf %171, %153 : vector<8x128xf32>
    %181 = arith.mulf %165, %173 : vector<8x128xf32>
    %182 = arith.addf %180, %181 : vector<8x128xf32>
    %183 = math.tanh %182 : vector<8x128xf32>
    %184 = arith.mulf %179, %183 : vector<8x128xf32>
    %c40_56 = arith.constant 40 : index
    %c0_57 = arith.constant 0 : index
    %185 = vector.load %arg15[%c40_56, %c0_57] : memref<64x128xf32, #tpu.memory_space<vmem>>, vector<8x128xf32>
    tpu.vector_store %arg15[%c40_56, %c0_57], %184 {strides = array<i32>} : memref<64x128xf32, #tpu.memory_space<vmem>>, vector<8x128xf32>,
    %c48 = arith.constant 48 : index
    %c0_58 = arith.constant 0 : index
    %186 = vector.load %arg14[%c48, %c0_58] : memref<64x512xf32, #tpu.memory_space<vmem>>, vector<8x512xf32>
    %cst_59 = arith.constant dense<0.000000e+00> : vector<8x512xf32>
    %187 = tpu.matmul %184, %7, %cst_59 {dimension_numbers = #tpu.dot_dimension_numbers<[1], [0], [0], [1], [0, 0, 1, 1], [], []>} : vector<8x128xf32>, vector<128x512xf32>, vector<8x512xf32> -> vector<8x512xf32>
    %188 = arith.addf %186, %187 : vector<8x512xf32>
    %189 = vector.extract_strided_slice %188 {offsets = [0, 0], sizes = [8, 128], strides = [1, 1]} : vector<8x512xf32> to vector<8x128xf32>
    %190 = arith.negf %189 : vector<8x128xf32>
    %191 = math.exp %190 : vector<8x128xf32>
    %cst_60 = arith.constant 1.000000e+00 : f32
    %192 = vector.broadcast %cst_60 : f32 to vector<8x128xf32>
    %193 = arith.addf %192, %191 : vector<8x128xf32>
    %194 = arith.divf %192, %193 : vector<8x128xf32>
    %195 = vector.extract_strided_slice %188 {offsets = [0, 128], sizes = [8, 128], strides = [1, 1]} : vector<8x512xf32> to vector<8x128xf32>
    %196 = arith.negf %195 : vector<8x128xf32>
    %197 = math.exp %196 : vector<8x128xf32>
    %cst_61 = arith.constant 1.000000e+00 : f32
    %198 = vector.broadcast %cst_61 : f32 to vector<8x128xf32>
    %199 = arith.addf %198, %197 : vector<8x128xf32>
    %200 = arith.divf %198, %199 : vector<8x128xf32>
    %201 = vector.extract_strided_slice %188 {offsets = [0, 256], sizes = [8, 128], strides = [1, 1]} : vector<8x512xf32> to vector<8x128xf32>
    %202 = math.tanh %201 : vector<8x128xf32>
    %203 = vector.extract_strided_slice %188 {offsets = [0, 384], sizes = [8, 128], strides = [1, 1]} : vector<8x512xf32> to vector<8x128xf32>
    %204 = arith.negf %203 : vector<8x128xf32>
    %205 = math.exp %204 : vector<8x128xf32>
    %cst_62 = arith.constant 1.000000e+00 : f32
    %206 = vector.broadcast %cst_62 : f32 to vector<8x128xf32>
    %207 = arith.addf %206, %205 : vector<8x128xf32>
    %208 = arith.divf %206, %207 : vector<8x128xf32>
    %209 = arith.mulf %200, %182 : vector<8x128xf32>
    %210 = arith.mulf %194, %202 : vector<8x128xf32>
    %211 = arith.addf %209, %210 : vector<8x128xf32>
    %212 = math.tanh %211 : vector<8x128xf32>
    %213 = arith.mulf %208, %212 : vector<8x128xf32>
    %c48_63 = arith.constant 48 : index
    %c0_64 = arith.constant 0 : index
    %214 = vector.load %arg15[%c48_63, %c0_64] : memref<64x128xf32, #tpu.memory_space<vmem>>, vector<8x128xf32>
    tpu.vector_store %arg15[%c48_63, %c0_64], %213 {strides = array<i32>} : memref<64x128xf32, #tpu.memory_space<vmem>>, vector<8x128xf32>,
    %c56 = arith.constant 56 : index
    %c0_65 = arith.constant 0 : index
    %215 = vector.load %arg14[%c56, %c0_65] : memref<64x512xf32, #tpu.memory_space<vmem>>, vector<8x512xf32>
    %cst_66 = arith.constant dense<0.000000e+00> : vector<8x512xf32>
    %216 = tpu.matmul %213, %7, %cst_66 {dimension_numbers = #tpu.dot_dimension_numbers<[1], [0], [0], [1], [0, 0, 1, 1], [], []>} : vector<8x128xf32>, vector<128x512xf32>, vector<8x512xf32> -> vector<8x512xf32>
    %217 = arith.addf %215, %216 : vector<8x512xf32>
    %218 = vector.extract_strided_slice %217 {offsets = [0, 0], sizes = [8, 128], strides = [1, 1]} : vector<8x512xf32> to vector<8x128xf32>
    %219 = arith.negf %218 : vector<8x128xf32>
    %220 = math.exp %219 : vector<8x128xf32>
    %cst_67 = arith.constant 1.000000e+00 : f32
    %221 = vector.broadcast %cst_67 : f32 to vector<8x128xf32>
    %222 = arith.addf %221, %220 : vector<8x128xf32>
    %223 = arith.divf %221, %222 : vector<8x128xf32>
    %224 = vector.extract_strided_slice %217 {offsets = [0, 128], sizes = [8, 128], strides = [1, 1]} : vector<8x512xf32> to vector<8x128xf32>
    %225 = arith.negf %224 : vector<8x128xf32>
    %226 = math.exp %225 : vector<8x128xf32>
    %cst_68 = arith.constant 1.000000e+00 : f32
    %227 = vector.broadcast %cst_68 : f32 to vector<8x128xf32>
    %228 = arith.addf %227, %226 : vector<8x128xf32>
    %229 = arith.divf %227, %228 : vector<8x128xf32>
    %230 = vector.extract_strided_slice %217 {offsets = [0, 256], sizes = [8, 128], strides = [1, 1]} : vector<8x512xf32> to vector<8x128xf32>
    %231 = math.tanh %230 : vector<8x128xf32>
    %232 = vector.extract_strided_slice %217 {offsets = [0, 384], sizes = [8, 128], strides = [1, 1]} : vector<8x512xf32> to vector<8x128xf32>
    %233 = arith.negf %232 : vector<8x128xf32>
    %234 = math.exp %233 : vector<8x128xf32>
    %cst_69 = arith.constant 1.000000e+00 : f32
    %235 = vector.broadcast %cst_69 : f32 to vector<8x128xf32>
    %236 = arith.addf %235, %234 : vector<8x128xf32>
    %237 = arith.divf %235, %236 : vector<8x128xf32>
    %238 = arith.mulf %229, %211 : vector<8x128xf32>
    %239 = arith.mulf %223, %231 : vector<8x128xf32>
    %240 = arith.addf %238, %239 : vector<8x128xf32>
    %241 = math.tanh %240 : vector<8x128xf32>
    %242 = arith.mulf %237, %241 : vector<8x128xf32>
    %c56_70 = arith.constant 56 : index
    %c0_71 = arith.constant 0 : index
    %243 = vector.load %arg15[%c56_70, %c0_71] : memref<64x128xf32, #tpu.memory_space<vmem>>, vector<8x128xf32>
    tpu.vector_store %arg15[%c56_70, %c0_71], %242 {strides = array<i32>} : memref<64x128xf32, #tpu.memory_space<vmem>>, vector<8x128xf32>,
    %c0_72 = arith.constant 0 : index
    %c0_73 = arith.constant 0 : index
    %c0_74 = arith.constant 0 : index
    %244 = vector.load %arg12[%c0_72, %c0_73, %c0_74] : memref<2x8x128xf32, #tpu.memory_space<vmem>>, vector<1x8x128xf32>
    %245 = vector.shape_cast %244 : vector<1x8x128xf32> to vector<8x128xf32>
    %246 = vector.shape_cast %242 : vector<8x128xf32> to vector<1x8x128xf32>
    tpu.vector_store %arg12[%c0_72, %c0_73, %c0_74], %246 {strides = array<i32>} : memref<2x8x128xf32, #tpu.memory_space<vmem>>, vector<1x8x128xf32>,
    %c0_75 = arith.constant 0 : index
    %c0_76 = arith.constant 0 : index
    %c0_77 = arith.constant 0 : index
    %247 = vector.load %arg13[%c0_75, %c0_76, %c0_77] : memref<2x8x128xf32, #tpu.memory_space<vmem>>, vector<1x8x128xf32>
    %248 = vector.shape_cast %247 : vector<1x8x128xf32> to vector<8x128xf32>
    %249 = vector.shape_cast %240 : vector<8x128xf32> to vector<1x8x128xf32>
    tpu.vector_store %arg13[%c0_75, %c0_76, %c0_77], %249 {strides = array<i32>} : memref<2x8x128xf32, #tpu.memory_space<vmem>>, vector<1x8x128xf32>,
    %c0_78 = arith.constant 0 : index
    %c0_79 = arith.constant 0 : index
    %250 = vector.load %arg15[%c0_78, %c0_79] : memref<64x128xf32, #tpu.memory_space<vmem>>, vector<64x128xf32>
    %c0_80 = arith.constant 0 : index
    %c0_81 = arith.constant 0 : index
    %251 = vector.load %arg4[%c0_80, %c0_81] : memref<128x512xf32, #tpu.memory_space<vmem>>, vector<128x512xf32>
    %cst_82 = arith.constant dense<0.000000e+00> : vector<64x512xf32>
    %252 = tpu.matmul %250, %251, %cst_82 {dimension_numbers = #tpu.dot_dimension_numbers<[1], [0], [0], [1], [0, 0, 1, 1], [], []>} : vector<64x128xf32>, vector<128x512xf32>, vector<64x512xf32> -> vector<64x512xf32>
    %c0_83 = arith.constant 0 : index
    %c0_84 = arith.constant 0 : index
    %253 = vector.load %arg6[%c0_83, %c0_84] : memref<1x512xf32, #tpu.memory_space<vmem>>, vector<1x512xf32>
    %254 = vector.broadcast %253 : vector<1x512xf32> to vector<64x512xf32>
    %255 = arith.addf %252, %254 : vector<64x512xf32>
    %c0_85 = arith.constant 0 : index
    %c0_86 = arith.constant 0 : index
    %256 = vector.load %arg14[%c0_85, %c0_86] : memref<64x512xf32, #tpu.memory_space<vmem>>, vector<64x512xf32>
    tpu.vector_store %arg14[%c0_85, %c0_86], %255 {strides = array<i32>} : memref<64x512xf32, #tpu.memory_space<vmem>>, vector<64x512xf32>,
    %c0_87 = arith.constant 0 : index
    %c0_88 = arith.constant 0 : index
    %257 = vector.load %arg5[%c0_87, %c0_88] : memref<128x512xf32, #tpu.memory_space<vmem>>, vector<128x512xf32>
    %c1 = arith.constant 1 : index
    %c0_89 = arith.constant 0 : index
    %c0_90 = arith.constant 0 : index
    %258 = vector.load %arg7[%c1, %c0_89, %c0_90] : memref<2x8x128xf32, #tpu.memory_space<vmem>>, vector<1x8x128xf32>
    %259 = vector.shape_cast %258 : vector<1x8x128xf32> to vector<8x128xf32>
    %c1_91 = arith.constant 1 : index
    %c0_92 = arith.constant 0 : index
    %c0_93 = arith.constant 0 : index
    %260 = vector.load %arg8[%c1_91, %c0_92, %c0_93] : memref<2x8x128xf32, #tpu.memory_space<vmem>>, vector<1x8x128xf32>
    %261 = vector.shape_cast %260 : vector<1x8x128xf32> to vector<8x128xf32>
    %c0_94 = arith.constant 0 : index
    %c0_95 = arith.constant 0 : index
    %262 = vector.load %arg14[%c0_94, %c0_95] : memref<64x512xf32, #tpu.memory_space<vmem>>, vector<8x512xf32>
    %cst_96 = arith.constant dense<0.000000e+00> : vector<8x512xf32>
    %263 = tpu.matmul %259, %257, %cst_96 {dimension_numbers = #tpu.dot_dimension_numbers<[1], [0], [0], [1], [0, 0, 1, 1], [], []>} : vector<8x128xf32>, vector<128x512xf32>, vector<8x512xf32> -> vector<8x512xf32>
    %264 = arith.addf %262, %263 : vector<8x512xf32>
    %265 = vector.extract_strided_slice %264 {offsets = [0, 0], sizes = [8, 128], strides = [1, 1]} : vector<8x512xf32> to vector<8x128xf32>
    %266 = arith.negf %265 : vector<8x128xf32>
    %267 = math.exp %266 : vector<8x128xf32>
    %cst_97 = arith.constant 1.000000e+00 : f32
    %268 = vector.broadcast %cst_97 : f32 to vector<8x128xf32>
    %269 = arith.addf %268, %267 : vector<8x128xf32>
    %270 = arith.divf %268, %269 : vector<8x128xf32>
    %271 = vector.extract_strided_slice %264 {offsets = [0, 128], sizes = [8, 128], strides = [1, 1]} : vector<8x512xf32> to vector<8x128xf32>
    %272 = arith.negf %271 : vector<8x128xf32>
    %273 = math.exp %272 : vector<8x128xf32>
    %cst_98 = arith.constant 1.000000e+00 : f32
    %274 = vector.broadcast %cst_98 : f32 to vector<8x128xf32>
    %275 = arith.addf %274, %273 : vector<8x128xf32>
    %276 = arith.divf %274, %275 : vector<8x128xf32>
    %277 = vector.extract_strided_slice %264 {offsets = [0, 256], sizes = [8, 128], strides = [1, 1]} : vector<8x512xf32> to vector<8x128xf32>
    %278 = math.tanh %277 : vector<8x128xf32>
    %279 = vector.extract_strided_slice %264 {offsets = [0, 384], sizes = [8, 128], strides = [1, 1]} : vector<8x512xf32> to vector<8x128xf32>
    %280 = arith.negf %279 : vector<8x128xf32>
    %281 = math.exp %280 : vector<8x128xf32>
    %cst_99 = arith.constant 1.000000e+00 : f32
    %282 = vector.broadcast %cst_99 : f32 to vector<8x128xf32>
    %283 = arith.addf %282, %281 : vector<8x128xf32>
    %284 = arith.divf %282, %283 : vector<8x128xf32>
    %285 = arith.mulf %276, %261 : vector<8x128xf32>
    %286 = arith.mulf %270, %278 : vector<8x128xf32>
    %287 = arith.addf %285, %286 : vector<8x128xf32>
    %288 = math.tanh %287 : vector<8x128xf32>
    %289 = arith.mulf %284, %288 : vector<8x128xf32>
    %c0_100 = arith.constant 0 : index
    %c0_101 = arith.constant 0 : index
    %290 = vector.load %arg15[%c0_100, %c0_101] : memref<64x128xf32, #tpu.memory_space<vmem>>, vector<8x128xf32>
    tpu.vector_store %arg15[%c0_100, %c0_101], %289 {strides = array<i32>} : memref<64x128xf32, #tpu.memory_space<vmem>>, vector<8x128xf32>,
    %c8_102 = arith.constant 8 : index
    %c0_103 = arith.constant 0 : index
    %291 = vector.load %arg14[%c8_102, %c0_103] : memref<64x512xf32, #tpu.memory_space<vmem>>, vector<8x512xf32>
    %cst_104 = arith.constant dense<0.000000e+00> : vector<8x512xf32>
    %292 = tpu.matmul %289, %257, %cst_104 {dimension_numbers = #tpu.dot_dimension_numbers<[1], [0], [0], [1], [0, 0, 1, 1], [], []>} : vector<8x128xf32>, vector<128x512xf32>, vector<8x512xf32> -> vector<8x512xf32>
    %293 = arith.addf %291, %292 : vector<8x512xf32>
    %294 = vector.extract_strided_slice %293 {offsets = [0, 0], sizes = [8, 128], strides = [1, 1]} : vector<8x512xf32> to vector<8x128xf32>
    %295 = arith.negf %294 : vector<8x128xf32>
    %296 = math.exp %295 : vector<8x128xf32>
    %cst_105 = arith.constant 1.000000e+00 : f32
    %297 = vector.broadcast %cst_105 : f32 to vector<8x128xf32>
    %298 = arith.addf %297, %296 : vector<8x128xf32>
    %299 = arith.divf %297, %298 : vector<8x128xf32>
    %300 = vector.extract_strided_slice %293 {offsets = [0, 128], sizes = [8, 128], strides = [1, 1]} : vector<8x512xf32> to vector<8x128xf32>
    %301 = arith.negf %300 : vector<8x128xf32>
    %302 = math.exp %301 : vector<8x128xf32>
    %cst_106 = arith.constant 1.000000e+00 : f32
    %303 = vector.broadcast %cst_106 : f32 to vector<8x128xf32>
    %304 = arith.addf %303, %302 : vector<8x128xf32>
    %305 = arith.divf %303, %304 : vector<8x128xf32>
    %306 = vector.extract_strided_slice %293 {offsets = [0, 256], sizes = [8, 128], strides = [1, 1]} : vector<8x512xf32> to vector<8x128xf32>
    %307 = math.tanh %306 : vector<8x128xf32>
    %308 = vector.extract_strided_slice %293 {offsets = [0, 384], sizes = [8, 128], strides = [1, 1]} : vector<8x512xf32> to vector<8x128xf32>
    %309 = arith.negf %308 : vector<8x128xf32>
    %310 = math.exp %309 : vector<8x128xf32>
    %cst_107 = arith.constant 1.000000e+00 : f32
    %311 = vector.broadcast %cst_107 : f32 to vector<8x128xf32>
    %312 = arith.addf %311, %310 : vector<8x128xf32>
    %313 = arith.divf %311, %312 : vector<8x128xf32>
    %314 = arith.mulf %305, %287 : vector<8x128xf32>
    %315 = arith.mulf %299, %307 : vector<8x128xf32>
    %316 = arith.addf %314, %315 : vector<8x128xf32>
    %317 = math.tanh %316 : vector<8x128xf32>
    %318 = arith.mulf %313, %317 : vector<8x128xf32>
    %c8_108 = arith.constant 8 : index
    %c0_109 = arith.constant 0 : index
    %319 = vector.load %arg15[%c8_108, %c0_109] : memref<64x128xf32, #tpu.memory_space<vmem>>, vector<8x128xf32>
    tpu.vector_store %arg15[%c8_108, %c0_109], %318 {strides = array<i32>} : memref<64x128xf32, #tpu.memory_space<vmem>>, vector<8x128xf32>,
    %c16_110 = arith.constant 16 : index
    %c0_111 = arith.constant 0 : index
    %320 = vector.load %arg14[%c16_110, %c0_111] : memref<64x512xf32, #tpu.memory_space<vmem>>, vector<8x512xf32>
    %cst_112 = arith.constant dense<0.000000e+00> : vector<8x512xf32>
    %321 = tpu.matmul %318, %257, %cst_112 {dimension_numbers = #tpu.dot_dimension_numbers<[1], [0], [0], [1], [0, 0, 1, 1], [], []>} : vector<8x128xf32>, vector<128x512xf32>, vector<8x512xf32> -> vector<8x512xf32>
    %322 = arith.addf %320, %321 : vector<8x512xf32>
    %323 = vector.extract_strided_slice %322 {offsets = [0, 0], sizes = [8, 128], strides = [1, 1]} : vector<8x512xf32> to vector<8x128xf32>
    %324 = arith.negf %323 : vector<8x128xf32>
    %325 = math.exp %324 : vector<8x128xf32>
    %cst_113 = arith.constant 1.000000e+00 : f32
    %326 = vector.broadcast %cst_113 : f32 to vector<8x128xf32>
    %327 = arith.addf %326, %325 : vector<8x128xf32>
    %328 = arith.divf %326, %327 : vector<8x128xf32>
    %329 = vector.extract_strided_slice %322 {offsets = [0, 128], sizes = [8, 128], strides = [1, 1]} : vector<8x512xf32> to vector<8x128xf32>
    %330 = arith.negf %329 : vector<8x128xf32>
    %331 = math.exp %330 : vector<8x128xf32>
    %cst_114 = arith.constant 1.000000e+00 : f32
    %332 = vector.broadcast %cst_114 : f32 to vector<8x128xf32>
    %333 = arith.addf %332, %331 : vector<8x128xf32>
    %334 = arith.divf %332, %333 : vector<8x128xf32>
    %335 = vector.extract_strided_slice %322 {offsets = [0, 256], sizes = [8, 128], strides = [1, 1]} : vector<8x512xf32> to vector<8x128xf32>
    %336 = math.tanh %335 : vector<8x128xf32>
    %337 = vector.extract_strided_slice %322 {offsets = [0, 384], sizes = [8, 128], strides = [1, 1]} : vector<8x512xf32> to vector<8x128xf32>
    %338 = arith.negf %337 : vector<8x128xf32>
    %339 = math.exp %338 : vector<8x128xf32>
    %cst_115 = arith.constant 1.000000e+00 : f32
    %340 = vector.broadcast %cst_115 : f32 to vector<8x128xf32>
    %341 = arith.addf %340, %339 : vector<8x128xf32>
    %342 = arith.divf %340, %341 : vector<8x128xf32>
    %343 = arith.mulf %334, %316 : vector<8x128xf32>
    %344 = arith.mulf %328, %336 : vector<8x128xf32>
    %345 = arith.addf %343, %344 : vector<8x128xf32>
    %346 = math.tanh %345 : vector<8x128xf32>
    %347 = arith.mulf %342, %346 : vector<8x128xf32>
    %c16_116 = arith.constant 16 : index
    %c0_117 = arith.constant 0 : index
    %348 = vector.load %arg15[%c16_116, %c0_117] : memref<64x128xf32, #tpu.memory_space<vmem>>, vector<8x128xf32>
    tpu.vector_store %arg15[%c16_116, %c0_117], %347 {strides = array<i32>} : memref<64x128xf32, #tpu.memory_space<vmem>>, vector<8x128xf32>,
    %c24_118 = arith.constant 24 : index
    %c0_119 = arith.constant 0 : index
    %349 = vector.load %arg14[%c24_118, %c0_119] : memref<64x512xf32, #tpu.memory_space<vmem>>, vector<8x512xf32>
    %cst_120 = arith.constant dense<0.000000e+00> : vector<8x512xf32>
    %350 = tpu.matmul %347, %257, %cst_120 {dimension_numbers = #tpu.dot_dimension_numbers<[1], [0], [0], [1], [0, 0, 1, 1], [], []>} : vector<8x128xf32>, vector<128x512xf32>, vector<8x512xf32> -> vector<8x512xf32>
    %351 = arith.addf %349, %350 : vector<8x512xf32>
    %352 = vector.extract_strided_slice %351 {offsets = [0, 0], sizes = [8, 128], strides = [1, 1]} : vector<8x512xf32> to vector<8x128xf32>
    %353 = arith.negf %352 : vector<8x128xf32>
    %354 = math.exp %353 : vector<8x128xf32>
    %cst_121 = arith.constant 1.000000e+00 : f32
    %355 = vector.broadcast %cst_121 : f32 to vector<8x128xf32>
    %356 = arith.addf %355, %354 : vector<8x128xf32>
    %357 = arith.divf %355, %356 : vector<8x128xf32>
    %358 = vector.extract_strided_slice %351 {offsets = [0, 128], sizes = [8, 128], strides = [1, 1]} : vector<8x512xf32> to vector<8x128xf32>
    %359 = arith.negf %358 : vector<8x128xf32>
    %360 = math.exp %359 : vector<8x128xf32>
    %cst_122 = arith.constant 1.000000e+00 : f32
    %361 = vector.broadcast %cst_122 : f32 to vector<8x128xf32>
    %362 = arith.addf %361, %360 : vector<8x128xf32>
    %363 = arith.divf %361, %362 : vector<8x128xf32>
    %364 = vector.extract_strided_slice %351 {offsets = [0, 256], sizes = [8, 128], strides = [1, 1]} : vector<8x512xf32> to vector<8x128xf32>
    %365 = math.tanh %364 : vector<8x128xf32>
    %366 = vector.extract_strided_slice %351 {offsets = [0, 384], sizes = [8, 128], strides = [1, 1]} : vector<8x512xf32> to vector<8x128xf32>
    %367 = arith.negf %366 : vector<8x128xf32>
    %368 = math.exp %367 : vector<8x128xf32>
    %cst_123 = arith.constant 1.000000e+00 : f32
    %369 = vector.broadcast %cst_123 : f32 to vector<8x128xf32>
    %370 = arith.addf %369, %368 : vector<8x128xf32>
    %371 = arith.divf %369, %370 : vector<8x128xf32>
    %372 = arith.mulf %363, %345 : vector<8x128xf32>
    %373 = arith.mulf %357, %365 : vector<8x128xf32>
    %374 = arith.addf %372, %373 : vector<8x128xf32>
    %375 = math.tanh %374 : vector<8x128xf32>
    %376 = arith.mulf %371, %375 : vector<8x128xf32>
    %c24_124 = arith.constant 24 : index
    %c0_125 = arith.constant 0 : index
    %377 = vector.load %arg15[%c24_124, %c0_125] : memref<64x128xf32, #tpu.memory_space<vmem>>, vector<8x128xf32>
    tpu.vector_store %arg15[%c24_124, %c0_125], %376 {strides = array<i32>} : memref<64x128xf32, #tpu.memory_space<vmem>>, vector<8x128xf32>,
    %c32_126 = arith.constant 32 : index
    %c0_127 = arith.constant 0 : index
    %378 = vector.load %arg14[%c32_126, %c0_127] : memref<64x512xf32, #tpu.memory_space<vmem>>, vector<8x512xf32>
    %cst_128 = arith.constant dense<0.000000e+00> : vector<8x512xf32>
    %379 = tpu.matmul %376, %257, %cst_128 {dimension_numbers = #tpu.dot_dimension_numbers<[1], [0], [0], [1], [0, 0, 1, 1], [], []>} : vector<8x128xf32>, vector<128x512xf32>, vector<8x512xf32> -> vector<8x512xf32>
    %380 = arith.addf %378, %379 : vector<8x512xf32>
    %381 = vector.extract_strided_slice %380 {offsets = [0, 0], sizes = [8, 128], strides = [1, 1]} : vector<8x512xf32> to vector<8x128xf32>
    %382 = arith.negf %381 : vector<8x128xf32>
    %383 = math.exp %382 : vector<8x128xf32>
    %cst_129 = arith.constant 1.000000e+00 : f32
    %384 = vector.broadcast %cst_129 : f32 to vector<8x128xf32>
    %385 = arith.addf %384, %383 : vector<8x128xf32>
    %386 = arith.divf %384, %385 : vector<8x128xf32>
    %387 = vector.extract_strided_slice %380 {offsets = [0, 128], sizes = [8, 128], strides = [1, 1]} : vector<8x512xf32> to vector<8x128xf32>
    %388 = arith.negf %387 : vector<8x128xf32>
    %389 = math.exp %388 : vector<8x128xf32>
    %cst_130 = arith.constant 1.000000e+00 : f32
    %390 = vector.broadcast %cst_130 : f32 to vector<8x128xf32>
    %391 = arith.addf %390, %389 : vector<8x128xf32>
    %392 = arith.divf %390, %391 : vector<8x128xf32>
    %393 = vector.extract_strided_slice %380 {offsets = [0, 256], sizes = [8, 128], strides = [1, 1]} : vector<8x512xf32> to vector<8x128xf32>
    %394 = math.tanh %393 : vector<8x128xf32>
    %395 = vector.extract_strided_slice %380 {offsets = [0, 384], sizes = [8, 128], strides = [1, 1]} : vector<8x512xf32> to vector<8x128xf32>
    %396 = arith.negf %395 : vector<8x128xf32>
    %397 = math.exp %396 : vector<8x128xf32>
    %cst_131 = arith.constant 1.000000e+00 : f32
    %398 = vector.broadcast %cst_131 : f32 to vector<8x128xf32>
    %399 = arith.addf %398, %397 : vector<8x128xf32>
    %400 = arith.divf %398, %399 : vector<8x128xf32>
    %401 = arith.mulf %392, %374 : vector<8x128xf32>
    %402 = arith.mulf %386, %394 : vector<8x128xf32>
    %403 = arith.addf %401, %402 : vector<8x128xf32>
    %404 = math.tanh %403 : vector<8x128xf32>
    %405 = arith.mulf %400, %404 : vector<8x128xf32>
    %c32_132 = arith.constant 32 : index
    %c0_133 = arith.constant 0 : index
    %406 = vector.load %arg15[%c32_132, %c0_133] : memref<64x128xf32, #tpu.memory_space<vmem>>, vector<8x128xf32>
    tpu.vector_store %arg15[%c32_132, %c0_133], %405 {strides = array<i32>} : memref<64x128xf32, #tpu.memory_space<vmem>>, vector<8x128xf32>,
    %c40_134 = arith.constant 40 : index
    %c0_135 = arith.constant 0 : index
    %407 = vector.load %arg14[%c40_134, %c0_135] : memref<64x512xf32, #tpu.memory_space<vmem>>, vector<8x512xf32>
    %cst_136 = arith.constant dense<0.000000e+00> : vector<8x512xf32>
    %408 = tpu.matmul %405, %257, %cst_136 {dimension_numbers = #tpu.dot_dimension_numbers<[1], [0], [0], [1], [0, 0, 1, 1], [], []>} : vector<8x128xf32>, vector<128x512xf32>, vector<8x512xf32> -> vector<8x512xf32>
    %409 = arith.addf %407, %408 : vector<8x512xf32>
    %410 = vector.extract_strided_slice %409 {offsets = [0, 0], sizes = [8, 128], strides = [1, 1]} : vector<8x512xf32> to vector<8x128xf32>
    %411 = arith.negf %410 : vector<8x128xf32>
    %412 = math.exp %411 : vector<8x128xf32>
    %cst_137 = arith.constant 1.000000e+00 : f32
    %413 = vector.broadcast %cst_137 : f32 to vector<8x128xf32>
    %414 = arith.addf %413, %412 : vector<8x128xf32>
    %415 = arith.divf %413, %414 : vector<8x128xf32>
    %416 = vector.extract_strided_slice %409 {offsets = [0, 128], sizes = [8, 128], strides = [1, 1]} : vector<8x512xf32> to vector<8x128xf32>
    %417 = arith.negf %416 : vector<8x128xf32>
    %418 = math.exp %417 : vector<8x128xf32>
    %cst_138 = arith.constant 1.000000e+00 : f32
    %419 = vector.broadcast %cst_138 : f32 to vector<8x128xf32>
    %420 = arith.addf %419, %418 : vector<8x128xf32>
    %421 = arith.divf %419, %420 : vector<8x128xf32>
    %422 = vector.extract_strided_slice %409 {offsets = [0, 256], sizes = [8, 128], strides = [1, 1]} : vector<8x512xf32> to vector<8x128xf32>
    %423 = math.tanh %422 : vector<8x128xf32>
    %424 = vector.extract_strided_slice %409 {offsets = [0, 384], sizes = [8, 128], strides = [1, 1]} : vector<8x512xf32> to vector<8x128xf32>
    %425 = arith.negf %424 : vector<8x128xf32>
    %426 = math.exp %425 : vector<8x128xf32>
    %cst_139 = arith.constant 1.000000e+00 : f32
    %427 = vector.broadcast %cst_139 : f32 to vector<8x128xf32>
    %428 = arith.addf %427, %426 : vector<8x128xf32>
    %429 = arith.divf %427, %428 : vector<8x128xf32>
    %430 = arith.mulf %421, %403 : vector<8x128xf32>
    %431 = arith.mulf %415, %423 : vector<8x128xf32>
    %432 = arith.addf %430, %431 : vector<8x128xf32>
    %433 = math.tanh %432 : vector<8x128xf32>
    %434 = arith.mulf %429, %433 : vector<8x128xf32>
    %c40_140 = arith.constant 40 : index
    %c0_141 = arith.constant 0 : index
    %435 = vector.load %arg15[%c40_140, %c0_141] : memref<64x128xf32, #tpu.memory_space<vmem>>, vector<8x128xf32>
    tpu.vector_store %arg15[%c40_140, %c0_141], %434 {strides = array<i32>} : memref<64x128xf32, #tpu.memory_space<vmem>>, vector<8x128xf32>,
    %c48_142 = arith.constant 48 : index
    %c0_143 = arith.constant 0 : index
    %436 = vector.load %arg14[%c48_142, %c0_143] : memref<64x512xf32, #tpu.memory_space<vmem>>, vector<8x512xf32>
    %cst_144 = arith.constant dense<0.000000e+00> : vector<8x512xf32>
    %437 = tpu.matmul %434, %257, %cst_144 {dimension_numbers = #tpu.dot_dimension_numbers<[1], [0], [0], [1], [0, 0, 1, 1], [], []>} : vector<8x128xf32>, vector<128x512xf32>, vector<8x512xf32> -> vector<8x512xf32>
    %438 = arith.addf %436, %437 : vector<8x512xf32>
    %439 = vector.extract_strided_slice %438 {offsets = [0, 0], sizes = [8, 128], strides = [1, 1]} : vector<8x512xf32> to vector<8x128xf32>
    %440 = arith.negf %439 : vector<8x128xf32>
    %441 = math.exp %440 : vector<8x128xf32>
    %cst_145 = arith.constant 1.000000e+00 : f32
    %442 = vector.broadcast %cst_145 : f32 to vector<8x128xf32>
    %443 = arith.addf %442, %441 : vector<8x128xf32>
    %444 = arith.divf %442, %443 : vector<8x128xf32>
    %445 = vector.extract_strided_slice %438 {offsets = [0, 128], sizes = [8, 128], strides = [1, 1]} : vector<8x512xf32> to vector<8x128xf32>
    %446 = arith.negf %445 : vector<8x128xf32>
    %447 = math.exp %446 : vector<8x128xf32>
    %cst_146 = arith.constant 1.000000e+00 : f32
    %448 = vector.broadcast %cst_146 : f32 to vector<8x128xf32>
    %449 = arith.addf %448, %447 : vector<8x128xf32>
    %450 = arith.divf %448, %449 : vector<8x128xf32>
    %451 = vector.extract_strided_slice %438 {offsets = [0, 256], sizes = [8, 128], strides = [1, 1]} : vector<8x512xf32> to vector<8x128xf32>
    %452 = math.tanh %451 : vector<8x128xf32>
    %453 = vector.extract_strided_slice %438 {offsets = [0, 384], sizes = [8, 128], strides = [1, 1]} : vector<8x512xf32> to vector<8x128xf32>
    %454 = arith.negf %453 : vector<8x128xf32>
    %455 = math.exp %454 : vector<8x128xf32>
    %cst_147 = arith.constant 1.000000e+00 : f32
    %456 = vector.broadcast %cst_147 : f32 to vector<8x128xf32>
    %457 = arith.addf %456, %455 : vector<8x128xf32>
    %458 = arith.divf %456, %457 : vector<8x128xf32>
    %459 = arith.mulf %450, %432 : vector<8x128xf32>
    %460 = arith.mulf %444, %452 : vector<8x128xf32>
    %461 = arith.addf %459, %460 : vector<8x128xf32>
    %462 = math.tanh %461 : vector<8x128xf32>
    %463 = arith.mulf %458, %462 : vector<8x128xf32>
    %c48_148 = arith.constant 48 : index
    %c0_149 = arith.constant 0 : index
    %464 = vector.load %arg15[%c48_148, %c0_149] : memref<64x128xf32, #tpu.memory_space<vmem>>, vector<8x128xf32>
    tpu.vector_store %arg15[%c48_148, %c0_149], %463 {strides = array<i32>} : memref<64x128xf32, #tpu.memory_space<vmem>>, vector<8x128xf32>,
    %c56_150 = arith.constant 56 : index
    %c0_151 = arith.constant 0 : index
    %465 = vector.load %arg14[%c56_150, %c0_151] : memref<64x512xf32, #tpu.memory_space<vmem>>, vector<8x512xf32>
    %cst_152 = arith.constant dense<0.000000e+00> : vector<8x512xf32>
    %466 = tpu.matmul %463, %257, %cst_152 {dimension_numbers = #tpu.dot_dimension_numbers<[1], [0], [0], [1], [0, 0, 1, 1], [], []>} : vector<8x128xf32>, vector<128x512xf32>, vector<8x512xf32> -> vector<8x512xf32>
    %467 = arith.addf %465, %466 : vector<8x512xf32>
    %468 = vector.extract_strided_slice %467 {offsets = [0, 0], sizes = [8, 128], strides = [1, 1]} : vector<8x512xf32> to vector<8x128xf32>
    %469 = arith.negf %468 : vector<8x128xf32>
    %470 = math.exp %469 : vector<8x128xf32>
    %cst_153 = arith.constant 1.000000e+00 : f32
    %471 = vector.broadcast %cst_153 : f32 to vector<8x128xf32>
    %472 = arith.addf %471, %470 : vector<8x128xf32>
    %473 = arith.divf %471, %472 : vector<8x128xf32>
    %474 = vector.extract_strided_slice %467 {offsets = [0, 128], sizes = [8, 128], strides = [1, 1]} : vector<8x512xf32> to vector<8x128xf32>
    %475 = arith.negf %474 : vector<8x128xf32>
    %476 = math.exp %475 : vector<8x128xf32>
    %cst_154 = arith.constant 1.000000e+00 : f32
    %477 = vector.broadcast %cst_154 : f32 to vector<8x128xf32>
    %478 = arith.addf %477, %476 : vector<8x128xf32>
    %479 = arith.divf %477, %478 : vector<8x128xf32>
    %480 = vector.extract_strided_slice %467 {offsets = [0, 256], sizes = [8, 128], strides = [1, 1]} : vector<8x512xf32> to vector<8x128xf32>
    %481 = math.tanh %480 : vector<8x128xf32>
    %482 = vector.extract_strided_slice %467 {offsets = [0, 384], sizes = [8, 128], strides = [1, 1]} : vector<8x512xf32> to vector<8x128xf32>
    %483 = arith.negf %482 : vector<8x128xf32>
    %484 = math.exp %483 : vector<8x128xf32>
    %cst_155 = arith.constant 1.000000e+00 : f32
    %485 = vector.broadcast %cst_155 : f32 to vector<8x128xf32>
    %486 = arith.addf %485, %484 : vector<8x128xf32>
    %487 = arith.divf %485, %486 : vector<8x128xf32>
    %488 = arith.mulf %479, %461 : vector<8x128xf32>
    %489 = arith.mulf %473, %481 : vector<8x128xf32>
    %490 = arith.addf %488, %489 : vector<8x128xf32>
    %491 = math.tanh %490 : vector<8x128xf32>
    %492 = arith.mulf %487, %491 : vector<8x128xf32>
    %c56_156 = arith.constant 56 : index
    %c0_157 = arith.constant 0 : index
    %493 = vector.load %arg15[%c56_156, %c0_157] : memref<64x128xf32, #tpu.memory_space<vmem>>, vector<8x128xf32>
    tpu.vector_store %arg15[%c56_156, %c0_157], %492 {strides = array<i32>} : memref<64x128xf32, #tpu.memory_space<vmem>>, vector<8x128xf32>,
    %c1_158 = arith.constant 1 : index
    %c0_159 = arith.constant 0 : index
    %c0_160 = arith.constant 0 : index
    %494 = vector.load %arg12[%c1_158, %c0_159, %c0_160] : memref<2x8x128xf32, #tpu.memory_space<vmem>>, vector<1x8x128xf32>
    %495 = vector.shape_cast %494 : vector<1x8x128xf32> to vector<8x128xf32>
    %496 = vector.shape_cast %492 : vector<8x128xf32> to vector<1x8x128xf32>
    tpu.vector_store %arg12[%c1_158, %c0_159, %c0_160], %496 {strides = array<i32>} : memref<2x8x128xf32, #tpu.memory_space<vmem>>, vector<1x8x128xf32>,
    %c1_161 = arith.constant 1 : index
    %c0_162 = arith.constant 0 : index
    %c0_163 = arith.constant 0 : index
    %497 = vector.load %arg13[%c1_161, %c0_162, %c0_163] : memref<2x8x128xf32, #tpu.memory_space<vmem>>, vector<1x8x128xf32>
    %498 = vector.shape_cast %497 : vector<1x8x128xf32> to vector<8x128xf32>
    %499 = vector.shape_cast %490 : vector<8x128xf32> to vector<1x8x128xf32>
    tpu.vector_store %arg13[%c1_161, %c0_162, %c0_163], %499 {strides = array<i32>} : memref<2x8x128xf32, #tpu.memory_space<vmem>>, vector<1x8x128xf32>,
    %c0_164 = arith.constant 0 : index
    %c0_165 = arith.constant 0 : index
    %500 = vector.load %arg9[%c0_164, %c0_165] : memref<128x128xf32, #tpu.memory_space<vmem>>, vector<128x128xf32>
    %cst_166 = arith.constant dense<0.000000e+00> : vector<8x128xf32>
    %501 = tpu.matmul %492, %500, %cst_166 {dimension_numbers = #tpu.dot_dimension_numbers<[1], [0], [0], [1], [0, 0, 1, 1], [], []>} : vector<8x128xf32>, vector<128x128xf32>, vector<8x128xf32> -> vector<8x128xf32>
    %c0_167 = arith.constant 0 : index
    %c0_168 = arith.constant 0 : index
    %502 = vector.load %arg10[%c0_167, %c0_168] : memref<1x128xf32, #tpu.memory_space<vmem>>, vector<1x128xf32>
    %503 = vector.broadcast %502 : vector<1x128xf32> to vector<8x128xf32>
    %504 = arith.addf %501, %503 : vector<8x128xf32>
    %c0_169 = arith.constant 0 : index
    %c0_170 = arith.constant 0 : index
    %505 = vector.load %arg11[%c0_169, %c0_170] : memref<8x128xf32, #tpu.memory_space<vmem>>, vector<8x128xf32>
    tpu.vector_store %arg11[%c0_169, %c0_170], %504 {strides = array<i32>} : memref<8x128xf32, #tpu.memory_space<vmem>>, vector<8x128xf32>,
    return
  }
}

</mosaic_0001>

<bundles_post_ra>
// kernel: shaws_lstm_forward.1
= control target key start
LH: loop header
LB: loop body
LE: loop exit
PB: predicated region body
PF: predicated region fallthrough
CT: control target
= control target key end

     0   :  { %v5459_v3 = vmov 0.0   ;;  %vm5461_vm0 = vmmov 0   ;;  %s7313_s1 = inlined_call_operand.vmem [shape: f32[128,512], index: 1, kind: input, shape index: {}]   ;;  %s7314_s2 = inlined_call_operand.vmem [shape: f32[128,512], index: 2, kind: input, shape index: {}]   ;;  %s7315_s0 = inlined_call_operand.vmem [shape: f32[64,128], index: 0, kind: input, shape index: {}]   ;;  %s7316_s7 = inlined_call_operand.vmem [shape: f32[2,8,128], index: 7, kind: input, shape index: {}]   ;;  %s7317_s3 = inlined_call_operand.vmem [shape: f32[1,512], index: 3, kind: input, shape index: {}]   ;;  %s7318_s8 = inlined_call_operand.vmem [shape: f32[2,8,128], index: 8, kind: input, shape index: {}]   ;;  %s7319_s4 = inlined_call_operand.vmem [shape: f32[128,512], index: 4, kind: input, shape index: {}]   ;;  %s7320_s5 = inlined_call_operand.vmem [shape: f32[128,512], index: 5, kind: input, shape index: {}]   ;;  %s7321_s13 = inlined_call_operand.vmem [shape: f32[2,8,128], index: 13, kind: output, shape index: {2}]   ;;  %s7322_s12 = inlined_call_operand.vmem [shape: f32[2,8,128], index: 12, kind: output, shape index: {1}]   ;;  %s7323_s6 = inlined_call_operand.vmem [shape: f32[1,512], index: 6, kind: input, shape index: {}]   ;;  %s7324_s9 = inlined_call_operand.vmem [shape: f32[128,128], index: 9, kind: input, shape index: {}]   ;;  %s7325_s10 = inlined_call_operand.vmem [shape: f32[1,128], index: 10, kind: input, shape index: {}]   ;;  %s7326_s11 = inlined_call_operand.vmem [shape: f32[8,128], index: 11, kind: output, shape index: {0}]  }
   0x1   :  { %v50_v0 = vld [vmem:[%s7313_s1 + $0x8] sm:$0xff]  ;;  %v52_v2 = vld [vmem:[%s7313_s1 + $0x18] sm:$0xff]  ;;  %199 = vmatprep.mubr.f32.mxu0 %v5459_v3  ;;  %312 = vmatprep.mubr.f32.mxu1 %v5459_v3  ;;  %v49_v6 = vld [vmem:[%s7313_s1] sm:$0xff] }
   0x2   :  { %v54_v1 = vld [vmem:[%s7313_s1 + $0x28] sm:$0xff]  ;;  %v56_v5 = vld [vmem:[%s7313_s1 + $0x38] sm:$0xff]  ;;  %v53_v7 = vld [vmem:[%s7313_s1 + $0x20] sm:$0xff] }
   0x3   :  { %v3896_v4 = vpack.c.bf16 %v54_v1, %v50_v0  ;;  %v3928_v8 = vpack.c.bf16 %v56_v5, %v52_v2  ;;  %v3898_v9 = vpack.c.bf16 %v53_v7, %v49_v6  ;;  %v51_v10 = vld [vmem:[%s7313_s1 + $0x10] sm:$0xff]  ;;  %v58_v12 = vld [vmem:[%s7313_s1 + $0x48] sm:$0xff]  ;;  %v60_v15 = vld [vmem:[%s7313_s1 + $0x58] sm:$0xff] }
   0x4   :  { %v55_v11 = vld [vmem:[%s7313_s1 + $0x30] sm:$0xff]  ;;  %v62_v14 = vld [vmem:[%s7313_s1 + $0x68] sm:$0xff]  ;;  %v64_v16 = vld [vmem:[%s7313_s1 + $0x78] sm:$0xff] }
   0x5   :  { %3897 = vmatprep.subr.bf16.mxu0 %v3896_v4  ;;  %v3930_v13 = vpack.c.bf16 %v55_v11, %v51_v10  ;;  %3929 = vmatprep.subr.bf16.mxu1 %v3928_v8  ;;  %v3900_v17 = vpack.c.bf16 %v62_v14, %v58_v12  ;;  %v3932_v18 = vpack.c.bf16 %v64_v16, %v60_v15  ;;  %v57_v19 = vld [vmem:[%s7313_s1 + $0x40] sm:$0xff]  ;;  %v59_v21 = vld [vmem:[%s7313_s1 + $0x50] sm:$0xff]  ;;  %v66_v24 = vld [vmem:[%s7313_s1 + $0x88] sm:$0xff] }
   0x6   :  { %3899 = vmatpush1.bf16.msra.mxu0 %v3898_v9  ;;  %v61_v20 = vld [vmem:[%s7313_s1 + $0x60] sm:$0xff]  ;;  %v63_v23 = vld [vmem:[%s7313_s1 + $0x70] sm:$0xff]  ;;  %v70_v25 = vld [vmem:[%s7313_s1 + $0xa8] sm:$0xff] }
   0x7   :  { %3931 = vmatpush1.bf16.msra.mxu1 %v3930_v13  ;;  %v3902_v22 = vpack.c.bf16 %v61_v20, %v57_v19  ;;  %3901 = vmatprep.subr.bf16.mxu0 %v3900_v17  ;;  %v3934_v26 = vpack.c.bf16 %v63_v23, %v59_v21  ;;  %v3904_v27 = vpack.c.bf16 %v70_v25, %v66_v24  ;;  %v68_v28 = vld [vmem:[%s7313_s1 + $0x98] sm:$0xff]  ;;  %v65_v30 = vld [vmem:[%s7313_s1 + $0x80] sm:$0xff]  ;;  %v67_v33 = vld [vmem:[%s7313_s1 + $0x90] sm:$0xff] }
   0x8   :  { %3933 = vmatprep.subr.bf16.mxu1 %v3932_v18  ;;  %v72_v29 = vld [vmem:[%s7313_s1 + $0xb8] sm:$0xff]  ;;  %v69_v32 = vld [vmem:[%s7313_s1 + $0xa0] sm:$0xff]  ;;  %v71_v34 = vld [vmem:[%s7313_s1 + $0xb0] sm:$0xff] }
   0x9   :  { %v3936_v31 = vpack.c.bf16 %v72_v29, %v68_v28  ;;  %v3906_v35 = vpack.c.bf16 %v69_v32, %v65_v30  ;;  %v74_v36 = vld [vmem:[%s7313_s1 + $0xc8] sm:$0xff]  ;;  %v76_v38 = vld [vmem:[%s7313_s1 + $0xd8] sm:$0xff]  ;;  %v3938_v39 = vpack.c.bf16 %v71_v34, %v67_v33  ;;  %v73_v42 = vld [vmem:[%s7313_s1 + $0xc0] sm:$0xff] }
   0xa   :  { %3903 = vmatpush1.bf16.msra.mxu0 %v3902_v22  ;;  %v78_v37 = vld [vmem:[%s7313_s1 + $0xe8] sm:$0xff]  ;;  %v80_v41 = vld [vmem:[%s7313_s1 + $0xf8] sm:$0xff]  ;;  %v77_v43 = vld [vmem:[%s7313_s1 + $0xe0] sm:$0xff] }
   0xb   :  { %3935 = vmatpush1.bf16.msra.mxu1 %v3934_v26  ;;  %3905 = vmatprep.subr.bf16.mxu0 %v3904_v27  ;;  %v3908_v40 = vpack.c.bf16 %v78_v37, %v74_v36  ;;  %v3940_v44 = vpack.c.bf16 %v80_v41, %v76_v38  ;;  %v75_v45 = vld [vmem:[%s7313_s1 + $0xd0] sm:$0xff]  ;;  %v82_v47 = vld [vmem:[%s7313_s1 + $0x108] sm:$0xff]  ;;  %v84_v49 = vld [vmem:[%s7313_s1 + $0x118] sm:$0xff]  ;;  %v3910_v51 = vpack.c.bf16 %v77_v43, %v73_v42 }
   0xc   :  { %3937 = vmatprep.subr.bf16.mxu1 %v3936_v31  ;;  %v79_v46 = vld [vmem:[%s7313_s1 + $0xf0] sm:$0xff]  ;;  %v86_v48 = vld [vmem:[%s7313_s1 + $0x128] sm:$0xff]  ;;  %v88_v50 = vld [vmem:[%s7313_s1 + $0x138] sm:$0xff] }
   0xd   :  { %v3942_v52 = vpack.c.bf16 %v79_v46, %v75_v45  ;;  %v3912_v53 = vpack.c.bf16 %v86_v48, %v82_v47  ;;  %v81_v54 = vld [vmem:[%s7313_s1 + $0x100] sm:$0xff]  ;;  %v83_v56 = vld [vmem:[%s7313_s1 + $0x110] sm:$0xff]  ;;  %v3944_v57 = vpack.c.bf16 %v88_v50, %v84_v49  ;;  %v90_v59 = vld [vmem:[%s7313_s1 + $0x148] sm:$0xff] }
   0xe   :  { %3907 = vmatpush1.bf16.msra.mxu0 %v3906_v35  ;;  %v85_v55 = vld [vmem:[%s7313_s1 + $0x120] sm:$0xff]  ;;  %v87_v58 = vld [vmem:[%s7313_s1 + $0x130] sm:$0xff]  ;;  %v94_v60 = vld [vmem:[%s7313_s1 + $0x168] sm:$0xff] }
   0xf   :  { %3939 = vmatpush1.bf16.msra.mxu1 %v3938_v39  ;;  %3909 = vmatprep.subr.bf16.mxu0 %v3908_v40  ;;  %v92_v61 = vld [vmem:[%s7313_s1 + $0x158] sm:$0xff]  ;;  %v3914_v63 = vpack.c.bf16 %v85_v55, %v81_v54  ;;  %v3946_v0 = vpack.c.bf16 %v87_v58, %v83_v56  ;;  %v3916_v1 = vpack.c.bf16 %v94_v60, %v90_v59  ;;  %v89_v2 = vld [vmem:[%s7313_s1 + $0x140] sm:$0xff]  ;;  %v91_v5 = vld [vmem:[%s7313_s1 + $0x150] sm:$0xff] }
  0x10   :  { %3941 = vmatprep.subr.bf16.mxu1 %v3940_v44  ;;  %v96_v62 = vld [vmem:[%s7313_s1 + $0x178] sm:$0xff]  ;;  %v93_v4 = vld [vmem:[%s7313_s1 + $0x160] sm:$0xff]  ;;  %v95_v7 = vld [vmem:[%s7313_s1 + $0x170] sm:$0xff] }
  0x11   :  { %v3948_v6 = vpack.c.bf16 %v96_v62, %v92_v61  ;;  %v98_v8 = vld [vmem:[%s7313_s1 + $0x188] sm:$0xff]  ;;  %v100_v10 = vld [vmem:[%s7313_s1 + $0x198] sm:$0xff]  ;;  %v3918_v12 = vpack.c.bf16 %v93_v4, %v89_v2  ;;  %v3950_v13 = vpack.c.bf16 %v95_v7, %v91_v5  ;;  %v97_v15 = vld [vmem:[%s7313_s1 + $0x180] sm:$0xff] }
  0x12   :  { %3911 = vmatpush1.bf16.msra.mxu0 %v3910_v51  ;;  %v102_v9 = vld [vmem:[%s7313_s1 + $0x1a8] sm:$0xff]  ;;  %v104_v11 = vld [vmem:[%s7313_s1 + $0x1b8] sm:$0xff]  ;;  %v101_v16 = vld [vmem:[%s7313_s1 + $0x1a0] sm:$0xff] }
  0x13   :  { %3943 = vmatpush1.bf16.msra.mxu1 %v3942_v52  ;;  %3913 = vmatprep.subr.bf16.mxu0 %v3912_v53  ;;  %v3920_v14 = vpack.c.bf16 %v102_v9, %v98_v8  ;;  %v99_v17 = vld [vmem:[%s7313_s1 + $0x190] sm:$0xff]  ;;  %v3952_v18 = vpack.c.bf16 %v104_v11, %v100_v10  ;;  %v106_v20 = vld [vmem:[%s7313_s1 + $0x1c8] sm:$0xff]  ;;  %v108_v22 = vld [vmem:[%s7313_s1 + $0x1d8] sm:$0xff]  ;;  %v3922_v24 = vpack.c.bf16 %v101_v16, %v97_v15 }
  0x14   :  { %3945 = vmatprep.subr.bf16.mxu1 %v3944_v57  ;;  %v103_v19 = vld [vmem:[%s7313_s1 + $0x1b0] sm:$0xff]  ;;  %v110_v21 = vld [vmem:[%s7313_s1 + $0x1e8] sm:$0xff]  ;;  %v112_v23 = vld [vmem:[%s7313_s1 + $0x1f8] sm:$0xff] }
  0x15   :  { %v3954_v25 = vpack.c.bf16 %v103_v19, %v99_v17  ;;  %v3924_v26 = vpack.c.bf16 %v110_v21, %v106_v20  ;;  %v105_v27 = vld [vmem:[%s7313_s1 + $0x1c0] sm:$0xff]  ;;  %v107_v29 = vld [vmem:[%s7313_s1 + $0x1d0] sm:$0xff]  ;;  %v3956_v30 = vpack.c.bf16 %v112_v23, %v108_v22  ;;  %v394_v32 = vld [vmem:[%s7314_s2 + $0x8] sm:$0xff] }
  0x16   :  { %3915 = vmatpush1.bf16.msra.mxu0 %v3914_v63  ;;  %v109_v28 = vld [vmem:[%s7313_s1 + $0x1e0] sm:$0xff]  ;;  %v111_v31 = vld [vmem:[%s7313_s1 + $0x1f0] sm:$0xff]  ;;  %v398_v33 = vld [vmem:[%s7314_s2 + $0x28] sm:$0xff] }
  0x17   :  { %3947 = vmatpush1.bf16.msra.mxu1 %v3946_v0  ;;  %3917 = vmatprep.subr.bf16.mxu0 %v3916_v1  ;;  %v396_v34 = vld [vmem:[%s7314_s2 + $0x18] sm:$0xff]  ;;  %v3926_v36 = vpack.c.bf16 %v109_v28, %v105_v27  ;;  %v3958_v37 = vpack.c.bf16 %v111_v31, %v107_v29  ;;  %v5738_v38 = vpack.c.bf16 %v398_v33, %v394_v32  ;;  %v393_v39 = vld [vmem:[%s7314_s2] sm:$0xff]  ;;  %v395_v42 = vld [vmem:[%s7314_s2 + $0x10] sm:$0xff] }
  0x18   :  { %3949 = vmatprep.subr.bf16.mxu1 %v3948_v6  ;;  %v400_v35 = vld [vmem:[%s7314_s2 + $0x38] sm:$0xff]  ;;  %v397_v40 = vld [vmem:[%s7314_s2 + $0x20] sm:$0xff]  ;;  %v399_v43 = vld [vmem:[%s7314_s2 + $0x30] sm:$0xff] }
  0x19   :  { %v5746_v41 = vpack.c.bf16 %v400_v35, %v396_v34  ;;  %v402_v44 = vld [vmem:[%s7314_s2 + $0x48] sm:$0xff]  ;;  %v41_v46 = vld [vmem:[%s7315_s0] sm:$0xff]  ;;  %v5763_v47 = vpack.c.bf16 %v397_v40, %v393_v39  ;;  %v404_v48 = vld [vmem:[%s7314_s2 + $0x58] sm:$0xff]  ;;  %v5772_v50 = vpack.c.bf16 %v399_v43, %v395_v42 }
  0x1a   :  { %3919 = vmatpush1.bf16.msra.mxu0 %v3918_v12  ;;  %v406_v45 = vld [vmem:[%s7314_s2 + $0x68] sm:$0xff]  ;;  %v408_v49 = vld [vmem:[%s7314_s2 + $0x78] sm:$0xff]  ;;  %v401_v51 = vld [vmem:[%s7314_s2 + $0x40] sm:$0xff] }
  0x1b   :  { %3951 = vmatpush1.bf16.msra.mxu1 %v3950_v13  ;;  %3921 = vmatprep.subr.bf16.mxu0 %v3920_v14  ;;  %v405_v52 = vld [vmem:[%s7314_s2 + $0x60] sm:$0xff]  ;;  %v5781_v53 = vpack.c.bf16 %v406_v45, %v402_v44  ;;  %v403_v54 = vld [vmem:[%s7314_s2 + $0x50] sm:$0xff]  ;;  %v5789_v56 = vpack.c.bf16 %v408_v49, %v404_v48  ;;  %v410_v57 = vld [vmem:[%s7314_s2 + $0x88] sm:$0xff] }
  0x1c   :  { %3953 = vmatprep.subr.bf16.mxu1 %v3952_v18  ;;  %v407_v55 = vld [vmem:[%s7314_s2 + $0x70] sm:$0xff]  ;;  %v414_v58 = vld [vmem:[%s7314_s2 + $0xa8] sm:$0xff]  ;;  %v5801_v60 = vpack.c.bf16 %v405_v52, %v401_v51  ;;  %v412_v61 = vld [vmem:[%s7314_s2 + $0x98] sm:$0xff] }
  0x1d   :  { %v42_v59 = vld [vmem:[%s7315_s0 + $0x8] sm:$0xff]  ;;  %v416_v62 = vld [vmem:[%s7314_s2 + $0xb8] sm:$0xff]  ;;  %v5811_v63 = vpack.c.bf16 %v407_v55, %v403_v54  ;;  %v409_v0 = vld [vmem:[%s7314_s2 + $0x80] sm:$0xff]  ;;  %v5821_v2 = vpack.c.bf16 %v414_v58, %v410_v57 }
  0x1e   :  { %3923 = vmatpush1.bf16.msra.mxu0 %v3922_v24  ;;  %v413_v1 = vld [vmem:[%s7314_s2 + $0xa0] sm:$0xff]  ;;  %v411_v4 = vld [vmem:[%s7314_s2 + $0x90] sm:$0xff]  ;;  %v5830_v6 = vpack.c.bf16 %v416_v62, %v412_v61  ;;  %v418_v7 = vld [vmem:[%s7314_s2 + $0xc8] sm:$0xff] }
  0x1f   :  { %3955 = vmatpush1.bf16.msra.mxu1 %v3954_v25  ;;  %3925 = vmatprep.subr.bf16.mxu0 %v3924_v26  ;;  %v415_v5 = vld [vmem:[%s7314_s2 + $0xb0] sm:$0xff]  ;;  %v422_v8 = vld [vmem:[%s7314_s2 + $0xe8] sm:$0xff]  ;;  %v5842_v10 = vpack.c.bf16 %v413_v1, %v409_v0  ;;  %v420_v11 = vld [vmem:[%s7314_s2 + $0xd8] sm:$0xff] }
  0x20   :  { %3957 = vmatprep.subr.bf16.mxu1 %v3956_v30  ;;  %v43_v9 = vld [vmem:[%s7315_s0 + $0x10] sm:$0xff]  ;;  %v424_v12 = vld [vmem:[%s7314_s2 + $0xf8] sm:$0xff]  ;;  %v5852_v13 = vpack.c.bf16 %v415_v5, %v411_v4  ;;  %v417_v14 = vld [vmem:[%s7314_s2 + $0xc0] sm:$0xff]  ;;  %v5862_v16 = vpack.c.bf16 %v422_v8, %v418_v7 }
  0x21   :  { %v421_v15 = vld [vmem:[%s7314_s2 + $0xe0] sm:$0xff]  ;;  %v419_v17 = vld [vmem:[%s7314_s2 + $0xd0] sm:$0xff]  ;;  %v5871_v19 = vpack.c.bf16 %v424_v12, %v420_v11  ;;  %v426_v20 = vld [vmem:[%s7314_s2 + $0x108] sm:$0xff] }
  0x22   :  { %3927 = vmatpush1.bf16.msra.mxu0 %v3926_v36  ;;  %v423_v18 = vld [vmem:[%s7314_s2 + $0xf0] sm:$0xff]  ;;  %v430_v21 = vld [vmem:[%s7314_s2 + $0x128] sm:$0xff]  ;;  %v44_v22 = vld [vmem:[%s7315_s0 + $0x18] sm:$0xff]  ;;  %v5883_v23 = vpack.c.bf16 %v421_v15, %v417_v14 }
  0x23   :  { %3959 = vmatpush1.bf16.msra.mxu1 %v3958_v37  ;;  %3961 = vmatprep.subr.bf16.mxu0 %v5738_v38  ;;  %v428_v24 = vld [vmem:[%s7314_s2 + $0x118] sm:$0xff]  ;;  %v5893_v26 = vpack.c.bf16 %v423_v18, %v419_v17  ;;  %v425_v27 = vld [vmem:[%s7314_s2 + $0x100] sm:$0xff]  ;;  %v5903_v29 = vpack.c.bf16 %v430_v21, %v426_v20  ;;  %v427_v30 = vld [vmem:[%s7314_s2 + $0x110] sm:$0xff] }
  0x24   :  { %3993 = vmatprep.subr.bf16.mxu1 %v5746_v41  ;;  %v432_v25 = vld [vmem:[%s7314_s2 + $0x138] sm:$0xff]  ;;  %v429_v28 = vld [vmem:[%s7314_s2 + $0x120] sm:$0xff]  ;;  %v431_v31 = vld [vmem:[%s7314_s2 + $0x130] sm:$0xff] }
  0x25   :  { %200 = vmatmul.mubr.f32.vlgmr.msra.gmra.mrb[0].mxu0 %v41_v46  ;;  %v5912_v32 = vpack.c.bf16 %v432_v25, %v428_v24  ;;  %v434_v33 = vld [vmem:[%s7314_s2 + $0x148] sm:$0xff]  ;;  %v45_v35 = vld [vmem:[%s7315_s0 + $0x20] sm:$0xff]  ;;  %v5924_v36 = vpack.c.bf16 %v429_v28, %v425_v27  ;;  %v436_v37 = vld [vmem:[%s7314_s2 + $0x158] sm:$0xff]  ;;  %v5934_v40 = vpack.c.bf16 %v431_v31, %v427_v30  ;;  %v115_v30 = vlaneseq }
  0x26   :  { %313 = vmatmul.mubr.f32.vlgmr.msra.gmra.mrb[0].mxu1 %v41_v46  ;;  %3963 = vmatpush1.bf16.msra.mxu0 %v5763_v47  ;;  %v438_v34 = vld [vmem:[%s7314_s2 + $0x168] sm:$0xff]  ;;  %v440_v39 = vld [vmem:[%s7314_s2 + $0x178] sm:$0xff]  ;;  %v433_v42 = vld [vmem:[%s7314_s2 + $0x140] sm:$0xff] }
  0x27   :  { %3995 = vmatpush1.bf16.msra.mxu1 %v5772_v50  ;;  %205 = vmatprep.mubr.f32.mxu0 %v5459_v3  ;;  %v437_v43 = vld [vmem:[%s7314_s2 + $0x160] sm:$0xff]  ;;  %v5944_v44 = vpack.c.bf16 %v438_v34, %v434_v33  ;;  %v435_v45 = vld [vmem:[%s7314_s2 + $0x150] sm:$0xff]  ;;  %v5953_v48 = vpack.c.bf16 %v440_v39, %v436_v37  ;;  %v442_v49 = vld [vmem:[%s7314_s2 + $0x188] sm:$0xff]  ;;  %v6093_v31 = vshrl.u32 %v115_v30, 7 }
  0x28   :  { %318 = vmatprep.mubr.f32.mxu1 %v5459_v3  ;;  %3965 = vmatprep.subr.bf16.mxu0 %v5781_v53  ;;  %v439_v46 = vld [vmem:[%s7314_s2 + $0x170] sm:$0xff]  ;;  %v446_v51 = vld [vmem:[%s7314_s2 + $0x1a8] sm:$0xff]  ;;  %v5965_v54 = vpack.c.bf16 %v437_v43, %v433_v42  ;;  %v444_v55 = vld [vmem:[%s7314_s2 + $0x198] sm:$0xff] }
  0x29   :  { %206 = vmatmul.mubr.f32.gmra.mrb[2].mxu0 %v42_v59  ;;  %3997 = vmatprep.subr.bf16.mxu1 %v5789_v56  ;;  %v46_v52 = vld [vmem:[%s7315_s0 + $0x28] sm:$0xff]  ;;  %v448_v57 = vld [vmem:[%s7314_s2 + $0x1b8] sm:$0xff]  ;;  %v5975_v58 = vpack.c.bf16 %v439_v46, %v435_v45  ;;  %v445_v61 = vld [vmem:[%s7314_s2 + $0x1a0] sm:$0xff]  ;;  %v5985_v62 = vpack.c.bf16 %v446_v51, %v442_v49  ;;  %v117_v33 = vsub.s32 0, %v6093_v31  ;;  %v129_v43 = vsub.s32 3, %v6093_v31 }
  0x2a   :  { %319 = vmatmul.mubr.f32.gmra.mrb[2].mxu1 %v42_v59  ;;  %3967 = vmatpush1.bf16.msra.mxu0 %v5801_v60  ;;  %v441_v59 = vld [vmem:[%s7314_s2 + $0x180] sm:$0xff]  ;;  %v443_v0 = vld [vmem:[%s7314_s2 + $0x190] sm:$0xff]  ;;  %v5994_v4 = vpack.c.bf16 %v448_v57, %v444_v55  ;;  %v450_v5 = vld [vmem:[%s7314_s2 + $0x1c8] sm:$0xff] }
  0x2b   :  { %3999 = vmatpush1.bf16.msra.mxu1 %v5811_v63  ;;  %211 = vmatprep.mubr.f32.mxu0 %v5459_v3  ;;  %v447_v1 = vld [vmem:[%s7314_s2 + $0x1b0] sm:$0xff]  ;;  %v454_v7 = vld [vmem:[%s7314_s2 + $0x1e8] sm:$0xff]  ;;  %v452_v11 = vld [vmem:[%s7314_s2 + $0x1d8] sm:$0xff] }
  0x2c   :  { %324 = vmatprep.mubr.f32.mxu1 %v5459_v3  ;;  %3969 = vmatprep.subr.bf16.mxu0 %v5821_v2  ;;  %v47_v8 = vld [vmem:[%s7315_s0 + $0x30] sm:$0xff]  ;;  %v456_v12 = vld [vmem:[%s7314_s2 + $0x1f8] sm:$0xff]  ;;  %v6016_v14 = vpack.c.bf16 %v447_v1, %v443_v0  ;;  %v449_v15 = vld [vmem:[%s7314_s2 + $0x1c0] sm:$0xff]  ;;  %v6026_v18 = vpack.c.bf16 %v454_v7, %v450_v5 }
  0x2d   :  { %212 = vmatmul.mubr.f32.gmra.mrb[4].mxu0 %v43_v9  ;;  %4001 = vmatprep.subr.bf16.mxu1 %v5830_v6  ;;  %v453_v17 = vld [vmem:[%s7314_s2 + $0x1e0] sm:$0xff]  ;;  %v451_v20 = vld [vmem:[%s7314_s2 + $0x1d0] sm:$0xff]  ;;  %v48_v24 = vld [vmem:[%s7315_s0 + $0x38] sm:$0xff] }
  0x2e   :  { %325 = vmatmul.mubr.f32.gmra.mrb[4].mxu1 %v43_v9  ;;  %3971 = vmatpush1.bf16.msra.mxu0 %v5842_v10  ;;  %v6006_v9 = vpack.c.bf16 %v445_v61, %v441_v59  ;;  %v455_v21 = vld [vmem:[%s7314_s2 + $0x1f0] sm:$0xff]  ;;  %v6041_v25 = vpack.c.bf16 %v453_v17, %v449_v15  ;;  %v457_v28 = vld [vmem:[%s7316_s7] sm:$0xff]  ;;  %v125_v61 = vsub.s32 2, %v6093_v31 }
  0x2f   :  { %4003 = vmatpush1.bf16.msra.mxu1 %v5852_v13  ;;  %217 = vmatprep.mubr.f32.mxu0 %v5459_v3  ;;  %v6045_v27 = vpack.c.bf16 %v455_v21, %v451_v20  ;;  %v113_v34 = vld [vmem:[%s7317_s3] sm:$0xf] }
  0x30   :  { %330 = vmatprep.mubr.f32.mxu1 %v5459_v3  ;;  %3973 = vmatprep.subr.bf16.mxu0 %v5862_v16  ;;  %v6102_v37 = vrot.slane %v113_v34, %v117_v33  ;;  %v6113_v59 = vrot.slane %v113_v34, %v129_v43  ;;  %v6119_v1 = vrot.slane %v113_v34, %v125_v61  ;;  %v458_v21 = vld [vmem:[%s7318_s8] sm:$0xff] }
  0x31   :  { %218 = vmatmul.mubr.f32.gmra.mrb[6].mxu0 %v44_v22  ;;  %4005 = vmatprep.subr.bf16.mxu1 %v5871_v19 }
  0x32   :  { %331 = vmatmul.mubr.f32.gmra.mrb[6].mxu1 %v44_v22  ;;  %3975 = vmatpush1.bf16.msra.mxu0 %v5883_v23  ;;  %v6035_v22 = vpack.c.bf16 %v456_v12, %v452_v11 }
  0x33   :  { %4007 = vmatpush1.bf16.msra.mxu1 %v5893_v26  ;;  %223 = vmatprep.mubr.f32.mxu0 %v5459_v3 }
  0x34   :  { %336 = vmatprep.mubr.f32.mxu1 %v5459_v3  ;;  %3977 = vmatprep.subr.bf16.mxu0 %v5903_v29 }
  0x35   :  { %224 = vmatmul.mubr.f32.gmra.mrb[8].mxu0 %v45_v35  ;;  %4009 = vmatprep.subr.bf16.mxu1 %v5912_v32 }
  0x36   :  { %337 = vmatmul.mubr.f32.gmra.mrb[8].mxu1 %v45_v35  ;;  %3979 = vmatpush1.bf16.msra.mxu0 %v5924_v36  ;;  %v121_v35 = vsub.s32 1, %v6093_v31 }
  0x37   :  { %4011 = vmatpush1.bf16.msra.mxu1 %v5934_v40  ;;  %229 = vmatprep.mubr.f32.mxu0 %v5459_v3 }
  0x38   :  { %342 = vmatprep.mubr.f32.mxu1 %v5459_v3  ;;  %3981 = vmatprep.subr.bf16.mxu0 %v5944_v44  ;;  %v6106_v39 = vrot.slane %v113_v34, %v121_v35 }
  0x39   :  { %230 = vmatmul.mubr.f32.gmra.mrb[10].mxu0 %v46_v52  ;;  %4013 = vmatprep.subr.bf16.mxu1 %v5953_v48 }
  0x3a   :  { %343 = vmatmul.mubr.f32.gmra.mrb[10].mxu1 %v46_v52  ;;  %3983 = vmatpush1.bf16.msra.mxu0 %v5965_v54 }
  0x3b   :  { %4015 = vmatpush1.bf16.msra.mxu1 %v5975_v58  ;;  %235 = vmatprep.mubr.f32.mxu0 %v5459_v3 }
  0x3c   :  { %348 = vmatprep.mubr.f32.mxu1 %v5459_v3  ;;  %3985 = vmatprep.subr.bf16.mxu0 %v5985_v62 }
  0x3d   :  { %236 = vmatmul.mubr.f32.gmra.mrb[12].mxu0 %v47_v8  ;;  %4017 = vmatprep.subr.bf16.mxu1 %v5994_v4 }
  0x3e   :  { %349 = vmatmul.mubr.f32.gmra.mrb[12].mxu1 %v47_v8  ;;  %3987 = vmatpush1.bf16.msra.mxu0 %v6006_v9 }
  0x3f   :  { %4019 = vmatpush1.bf16.msra.mxu1 %v6016_v14  ;;  %241 = vmatprep.mubr.f32.mxu0 %v5459_v3 }
  0x40   :  { %354 = vmatprep.mubr.f32.mxu1 %v5459_v3  ;;  %3989 = vmatprep.subr.bf16.mxu0 %v6026_v18 }
  0x41   :  { %242 = vmatmul.mubr.f32.gmra.mrb[14].mxu0 %v48_v24  ;;  %4021 = vmatprep.subr.bf16.mxu1 %v6035_v22 }
  0x42   :  { %355 = vmatmul.mubr.f32.gmra.mrb[14].mxu1 %v48_v24  ;;  %3991 = vmatpush1.bf16.msra.mxu0 %v6041_v25 }
  0x43   :  { %4023 = vmatpush1.bf16.msra.mxu1 %v6045_v27  ;;  %527 = vmatprep.mubr.f32.mxu0 %v5459_v3 }
  0x44   :  { %598 = vmatprep.mubr.f32.mxu1 %v5459_v3  ;;  %4025 = vmatprep.subr.bf16.mxu0 %v5738_v38 }
  0x45   :  { %528 = vmatmul.mubr.f32.vlgmr.msra.gmra.mrb[0].mxu0 %v457_v28  ;;  %4057 = vmatprep.subr.bf16.mxu1 %v5746_v41 }
  0x46   :  { %599 = vmatmul.mubr.f32.vlgmr.msra.gmra.mrb[0].mxu1 %v457_v28  ;;  %4027 = vmatpush1.bf16.msra.mxu0 %v5763_v47 }
  0x47   :  { %4059 = vmatpush1.bf16.msra.mxu1 %v5772_v50  ;;  %4029 = vmatprep.subr.bf16.mxu0 %v5781_v53 }
  0x48   :  { %4061 = vmatprep.subr.bf16.mxu1 %v5789_v56  ;;  %702 = vmatprep.mubr.f32.mxu0 %v5459_v3 }
  0x49   :  { %773 = vmatprep.mubr.f32.mxu1 %v5459_v3 }
  0x4a   :  { %4031 = vmatpush1.bf16.msra.mxu0 %v5801_v60 }
  0x4b   :  { %4063 = vmatpush1.bf16.msra.mxu1 %v5811_v63  ;;  %4033 = vmatprep.subr.bf16.mxu0 %v5821_v2 }
  0x4c   :  { %4065 = vmatprep.subr.bf16.mxu1 %v5830_v6 }
  0x4e   :  { %4035 = vmatpush1.bf16.msra.mxu0 %v5842_v10 }
  0x4f   :  { %4067 = vmatpush1.bf16.msra.mxu1 %v5852_v13  ;;  %4037 = vmatprep.subr.bf16.mxu0 %v5862_v16 }
  0x50   :  { %4069 = vmatprep.subr.bf16.mxu1 %v5871_v19 }
  0x52   :  { %4039 = vmatpush1.bf16.msra.mxu0 %v5883_v23 }
  0x53   :  { %4071 = vmatpush1.bf16.msra.mxu1 %v5893_v26  ;;  %4041 = vmatprep.subr.bf16.mxu0 %v5903_v29 }
  0x54   :  { %4073 = vmatprep.subr.bf16.mxu1 %v5912_v32 }
  0x56   :  { %4043 = vmatpush1.bf16.msra.mxu0 %v5924_v36 }
  0x57   :  { %4075 = vmatpush1.bf16.msra.mxu1 %v5934_v40  ;;  %4045 = vmatprep.subr.bf16.mxu0 %v5944_v44 }
  0x58   :  { %4077 = vmatprep.subr.bf16.mxu1 %v5953_v48 }
  0x5a   :  { %4047 = vmatpush1.bf16.msra.mxu0 %v5965_v54 }
  0x5b   :  { %4079 = vmatpush1.bf16.msra.mxu1 %v5975_v58  ;;  %4049 = vmatprep.subr.bf16.mxu0 %v5985_v62 }
  0x5c   :  { %4081 = vmatprep.subr.bf16.mxu1 %v5994_v4 }
  0x5e   :  { %4051 = vmatpush1.bf16.msra.mxu0 %v6006_v9 }
  0x5f   :  { %4083 = vmatpush1.bf16.msra.mxu1 %v6016_v14  ;;  %4053 = vmatprep.subr.bf16.mxu0 %v6026_v18 }
  0x60   :  { %4085 = vmatprep.subr.bf16.mxu1 %v6035_v22 }
  0x62   :  { %4055 = vmatpush1.bf16.msra.mxu0 %v6041_v25 }
  0x63   :  { %4087 = vmatpush1.bf16.msra.mxu1 %v6045_v27  ;;  %4089 = vmatprep.subr.bf16.mxu0 %v5738_v38 }
  0x64   :  { %4121 = vmatprep.subr.bf16.mxu1 %v5746_v41 }
 0x118   :  { %v529_v42 = vpop.f32.mrb[0].mxu0 }
 0x119   :  { %v5072_v45 = vadd.f32 %v529_v42, %v6102_v37  ;;  %v600_v46 = vpop.f32.mrb[0].mxu1  ;;  %v531_v49 = vpop.f32.mrb[1].mxu0 }
 0x11a   :  { %v5073_v51 = vadd.f32 %v531_v49, %v6106_v39  ;;  %v602_v52 = vpop.f32.mrb[1].mxu1  ;;  %v5088_v7 = vadd.f32 %v600_v46, %v6119_v1 }
 0x11b   :  { %v3791_v55 = vmul.f32 -1.442695, %v5072_v45  ;;  %v5089_v0 = vadd.f32 %v602_v52, %v6113_v59 }
 0x11c   :  { %v3792_v57 = vmul.f32 -1.442695, %v5073_v51 }
 0x11d   :  { %5203 = vpow2.f32 %v3791_v55  ;;  %v3793_v5 = vmul.f32 -1.442695, %v5089_v0 }
 0x11e   :  { %5205 = vpow2.f32 %v3792_v57 }
 0x11f   :  { %5207 = vpow2.f32 %v3793_v5 }
 0x120   :  { %5209 = vtanh.f32 %v5088_v7 }
 0x127   :  { %v5204_v8 = vpop.eup %5203 }
 0x128   :  { %v5206_v11 = vpop.eup %5205  ;;  %v612_v12 = vadd.f32 1.0, %v5204_v8 }
 0x129   :  { %v618_v15 = vadd.f32 1.0, %v5206_v11  ;;  %v5208_v17 = vpop.eup %5207 }
 0x12a   :  { %5211 = vrcp.f32 %v612_v12  ;;  %v5210_v20 = vpop.eup %5209  ;;  %v625_v34 = vadd.f32 1.0, %v5208_v17 }
 0x12b   :  { %5213 = vrcp.f32 %v618_v15 }
 0x12c   :  { %5215 = vrcp.f32 %v625_v34 }
 0x134   :  { %v5212_v24 = vpop.eup %5211 }
 0x135   :  { %v5214_v28 = vpop.eup %5213  ;;  %v629_v30 = vmul.f32 %v5212_v24, %v5210_v20 }
 0x136   :  { %v628_v42 = vmul.f32 %v5214_v28, %v458_v21  ;;  %v5216_v46 = vpop.eup %5215 }
 0x138   :  { %v6125_v45 = vadd.f32 %v629_v30, %v628_v42 }
 0x13a   :  { %5217 = vtanh.f32 %v6125_v45 }
 0x144   :  { %v5218_v49 = vpop.eup %5217 }
 0x145   :  { %v6128_v51 = vmul.f32 %v5218_v49, %v5216_v46 }
 0x147   :  { %703 = vmatmul.mubr.f32.vlgmr.msra.gmra.mrb[2].mxu0 %v6128_v51  ;;  %774 = vmatmul.mubr.f32.vlgmr.msra.gmra.mrb[2].mxu1 %v6128_v51 }
 0x148   :  { %4091 = vmatpush1.bf16.msra.mxu0 %v5763_v47  ;;  %4123 = vmatpush1.bf16.msra.mxu1 %v5772_v50 }
 0x149   :  { %4093 = vmatprep.subr.bf16.mxu0 %v5781_v53  ;;  %4125 = vmatprep.subr.bf16.mxu1 %v5789_v56 }
 0x14a   :  { %877 = vmatprep.mubr.f32.mxu0 %v5459_v3  ;;  %948 = vmatprep.mubr.f32.mxu1 %v5459_v3 }
 0x14c   :  { %4095 = vmatpush1.bf16.msra.mxu0 %v5801_v60  ;;  %4127 = vmatpush1.bf16.msra.mxu1 %v5811_v63 }
 0x14d   :  { %4097 = vmatprep.subr.bf16.mxu0 %v5821_v2  ;;  %4129 = vmatprep.subr.bf16.mxu1 %v5830_v6 }
 0x150   :  { %4099 = vmatpush1.bf16.msra.mxu0 %v5842_v10  ;;  %4131 = vmatpush1.bf16.msra.mxu1 %v5852_v13 }
 0x151   :  { %4101 = vmatprep.subr.bf16.mxu0 %v5862_v16  ;;  %4133 = vmatprep.subr.bf16.mxu1 %v5871_v19 }
 0x154   :  { %4103 = vmatpush1.bf16.msra.mxu0 %v5883_v23  ;;  %4135 = vmatpush1.bf16.msra.mxu1 %v5893_v26 }
 0x155   :  { %4105 = vmatprep.subr.bf16.mxu0 %v5903_v29  ;;  %4137 = vmatprep.subr.bf16.mxu1 %v5912_v32 }
 0x158   :  { %4107 = vmatpush1.bf16.msra.mxu0 %v5924_v36  ;;  %4139 = vmatpush1.bf16.msra.mxu1 %v5934_v40 }
 0x159   :  { %4109 = vmatprep.subr.bf16.mxu0 %v5944_v44  ;;  %4141 = vmatprep.subr.bf16.mxu1 %v5953_v48 }
 0x15c   :  { %4111 = vmatpush1.bf16.msra.mxu0 %v5965_v54  ;;  %4143 = vmatpush1.bf16.msra.mxu1 %v5975_v58 }
 0x15d   :  { %4113 = vmatprep.subr.bf16.mxu0 %v5985_v62  ;;  %4145 = vmatprep.subr.bf16.mxu1 %v5994_v4 }
 0x160   :  { %4115 = vmatpush1.bf16.msra.mxu0 %v6006_v9  ;;  %4147 = vmatpush1.bf16.msra.mxu1 %v6016_v14 }
 0x161   :  { %4117 = vmatprep.subr.bf16.mxu0 %v6026_v18  ;;  %4149 = vmatprep.subr.bf16.mxu1 %v6035_v22 }
 0x164   :  { %4119 = vmatpush1.bf16.msra.mxu0 %v6041_v25  ;;  %4151 = vmatpush1.bf16.msra.mxu1 %v6045_v27 }
 0x165   :  { %4153 = vmatprep.subr.bf16.mxu0 %v5738_v38  ;;  %4185 = vmatprep.subr.bf16.mxu1 %v5746_v41 }
 0x21a   :  { %v704_v52 = vpop.f32.mrb[2].mxu0  ;;  %v775_v55 = vpop.f32.mrb[2].mxu1 }
 0x21b   :  { %v5074_v57 = vadd.f32 %v704_v52, %v6102_v37  ;;  %v706_v0 = vpop.f32.mrb[3].mxu0  ;;  %v777_v5 = vpop.f32.mrb[3].mxu1  ;;  %v5090_v17 = vadd.f32 %v775_v55, %v6119_v1 }
 0x21c   :  { %v5075_v7 = vadd.f32 %v706_v0, %v6106_v39  ;;  %v5091_v12 = vadd.f32 %v777_v5, %v6113_v59 }
 0x21d   :  { %v3794_v8 = vmul.f32 -1.442695, %v5074_v57 }
 0x21e   :  { %v3795_v11 = vmul.f32 -1.442695, %v5075_v7  ;;  %v3796_v15 = vmul.f32 -1.442695, %v5091_v12 }
 0x21f   :  { %5219 = vpow2.f32 %v3794_v8 }
 0x220   :  { %5221 = vpow2.f32 %v3795_v11 }
 0x221   :  { %5223 = vpow2.f32 %v3796_v15 }
 0x222   :  { %5225 = vtanh.f32 %v5090_v17 }
 0x229   :  { %v5220_v20 = vpop.eup %5219 }
 0x22a   :  { %v5222_v21 = vpop.eup %5221  ;;  %v787_v24 = vadd.f32 1.0, %v5220_v20 }
 0x22b   :  { %v793_v28 = vadd.f32 1.0, %v5222_v21  ;;  %v5224_v30 = vpop.eup %5223 }
 0x22c   :  { %5227 = vrcp.f32 %v787_v24  ;;  %v5226_v34 = vpop.eup %5225  ;;  %v800_v52 = vadd.f32 1.0, %v5224_v30 }
 0x22d   :  { %5229 = vrcp.f32 %v793_v28 }
 0x22e   :  { %5231 = vrcp.f32 %v800_v52 }
 0x236   :  { %v5228_v42 = vpop.eup %5227 }
 0x237   :  { %v5230_v46 = vpop.eup %5229  ;;  %v804_v49 = vmul.f32 %v5228_v42, %v5226_v34 }
 0x238   :  { %v803_v57 = vmul.f32 %v5230_v46, %v6125_v45  ;;  %v5232_v55 = vpop.eup %5231 }
 0x23a   :  { %v6171_v0 = vadd.f32 %v804_v49, %v803_v57 }
 0x23c   :  { %5233 = vtanh.f32 %v6171_v0 }
 0x246   :  { %v5234_v5 = vpop.eup %5233 }
 0x247   :  { %v6174_v7 = vmul.f32 %v5234_v5, %v5232_v55 }
 0x249   :  { %878 = vmatmul.mubr.f32.vlgmr.msra.gmra.mrb[4].mxu0 %v6174_v7  ;;  %949 = vmatmul.mubr.f32.vlgmr.msra.gmra.mrb[4].mxu1 %v6174_v7 }
 0x24a   :  { %4155 = vmatpush1.bf16.msra.mxu0 %v5763_v47  ;;  %4187 = vmatpush1.bf16.msra.mxu1 %v5772_v50 }
 0x24b   :  { %4157 = vmatprep.subr.bf16.mxu0 %v5781_v53  ;;  %4189 = vmatprep.subr.bf16.mxu1 %v5789_v56 }
 0x24c   :  { %1052 = vmatprep.mubr.f32.mxu0 %v5459_v3  ;;  %1123 = vmatprep.mubr.f32.mxu1 %v5459_v3 }
 0x24e   :  { %4159 = vmatpush1.bf16.msra.mxu0 %v5801_v60  ;;  %4191 = vmatpush1.bf16.msra.mxu1 %v5811_v63 }
 0x24f   :  { %4161 = vmatprep.subr.bf16.mxu0 %v5821_v2  ;;  %4193 = vmatprep.subr.bf16.mxu1 %v5830_v6 }
 0x252   :  { %4163 = vmatpush1.bf16.msra.mxu0 %v5842_v10  ;;  %4195 = vmatpush1.bf16.msra.mxu1 %v5852_v13 }
 0x253   :  { %4165 = vmatprep.subr.bf16.mxu0 %v5862_v16  ;;  %4197 = vmatprep.subr.bf16.mxu1 %v5871_v19 }
 0x256   :  { %4167 = vmatpush1.bf16.msra.mxu0 %v5883_v23  ;;  %4199 = vmatpush1.bf16.msra.mxu1 %v5893_v26 }
 0x257   :  { %4169 = vmatprep.subr.bf16.mxu0 %v5903_v29  ;;  %4201 = vmatprep.subr.bf16.mxu1 %v5912_v32 }
 0x25a   :  { %4171 = vmatpush1.bf16.msra.mxu0 %v5924_v36  ;;  %4203 = vmatpush1.bf16.msra.mxu1 %v5934_v40 }
 0x25b   :  { %4173 = vmatprep.subr.bf16.mxu0 %v5944_v44  ;;  %4205 = vmatprep.subr.bf16.mxu1 %v5953_v48 }
 0x25e   :  { %4175 = vmatpush1.bf16.msra.mxu0 %v5965_v54  ;;  %4207 = vmatpush1.bf16.msra.mxu1 %v5975_v58 }
 0x25f   :  { %4177 = vmatprep.subr.bf16.mxu0 %v5985_v62  ;;  %4209 = vmatprep.subr.bf16.mxu1 %v5994_v4 }
 0x262   :  { %4179 = vmatpush1.bf16.msra.mxu0 %v6006_v9  ;;  %4211 = vmatpush1.bf16.msra.mxu1 %v6016_v14 }
 0x263   :  { %4181 = vmatprep.subr.bf16.mxu0 %v6026_v18  ;;  %4213 = vmatprep.subr.bf16.mxu1 %v6035_v22 }
 0x266   :  { %4183 = vmatpush1.bf16.msra.mxu0 %v6041_v25  ;;  %4215 = vmatpush1.bf16.msra.mxu1 %v6045_v27 }
 0x267   :  { %4217 = vmatprep.subr.bf16.mxu0 %v5738_v38  ;;  %4249 = vmatprep.subr.bf16.mxu1 %v5746_v41 }
 0x31c   :  { %v879_v45 = vpop.f32.mrb[4].mxu0  ;;  %v950_v8 = vpop.f32.mrb[4].mxu1 }
 0x31d   :  { %v5076_v11 = vadd.f32 %v879_v45, %v6102_v37  ;;  %v881_v12 = vpop.f32.mrb[5].mxu0  ;;  %v952_v15 = vpop.f32.mrb[5].mxu1  ;;  %v5092_v30 = vadd.f32 %v950_v8, %v6119_v1 }
 0x31e   :  { %v5077_v17 = vadd.f32 %v881_v12, %v6106_v39  ;;  %v5093_v24 = vadd.f32 %v952_v15, %v6113_v59 }
 0x31f   :  { %v3797_v20 = vmul.f32 -1.442695, %v5076_v11 }
 0x320   :  { %v3798_v21 = vmul.f32 -1.442695, %v5077_v17  ;;  %v3799_v28 = vmul.f32 -1.442695, %v5093_v24 }
 0x321   :  { %5235 = vpow2.f32 %v3797_v20 }
 0x322   :  { %5237 = vpow2.f32 %v3798_v21 }
 0x323   :  { %5239 = vpow2.f32 %v3799_v28 }
 0x324   :  { %5241 = vtanh.f32 %v5092_v30 }
 0x32b   :  { %v5236_v34 = vpop.eup %5235 }
 0x32c   :  { %v5238_v42 = vpop.eup %5237  ;;  %v962_v46 = vadd.f32 1.0, %v5236_v34 }
 0x32d   :  { %v968_v49 = vadd.f32 1.0, %v5238_v42  ;;  %v5240_v52 = vpop.eup %5239 }
 0x32e   :  { %5243 = vrcp.f32 %v962_v46  ;;  %v5242_v57 = vpop.eup %5241  ;;  %v975_v11 = vadd.f32 1.0, %v5240_v52 }
 0x32f   :  { %5245 = vrcp.f32 %v968_v49 }
 0x330   :  { %5247 = vrcp.f32 %v975_v11 }
 0x338   :  { %v5244_v55 = vpop.eup %5243 }
 0x339   :  { %v5246_v5 = vpop.eup %5245  ;;  %v979_v45 = vmul.f32 %v5244_v55, %v5242_v57 }
 0x33a   :  { %v978_v12 = vmul.f32 %v5246_v5, %v6171_v0  ;;  %v5248_v8 = vpop.eup %5247 }
 0x33c   :  { %v6217_v15 = vadd.f32 %v979_v45, %v978_v12 }
 0x33e   :  { %5249 = vtanh.f32 %v6217_v15 }
 0x348   :  { %v5250_v17 = vpop.eup %5249 }
 0x349   :  { %v6220_v20 = vmul.f32 %v5250_v17, %v5248_v8 }
 0x34b   :  { %1053 = vmatmul.mubr.f32.vlgmr.msra.gmra.mrb[6].mxu0 %v6220_v20  ;;  %1124 = vmatmul.mubr.f32.vlgmr.msra.gmra.mrb[6].mxu1 %v6220_v20 }
 0x34c   :  { %4219 = vmatpush1.bf16.msra.mxu0 %v5763_v47  ;;  %4251 = vmatpush1.bf16.msra.mxu1 %v5772_v50 }
 0x34d   :  { %4221 = vmatprep.subr.bf16.mxu0 %v5781_v53  ;;  %4253 = vmatprep.subr.bf16.mxu1 %v5789_v56 }
 0x34e   :  { %1227 = vmatprep.mubr.f32.mxu0 %v5459_v3  ;;  %1298 = vmatprep.mubr.f32.mxu1 %v5459_v3 }
 0x350   :  { %4223 = vmatpush1.bf16.msra.mxu0 %v5801_v60  ;;  %4255 = vmatpush1.bf16.msra.mxu1 %v5811_v63 }
 0x351   :  { %4225 = vmatprep.subr.bf16.mxu0 %v5821_v2  ;;  %4257 = vmatprep.subr.bf16.mxu1 %v5830_v6 }
 0x354   :  { %4227 = vmatpush1.bf16.msra.mxu0 %v5842_v10  ;;  %4259 = vmatpush1.bf16.msra.mxu1 %v5852_v13 }
 0x355   :  { %4229 = vmatprep.subr.bf16.mxu0 %v5862_v16  ;;  %4261 = vmatprep.subr.bf16.mxu1 %v5871_v19 }
 0x358   :  { %4231 = vmatpush1.bf16.msra.mxu0 %v5883_v23  ;;  %4263 = vmatpush1.bf16.msra.mxu1 %v5893_v26 }
 0x359   :  { %4233 = vmatprep.subr.bf16.mxu0 %v5903_v29  ;;  %4265 = vmatprep.subr.bf16.mxu1 %v5912_v32 }
 0x35c   :  { %4235 = vmatpush1.bf16.msra.mxu0 %v5924_v36  ;;  %4267 = vmatpush1.bf16.msra.mxu1 %v5934_v40 }
 0x35d   :  { %4237 = vmatprep.subr.bf16.mxu0 %v5944_v44  ;;  %4269 = vmatprep.subr.bf16.mxu1 %v5953_v48 }
 0x360   :  { %4239 = vmatpush1.bf16.msra.mxu0 %v5965_v54  ;;  %4271 = vmatpush1.bf16.msra.mxu1 %v5975_v58 }
 0x361   :  { %4241 = vmatprep.subr.bf16.mxu0 %v5985_v62  ;;  %4273 = vmatprep.subr.bf16.mxu1 %v5994_v4 }
 0x364   :  { %4243 = vmatpush1.bf16.msra.mxu0 %v6006_v9  ;;  %4275 = vmatpush1.bf16.msra.mxu1 %v6016_v14 }
 0x365   :  { %4245 = vmatprep.subr.bf16.mxu0 %v6026_v18  ;;  %4277 = vmatprep.subr.bf16.mxu1 %v6035_v22 }
 0x368   :  { %4247 = vmatpush1.bf16.msra.mxu0 %v6041_v25  ;;  %4279 = vmatpush1.bf16.msra.mxu1 %v6045_v27 }
 0x369   :  { %4281 = vmatprep.subr.bf16.mxu0 %v5738_v38  ;;  %4313 = vmatprep.subr.bf16.mxu1 %v5746_v41 }
 0x41e   :  { %v1054_v0 = vpop.f32.mrb[6].mxu0  ;;  %v1125_v21 = vpop.f32.mrb[6].mxu1 }
 0x41f   :  { %v5078_v24 = vadd.f32 %v1054_v0, %v6102_v37  ;;  %v1056_v28 = vpop.f32.mrb[7].mxu0  ;;  %v1127_v30 = vpop.f32.mrb[7].mxu1  ;;  %v5094_v57 = vadd.f32 %v1125_v21, %v6119_v1 }
 0x420   :  { %v5079_v34 = vadd.f32 %v1056_v28, %v6106_v39  ;;  %v5095_v49 = vadd.f32 %v1127_v30, %v6113_v59 }
 0x421   :  { %v3800_v42 = vmul.f32 -1.442695, %v5078_v24 }
 0x422   :  { %v3801_v46 = vmul.f32 -1.442695, %v5079_v34  ;;  %v3802_v52 = vmul.f32 -1.442695, %v5095_v49 }
 0x423   :  { %5251 = vpow2.f32 %v3800_v42 }
 0x424   :  { %5253 = vpow2.f32 %v3801_v46 }
 0x425   :  { %5255 = vpow2.f32 %v3802_v52 }
 0x426   :  { %5257 = vtanh.f32 %v5094_v57 }
 0x42d   :  { %v5252_v55 = vpop.eup %5251 }
 0x42e   :  { %v5254_v5 = vpop.eup %5253  ;;  %v1137_v45 = vadd.f32 1.0, %v5252_v55 }
 0x42f   :  { %v1143_v11 = vadd.f32 1.0, %v5254_v5  ;;  %v5256_v12 = vpop.eup %5255 }
 0x430   :  { %5259 = vrcp.f32 %v1137_v45  ;;  %v5258_v8 = vpop.eup %5257  ;;  %v1150_v28 = vadd.f32 1.0, %v5256_v12 }
 0x431   :  { %5261 = vrcp.f32 %v1143_v11 }
 0x432   :  { %5263 = vrcp.f32 %v1150_v28 }
 0x43a   :  { %v5260_v17 = vpop.eup %5259 }
 0x43b   :  { %v5262_v0 = vpop.eup %5261  ;;  %v1154_v24 = vmul.f32 %v5260_v17, %v5258_v8 }
 0x43c   :  { %v1153_v34 = vmul.f32 %v5262_v0, %v6217_v15  ;;  %v5264_v21 = vpop.eup %5263 }
 0x43e   :  { %v6263_v30 = vadd.f32 %v1154_v24, %v1153_v34 }
 0x440   :  { %5265 = vtanh.f32 %v6263_v30 }
 0x44a   :  { %v5266_v42 = vpop.eup %5265 }
 0x44b   :  { %v6266_v46 = vmul.f32 %v5266_v42, %v5264_v21 }
 0x44d   :  { %1228 = vmatmul.mubr.f32.vlgmr.msra.gmra.mrb[8].mxu0 %v6266_v46  ;;  %1299 = vmatmul.mubr.f32.vlgmr.msra.gmra.mrb[8].mxu1 %v6266_v46 }
 0x44e   :  { %4283 = vmatpush1.bf16.msra.mxu0 %v5763_v47  ;;  %4315 = vmatpush1.bf16.msra.mxu1 %v5772_v50 }
 0x44f   :  { %4285 = vmatprep.subr.bf16.mxu0 %v5781_v53  ;;  %4317 = vmatprep.subr.bf16.mxu1 %v5789_v56 }
 0x450   :  { %1402 = vmatprep.mubr.f32.mxu0 %v5459_v3  ;;  %1473 = vmatprep.mubr.f32.mxu1 %v5459_v3 }
 0x452   :  { %4287 = vmatpush1.bf16.msra.mxu0 %v5801_v60  ;;  %4319 = vmatpush1.bf16.msra.mxu1 %v5811_v63 }
 0x453   :  { %4289 = vmatprep.subr.bf16.mxu0 %v5821_v2  ;;  %4321 = vmatprep.subr.bf16.mxu1 %v5830_v6 }
 0x456   :  { %4291 = vmatpush1.bf16.msra.mxu0 %v5842_v10  ;;  %4323 = vmatpush1.bf16.msra.mxu1 %v5852_v13 }
 0x457   :  { %4293 = vmatprep.subr.bf16.mxu0 %v5862_v16  ;;  %4325 = vmatprep.subr.bf16.mxu1 %v5871_v19 }
 0x45a   :  { %4295 = vmatpush1.bf16.msra.mxu0 %v5883_v23  ;;  %4327 = vmatpush1.bf16.msra.mxu1 %v5893_v26 }
 0x45b   :  { %4297 = vmatprep.subr.bf16.mxu0 %v5903_v29  ;;  %4329 = vmatprep.subr.bf16.mxu1 %v5912_v32 }
 0x45e   :  { %4299 = vmatpush1.bf16.msra.mxu0 %v5924_v36  ;;  %4331 = vmatpush1.bf16.msra.mxu1 %v5934_v40 }
 0x45f   :  { %4301 = vmatprep.subr.bf16.mxu0 %v5944_v44  ;;  %4333 = vmatprep.subr.bf16.mxu1 %v5953_v48 }
 0x462   :  { %4303 = vmatpush1.bf16.msra.mxu0 %v5965_v54  ;;  %4335 = vmatpush1.bf16.msra.mxu1 %v5975_v58 }
 0x463   :  { %4305 = vmatprep.subr.bf16.mxu0 %v5985_v62  ;;  %4337 = vmatprep.subr.bf16.mxu1 %v5994_v4 }
 0x466   :  { %4307 = vmatpush1.bf16.msra.mxu0 %v6006_v9  ;;  %4339 = vmatpush1.bf16.msra.mxu1 %v6016_v14 }
 0x467   :  { %4309 = vmatprep.subr.bf16.mxu0 %v6026_v18  ;;  %4341 = vmatprep.subr.bf16.mxu1 %v6035_v22 }
 0x46a   :  { %4311 = vmatpush1.bf16.msra.mxu0 %v6041_v25  ;;  %4343 = vmatpush1.bf16.msra.mxu1 %v6045_v27 }
 0x46b   :  { %4345 = vmatprep.subr.bf16.mxu0 %v5738_v38  ;;  %4377 = vmatprep.subr.bf16.mxu1 %v5746_v41 }
 0x520   :  { %v1229_v15 = vpop.f32.mrb[8].mxu0  ;;  %v1300_v49 = vpop.f32.mrb[8].mxu1 }
 0x521   :  { %v5080_v52 = vadd.f32 %v1229_v15, %v6102_v37  ;;  %v1231_v57 = vpop.f32.mrb[9].mxu0  ;;  %v1302_v55 = vpop.f32.mrb[9].mxu1  ;;  %v5096_v17 = vadd.f32 %v1300_v49, %v6119_v1 }
 0x522   :  { %v5081_v5 = vadd.f32 %v1231_v57, %v6106_v39  ;;  %v5097_v12 = vadd.f32 %v1302_v55, %v6113_v59 }
 0x523   :  { %v3803_v45 = vmul.f32 -1.442695, %v5080_v52 }
 0x524   :  { %v3804_v11 = vmul.f32 -1.442695, %v5081_v5  ;;  %v3805_v8 = vmul.f32 -1.442695, %v5097_v12 }
 0x525   :  { %5267 = vpow2.f32 %v3803_v45 }
 0x526   :  { %5269 = vpow2.f32 %v3804_v11 }
 0x527   :  { %5271 = vpow2.f32 %v3805_v8 }
 0x528   :  { %5273 = vtanh.f32 %v5096_v17 }
 0x52f   :  { %v5268_v0 = vpop.eup %5267 }
 0x530   :  { %v5270_v24 = vpop.eup %5269  ;;  %v1312_v28 = vadd.f32 1.0, %v5268_v0 }
 0x531   :  { %v1318_v34 = vadd.f32 1.0, %v5270_v24  ;;  %v5272_v21 = vpop.eup %5271 }
 0x532   :  { %5275 = vrcp.f32 %v1312_v28  ;;  %v5274_v42 = vpop.eup %5273  ;;  %v1325_v5 = vadd.f32 1.0, %v5272_v21 }
 0x533   :  { %5277 = vrcp.f32 %v1318_v34 }
 0x534   :  { %5279 = vrcp.f32 %v1325_v5 }
 0x53c   :  { %v5276_v15 = vpop.eup %5275 }
 0x53d   :  { %v5278_v52 = vpop.eup %5277  ;;  %v1329_v57 = vmul.f32 %v5276_v15, %v5274_v42 }
 0x53e   :  { %v1328_v45 = vmul.f32 %v5278_v52, %v6263_v30  ;;  %v5280_v49 = vpop.eup %5279 }
 0x540   :  { %v6309_v55 = vadd.f32 %v1329_v57, %v1328_v45 }
 0x542   :  { %5281 = vtanh.f32 %v6309_v55 }
 0x54c   :  { %v5282_v11 = vpop.eup %5281 }
 0x54d   :  { %v6312_v12 = vmul.f32 %v5282_v11, %v5280_v49 }
 0x54f   :  { %1403 = vmatmul.mubr.f32.vlgmr.msra.gmra.mrb[10].mxu0 %v6312_v12  ;;  %1474 = vmatmul.mubr.f32.vlgmr.msra.gmra.mrb[10].mxu1 %v6312_v12 }
 0x550   :  { %4347 = vmatpush1.bf16.msra.mxu0 %v5763_v47  ;;  %4379 = vmatpush1.bf16.msra.mxu1 %v5772_v50 }
 0x551   :  { %4349 = vmatprep.subr.bf16.mxu0 %v5781_v53  ;;  %4381 = vmatprep.subr.bf16.mxu1 %v5789_v56 }
 0x552   :  { %1577 = vmatprep.mubr.f32.mxu0 %v5459_v3  ;;  %1648 = vmatprep.mubr.f32.mxu1 %v5459_v3 }
 0x554   :  { %4351 = vmatpush1.bf16.msra.mxu0 %v5801_v60  ;;  %4383 = vmatpush1.bf16.msra.mxu1 %v5811_v63 }
 0x555   :  { %4353 = vmatprep.subr.bf16.mxu0 %v5821_v2  ;;  %4385 = vmatprep.subr.bf16.mxu1 %v5830_v6 }
 0x558   :  { %4355 = vmatpush1.bf16.msra.mxu0 %v5842_v10  ;;  %4387 = vmatpush1.bf16.msra.mxu1 %v5852_v13 }
 0x559   :  { %4357 = vmatprep.subr.bf16.mxu0 %v5862_v16  ;;  %4389 = vmatprep.subr.bf16.mxu1 %v5871_v19 }
 0x55c   :  { %4359 = vmatpush1.bf16.msra.mxu0 %v5883_v23  ;;  %4391 = vmatpush1.bf16.msra.mxu1 %v5893_v26 }
 0x55d   :  { %4361 = vmatprep.subr.bf16.mxu0 %v5903_v29  ;;  %4393 = vmatprep.subr.bf16.mxu1 %v5912_v32 }
 0x560   :  { %4363 = vmatpush1.bf16.msra.mxu0 %v5924_v36  ;;  %4395 = vmatpush1.bf16.msra.mxu1 %v5934_v40 }
 0x561   :  { %4365 = vmatprep.subr.bf16.mxu0 %v5944_v44  ;;  %4397 = vmatprep.subr.bf16.mxu1 %v5953_v48 }
 0x564   :  { %4367 = vmatpush1.bf16.msra.mxu0 %v5965_v54  ;;  %4399 = vmatpush1.bf16.msra.mxu1 %v5975_v58 }
 0x565   :  { %4369 = vmatprep.subr.bf16.mxu0 %v5985_v62  ;;  %4401 = vmatprep.subr.bf16.mxu1 %v5994_v4 }
 0x568   :  { %4371 = vmatpush1.bf16.msra.mxu0 %v6006_v9  ;;  %4403 = vmatpush1.bf16.msra.mxu1 %v6016_v14 }
 0x569   :  { %4373 = vmatprep.subr.bf16.mxu0 %v6026_v18  ;;  %4405 = vmatprep.subr.bf16.mxu1 %v6035_v22 }
 0x56c   :  { %4375 = vmatpush1.bf16.msra.mxu0 %v6041_v25  ;;  %4407 = vmatpush1.bf16.msra.mxu1 %v6045_v27 }
 0x56d   :  { %4409 = vmatprep.subr.bf16.mxu0 %v5738_v38  ;;  %4441 = vmatprep.subr.bf16.mxu1 %v5746_v41 }
 0x622   :  { %v1404_v30 = vpop.f32.mrb[10].mxu0  ;;  %v1475_v8 = vpop.f32.mrb[10].mxu1 }
 0x623   :  { %v5082_v17 = vadd.f32 %v1404_v30, %v6102_v37  ;;  %v1406_v0 = vpop.f32.mrb[11].mxu0  ;;  %v1477_v24 = vpop.f32.mrb[11].mxu1  ;;  %v5098_v52 = vadd.f32 %v1475_v8, %v6119_v1 }
 0x624   :  { %v5083_v28 = vadd.f32 %v1406_v0, %v6106_v39  ;;  %v5099_v42 = vadd.f32 %v1477_v24, %v6113_v59 }
 0x625   :  { %v3806_v34 = vmul.f32 -1.442695, %v5082_v17 }
 0x626   :  { %v3807_v21 = vmul.f32 -1.442695, %v5083_v28  ;;  %v3808_v15 = vmul.f32 -1.442695, %v5099_v42  ;;  %v1871_v42 = vld [vmem:[%s7319_s4 + $0x10] sm:$0xff] }
 0x627   :  { %5283 = vpow2.f32 %v3806_v34 }
 0x628   :  { %5285 = vpow2.f32 %v3807_v21 }
 0x629   :  { %5287 = vpow2.f32 %v3808_v15  ;;  %v1875_v15 = vld [vmem:[%s7319_s4 + $0x30] sm:$0xff] }
 0x62a   :  { %5289 = vtanh.f32 %v5098_v52  ;;  %v1878_v52 = vld [vmem:[%s7319_s4 + $0x48] sm:$0xff] }
 0x631   :  { %v5284_v38 = vpop.eup %5283 }
 0x632   :  { %v5286_v57 = vpop.eup %5285  ;;  %v1487_v41 = vadd.f32 1.0, %v5284_v38  ;;  %v1882_v38 = vld [vmem:[%s7319_s4 + $0x68] sm:$0xff] }
 0x633   :  { %v1493_v5 = vadd.f32 1.0, %v5286_v57  ;;  %v5288_v45 = vpop.eup %5287  ;;  %v1880_v57 = vld [vmem:[%s7319_s4 + $0x58] sm:$0xff] }
 0x634   :  { %5291 = vrcp.f32 %v1487_v41  ;;  %v5290_v49 = vpop.eup %5289  ;;  %v1500_v0 = vadd.f32 1.0, %v5288_v45  ;;  %v1884_v41 = vld [vmem:[%s7319_s4 + $0x78] sm:$0xff] }
 0x635   :  { %5293 = vrcp.f32 %v1493_v5 }
 0x636   :  { %5295 = vrcp.f32 %v1500_v0 }
 0x63e   :  { %v5292_v11 = vpop.eup %5291 }
 0x63f   :  { %v5294_v30 = vpop.eup %5293  ;;  %v1504_v17 = vmul.f32 %v5292_v11, %v5290_v49  ;;  %v4506_v11 = vpack.c.bf16 %v1875_v15, %v1871_v42  ;;  %v1901_v42 = vld [vmem:[%s7319_s4 + $0x100] sm:$0xff] }
 0x640   :  { %v1503_v28 = vmul.f32 %v5294_v30, %v6309_v55  ;;  %v5296_v8 = vpop.eup %5295  ;;  %v1873_v55 = vld [vmem:[%s7319_s4 + $0x20] sm:$0xff] }
 0x641   :  { %v1877_v30 = vld [vmem:[%s7319_s4 + $0x40] sm:$0xff] }
 0x642   :  { %v6355_v24 = vadd.f32 %v1504_v17, %v1503_v28  ;;  %v1881_v17 = vld [vmem:[%s7319_s4 + $0x60] sm:$0xff]  ;;  %v4476_v28 = vpack.c.bf16 %v1882_v38, %v1878_v52 }
 0x643   :  { %v1905_v15 = vld [vmem:[%s7319_s4 + $0x120] sm:$0xff] }
 0x644   :  { %5297 = vtanh.f32 %v6355_v24 }
 0x64e   :  { %v5298_v34 = vpop.eup %5297 }
 0x64f   :  { %v6358_v21 = vmul.f32 %v5298_v34, %v5296_v8  ;;  %v1879_v8 = vld [vmem:[%s7319_s4 + $0x50] sm:$0xff] }
 0x650   :  { %v1883_v34 = vld [vmem:[%s7319_s4 + $0x70] sm:$0xff] }
 0x651   :  { %1578 = vmatmul.mubr.f32.vlgmr.msra.gmra.mrb[12].mxu0 %v6358_v21  ;;  %1649 = vmatmul.mubr.f32.vlgmr.msra.gmra.mrb[12].mxu1 %v6358_v21 }
 0x652   :  { %4411 = vmatpush1.bf16.msra.mxu0 %v5763_v47  ;;  %4443 = vmatpush1.bf16.msra.mxu1 %v5772_v50  ;;  %v1870_v47 = vld [vmem:[%s7319_s4 + $0x8] sm:$0xff] }
 0x653   :  { %4413 = vmatprep.subr.bf16.mxu0 %v5781_v53  ;;  %4445 = vmatprep.subr.bf16.mxu1 %v5789_v56  ;;  %v1874_v50 = vld [vmem:[%s7319_s4 + $0x28] sm:$0xff]  ;;  %v1872_v53 = vld [vmem:[%s7319_s4 + $0x18] sm:$0xff] }
 0x654   :  { %1752 = vmatprep.mubr.f32.mxu0 %v5459_v3  ;;  %1823 = vmatprep.mubr.f32.mxu1 %v5459_v3  ;;  %v4472_v56 = vpack.c.bf16 %v1874_v50, %v1870_v47  ;;  %v1886_v47 = vld [vmem:[%s7319_s4 + $0x88] sm:$0xff] }
 0x655   :  { %v1890_v50 = vld [vmem:[%s7319_s4 + $0xa8] sm:$0xff] }
 0x656   :  { %4415 = vmatpush1.bf16.msra.mxu0 %v5801_v60  ;;  %4447 = vmatpush1.bf16.msra.mxu1 %v5811_v63  ;;  %v1876_v60 = vld [vmem:[%s7319_s4 + $0x38] sm:$0xff] }
 0x657   :  { %4417 = vmatprep.subr.bf16.mxu0 %v5821_v2  ;;  %4449 = vmatprep.subr.bf16.mxu1 %v5830_v6  ;;  %v4504_v63 = vpack.c.bf16 %v1876_v60, %v1872_v53  ;;  %v1888_v53 = vld [vmem:[%s7319_s4 + $0x98] sm:$0xff]  ;;  %v4478_v60 = vpack.c.bf16 %v1881_v17, %v1877_v30  ;;  %v4490_v30 = vpack.c.bf16 %v1905_v15, %v1901_v42  ;;  %v2215_v42 = vld [vmem:[%s7320_s5 + $0x10] sm:$0xff] }
 0x658   :  { %v2219_v15 = vld [vmem:[%s7320_s5 + $0x30] sm:$0xff] }
 0x65a   :  { %4419 = vmatpush1.bf16.msra.mxu0 %v5842_v10  ;;  %4451 = vmatpush1.bf16.msra.mxu1 %v5852_v13 }
 0x65b   :  { %4421 = vmatprep.subr.bf16.mxu0 %v5862_v16  ;;  %4453 = vmatprep.subr.bf16.mxu1 %v5871_v19 }
 0x65e   :  { %4423 = vmatpush1.bf16.msra.mxu0 %v5883_v23  ;;  %4455 = vmatpush1.bf16.msra.mxu1 %v5893_v26 }
 0x65f   :  { %4425 = vmatprep.subr.bf16.mxu0 %v5903_v29  ;;  %4457 = vmatprep.subr.bf16.mxu1 %v5912_v32 }
 0x662   :  { %4427 = vmatpush1.bf16.msra.mxu0 %v5924_v36  ;;  %4459 = vmatpush1.bf16.msra.mxu1 %v5934_v40 }
 0x663   :  { %4429 = vmatprep.subr.bf16.mxu0 %v5944_v44  ;;  %4461 = vmatprep.subr.bf16.mxu1 %v5953_v48 }
 0x666   :  { %4431 = vmatpush1.bf16.msra.mxu0 %v5965_v54  ;;  %4463 = vmatpush1.bf16.msra.mxu1 %v5975_v58 }
 0x667   :  { %4433 = vmatprep.subr.bf16.mxu0 %v5985_v62  ;;  %4465 = vmatprep.subr.bf16.mxu1 %v5994_v4 }
 0x66a   :  { %4435 = vmatpush1.bf16.msra.mxu0 %v6006_v9  ;;  %4467 = vmatpush1.bf16.msra.mxu1 %v6016_v14 }
 0x66b   :  { %4437 = vmatprep.subr.bf16.mxu0 %v6026_v18  ;;  %4469 = vmatprep.subr.bf16.mxu1 %v6035_v22 }
 0x66e   :  { %4439 = vmatpush1.bf16.msra.mxu0 %v6041_v25  ;;  %4471 = vmatpush1.bf16.msra.mxu1 %v6045_v27  ;;  %v1869_v27 = vld [vmem:[%s7319_s4] sm:$0xff] }
 0x66f   :  { %4473 = vmatprep.subr.bf16.mxu0 %v4472_v56  ;;  %4505 = vmatprep.subr.bf16.mxu1 %v4504_v63  ;;  %v4474_v49 = vpack.c.bf16 %v1873_v55, %v1869_v27  ;;  %v1892_v56 = vld [vmem:[%s7319_s4 + $0xb8] sm:$0xff]  ;;  %v4510_v63 = vpack.c.bf16 %v1883_v34, %v1879_v8 }
 0x724   :  { %v1579_v2 = vpop.f32.mrb[12].mxu0  ;;  %v1650_v6 = vpop.f32.mrb[12].mxu1 }
 0x725   :  { %v5084_v10 = vadd.f32 %v1579_v2, %v6102_v37  ;;  %v1581_v13 = vpop.f32.mrb[13].mxu0  ;;  %v1652_v16 = vpop.f32.mrb[13].mxu1  ;;  %v5100_v36 = vadd.f32 %v1650_v6, %v6119_v1  ;;  %v1885_v2 = vld [vmem:[%s7319_s4 + $0x80] sm:$0xff] }
 0x726   :  { %v5085_v19 = vadd.f32 %v1581_v13, %v6106_v39  ;;  %v5101_v29 = vadd.f32 %v1652_v16, %v6113_v59  ;;  %v1889_v6 = vld [vmem:[%s7319_s4 + $0xa0] sm:$0xff]  ;;  %v4512_v13 = vpack.c.bf16 %v1892_v56, %v1888_v53  ;;  %v1887_v16 = vld [vmem:[%s7319_s4 + $0x90] sm:$0xff]  ;;  %v1918_v53 = vld [vmem:[%s7319_s4 + $0x188] sm:$0xff] }
 0x727   :  { %v3809_v23 = vmul.f32 -1.442695, %v5084_v10  ;;  %v4480_v10 = vpack.c.bf16 %v1890_v50, %v1886_v47  ;;  %v1911_v47 = vld [vmem:[%s7319_s4 + $0x150] sm:$0xff]  ;;  %v1922_v56 = vld [vmem:[%s7319_s4 + $0x1a8] sm:$0xff] }
 0x728   :  { %v3810_v26 = vmul.f32 -1.442695, %v5085_v19  ;;  %v3811_v32 = vmul.f32 -1.442695, %v5101_v29  ;;  %v1891_v19 = vld [vmem:[%s7319_s4 + $0xb0] sm:$0xff]  ;;  %v1896_v29 = vld [vmem:[%s7319_s4 + $0xd8] sm:$0xff] }
 0x729   :  { %5299 = vpow2.f32 %v3809_v23  ;;  %v1894_v23 = vld [vmem:[%s7319_s4 + $0xc8] sm:$0xff]  ;;  %v1915_v50 = vld [vmem:[%s7319_s4 + $0x170] sm:$0xff] }
 0x72a   :  { %5301 = vpow2.f32 %v3810_v26  ;;  %v1898_v26 = vld [vmem:[%s7319_s4 + $0xe8] sm:$0xff] }
 0x72b   :  { %5303 = vpow2.f32 %v3811_v32  ;;  %v1900_v32 = vld [vmem:[%s7319_s4 + $0xf8] sm:$0xff] }
 0x72c   :  { %5305 = vtanh.f32 %v5100_v36  ;;  %v4482_v36 = vpack.c.bf16 %v1889_v6, %v1885_v2  ;;  %v4526_v6 = vpack.c.bf16 %v1915_v50, %v1911_v47  ;;  %v2234_v47 = vld [vmem:[%s7320_s5 + $0xa8] sm:$0xff]  ;;  %v2232_v50 = vld [vmem:[%s7320_s5 + $0x98] sm:$0xff] }
 0x733   :  { %v5300_v40 = vpop.eup %5299 }
 0x734   :  { %v5302_v44 = vpop.eup %5301  ;;  %v1662_v48 = vadd.f32 1.0, %v5300_v40  ;;  %v4514_v40 = vpack.c.bf16 %v1891_v19, %v1887_v16  ;;  %v4496_v16 = vpack.c.bf16 %v1922_v56, %v1918_v53  ;;  %v2236_v56 = vld [vmem:[%s7320_s5 + $0xb8] sm:$0xff] }
 0x735   :  { %v1668_v54 = vadd.f32 1.0, %v5302_v44  ;;  %v5304_v58 = vpop.eup %5303  ;;  %v1893_v44 = vld [vmem:[%s7319_s4 + $0xc0] sm:$0xff] }
 0x736   :  { %5307 = vrcp.f32 %v1662_v48  ;;  %v5306_v62 = vpop.eup %5305  ;;  %v1675_v18 = vadd.f32 1.0, %v5304_v58  ;;  %v1897_v48 = vld [vmem:[%s7319_s4 + $0xe0] sm:$0xff]  ;;  %v4516_v58 = vpack.c.bf16 %v1900_v32, %v1896_v29  ;;  %v1926_v29 = vld [vmem:[%s7319_s4 + $0x1c8] sm:$0xff] }
 0x737   :  { %5309 = vrcp.f32 %v1668_v54  ;;  %v4484_v54 = vpack.c.bf16 %v1898_v26, %v1894_v23  ;;  %v4486_v27 = vpack.c.bf16 %v1897_v48, %v1893_v44  ;;  %v1919_v23 = vld [vmem:[%s7319_s4 + $0x190] sm:$0xff]  ;;  %v1930_v32 = vld [vmem:[%s7319_s4 + $0x1e8] sm:$0xff] }
 0x738   :  { %5311 = vrcp.f32 %v1675_v18  ;;  %v1904_v18 = vld [vmem:[%s7319_s4 + $0x118] sm:$0xff]  ;;  %v1923_v26 = vld [vmem:[%s7319_s4 + $0x1b0] sm:$0xff] }
 0x739   :  { %v4530_v48 = vpack.c.bf16 %v1923_v26, %v1919_v23  ;;  %v2242_v23 = vld [vmem:[%s7320_s5 + $0xe8] sm:$0xff]  ;;  %v2240_v26 = vld [vmem:[%s7320_s5 + $0xd8] sm:$0xff] }
 0x740   :  { %v5308_v4 = vpop.eup %5307 }
 0x741   :  { %v5310_v9 = vpop.eup %5309  ;;  %v1679_v14 = vmul.f32 %v5308_v4, %v5306_v62  ;;  %v1895_v62 = vld [vmem:[%s7319_s4 + $0xd0] sm:$0xff] }
 0x742   :  { %v1678_v22 = vmul.f32 %v5310_v9, %v6355_v24  ;;  %v5312_v5 = vpop.eup %5311  ;;  %v4508_v24 = vpack.c.bf16 %v1884_v41, %v1880_v57  ;;  %v1899_v4 = vld [vmem:[%s7319_s4 + $0xf0] sm:$0xff]  ;;  %v1902_v9 = vld [vmem:[%s7319_s4 + $0x108] sm:$0xff] }
 0x743   :  { %v4518_v55 = vpack.c.bf16 %v1899_v4, %v1895_v62  ;;  %v1903_v57 = vld [vmem:[%s7319_s4 + $0x110] sm:$0xff]  ;;  %v1929_v4 = vld [vmem:[%s7319_s4 + $0x1e0] sm:$0xff] }
 0x744   :  { %v6411_v25 = vadd.f32 %v1679_v14, %v1678_v22  ;;  %v1906_v14 = vld [vmem:[%s7319_s4 + $0x128] sm:$0xff]  ;;  %v1908_v22 = vld [vmem:[%s7319_s4 + $0x138] sm:$0xff]  ;;  %v1907_v41 = vld [vmem:[%s7319_s4 + $0x130] sm:$0xff] }
 0x745   :  { %v4488_v52 = vpack.c.bf16 %v1906_v14, %v1902_v9  ;;  %v4520_v38 = vpack.c.bf16 %v1908_v22, %v1904_v18  ;;  %v4522_v17 = vpack.c.bf16 %v1907_v41, %v1903_v57  ;;  %v1927_v9 = vld [vmem:[%s7319_s4 + $0x1d0] sm:$0xff]  ;;  %v2226_v57 = vld [vmem:[%s7320_s5 + $0x68] sm:$0xff]  ;;  %v2224_v41 = vld [vmem:[%s7320_s5 + $0x58] sm:$0xff] }
 0x746   :  { %5313 = vtanh.f32 %v6411_v25  ;;  %v1931_v14 = vld [vmem:[%s7319_s4 + $0x1f0] sm:$0xff] }
 0x747   :  { %v4534_v22 = vpack.c.bf16 %v1931_v14, %v1927_v9  ;;  %v2250_v9 = vld [vmem:[%s7320_s5 + $0x128] sm:$0xff]  ;;  %v2248_v14 = vld [vmem:[%s7320_s5 + $0x118] sm:$0xff] }
 0x750   :  { %v5314_v45 = vpop.eup %5313 }
 0x751   :  { %v6444_v0 = vmul.f32 %v5314_v45, %v5312_v5  ;;  %v1910_v5 = vld [vmem:[%s7319_s4 + $0x148] sm:$0xff] }
 0x752   :  { %v1914_v45 = vld [vmem:[%s7319_s4 + $0x168] sm:$0xff] }
 0x753   :  { %1753 = vmatmul.mubr.f32.vlgmr.msra.gmra.mrb[14].mxu0 %v6444_v0  ;;  %1824 = vmatmul.mubr.f32.vlgmr.msra.gmra.mrb[14].mxu1 %v6444_v0  ;;  %v4492_v8 = vpack.c.bf16 %v1914_v45, %v1910_v5  ;;  %v2228_v45 = vld [vmem:[%s7320_s5 + $0x78] sm:$0xff] }
 0x754   :  { %4475 = vmatpush1.bf16.msra.mxu0 %v4474_v49  ;;  %4507 = vmatpush1.bf16.msra.mxu1 %v4506_v11  ;;  %v1912_v49 = vld [vmem:[%s7319_s4 + $0x158] sm:$0xff] }
 0x755   :  { %4477 = vmatprep.subr.bf16.mxu0 %v4476_v28  ;;  %4509 = vmatprep.subr.bf16.mxu1 %v4508_v24  ;;  %v1916_v11 = vld [vmem:[%s7319_s4 + $0x178] sm:$0xff]  ;;  %v1909_v28 = vld [vmem:[%s7319_s4 + $0x140] sm:$0xff] }
 0x756   :  { %2019 = vmatprep.mubr.f32.mxu0 %v5459_v3  ;;  %2132 = vmatprep.mubr.f32.mxu1 %v5459_v3  ;;  %v1913_v24 = vld [vmem:[%s7319_s4 + $0x160] sm:$0xff]  ;;  %v4524_v34 = vpack.c.bf16 %v1916_v11, %v1912_v49 }
 0x757   :  { %v4494_v2 = vpack.c.bf16 %v1913_v24, %v1909_v28  ;;  %v2221_v49 = vld [vmem:[%s7320_s5 + $0x40] sm:$0xff]  ;;  %v2223_v28 = vld [vmem:[%s7320_s5 + $0x50] sm:$0xff] }
 0x758   :  { %4479 = vmatpush1.bf16.msra.mxu0 %v4478_v60  ;;  %4511 = vmatpush1.bf16.msra.mxu1 %v4510_v63  ;;  %v1920_v60 = vld [vmem:[%s7319_s4 + $0x198] sm:$0xff]  ;;  %v2225_v11 = vld [vmem:[%s7320_s5 + $0x60] sm:$0xff]  ;;  %v2227_v24 = vld [vmem:[%s7320_s5 + $0x70] sm:$0xff] }
 0x759   :  { %4481 = vmatprep.subr.bf16.mxu0 %v4480_v10  ;;  %4513 = vmatprep.subr.bf16.mxu1 %v4512_v13  ;;  %v1924_v63 = vld [vmem:[%s7319_s4 + $0x1b8] sm:$0xff]  ;;  %v1917_v10 = vld [vmem:[%s7319_s4 + $0x180] sm:$0xff] }
 0x75a   :  { %v1921_v13 = vld [vmem:[%s7319_s4 + $0x1a0] sm:$0xff]  ;;  %v4528_v19 = vpack.c.bf16 %v1924_v63, %v1920_v60 }
 0x75b   :  { %v4498_v44 = vpack.c.bf16 %v1921_v13, %v1917_v10  ;;  %v2229_v60 = vld [vmem:[%s7320_s5 + $0x80] sm:$0xff]  ;;  %v2231_v10 = vld [vmem:[%s7320_s5 + $0x90] sm:$0xff] }
 0x75c   :  { %4483 = vmatpush1.bf16.msra.mxu0 %v4482_v36  ;;  %4515 = vmatpush1.bf16.msra.mxu1 %v4514_v40  ;;  %v1928_v36 = vld [vmem:[%s7319_s4 + $0x1d8] sm:$0xff]  ;;  %v2233_v63 = vld [vmem:[%s7320_s5 + $0xa0] sm:$0xff]  ;;  %v2235_v13 = vld [vmem:[%s7320_s5 + $0xb0] sm:$0xff] }
 0x75d   :  { %4485 = vmatprep.subr.bf16.mxu0 %v4484_v54  ;;  %4517 = vmatprep.subr.bf16.mxu1 %v4516_v58  ;;  %v1932_v40 = vld [vmem:[%s7319_s4 + $0x1f8] sm:$0xff]  ;;  %v1925_v54 = vld [vmem:[%s7319_s4 + $0x1c0] sm:$0xff]  ;;  %v4500_v58 = vpack.c.bf16 %v1930_v32, %v1926_v29 }
 0x75e   :  { %v4532_v62 = vpack.c.bf16 %v1932_v40, %v1928_v36  ;;  %v4502_v18 = vpack.c.bf16 %v1929_v4, %v1925_v54  ;;  %v2244_v32 = vld [vmem:[%s7320_s5 + $0xf8] sm:$0xff]  ;;  %v2237_v36 = vld [vmem:[%s7320_s5 + $0xc0] sm:$0xff]  ;;  %v2239_v54 = vld [vmem:[%s7320_s5 + $0xd0] sm:$0xff] }
 0x75f   :  { %v2241_v40 = vld [vmem:[%s7320_s5 + $0xe0] sm:$0xff] }
 0x760   :  { %4487 = vmatpush1.bf16.msra.mxu0 %v4486_v27  ;;  %4519 = vmatpush1.bf16.msra.mxu1 %v4518_v55 }
 0x761   :  { %4489 = vmatprep.subr.bf16.mxu0 %v4488_v52  ;;  %4521 = vmatprep.subr.bf16.mxu1 %v4520_v38  ;;  %v6659_v52 = vpack.c.bf16 %v2219_v15, %v2215_v42  ;;  %v2222_v38 = vld [vmem:[%s7320_s5 + $0x48] sm:$0xff] }
 0x762   :  { %v6673_v5 = vpack.c.bf16 %v2226_v57, %v2222_v38  ;;  %v2254_v42 = vld [vmem:[%s7320_s5 + $0x148] sm:$0xff] }
 0x763   :  { %v2258_v15 = vld [vmem:[%s7320_s5 + $0x168] sm:$0xff] }
 0x764   :  { %4491 = vmatpush1.bf16.msra.mxu0 %v4490_v30  ;;  %4523 = vmatpush1.bf16.msra.mxu1 %v4522_v17  ;;  %v6684_v30 = vpack.c.bf16 %v2228_v45, %v2224_v41  ;;  %v6686_v17 = vpack.c.bf16 %v2225_v11, %v2221_v49  ;;  %v6812_v57 = vpack.c.bf16 %v2258_v15, %v2254_v42  ;;  %v2256_v41 = vld [vmem:[%s7320_s5 + $0x158] sm:$0xff]  ;;  %v2253_v49 = vld [vmem:[%s7320_s5 + $0x140] sm:$0xff]  ;;  %v2271_v42 = vld [vmem:[%s7320_s5 + $0x1d0] sm:$0xff] }
 0x765   :  { %4493 = vmatprep.subr.bf16.mxu0 %v4492_v8  ;;  %4525 = vmatprep.subr.bf16.mxu1 %v4524_v34  ;;  %v6695_v8 = vpack.c.bf16 %v2227_v24, %v2223_v28  ;;  %v2230_v34 = vld [vmem:[%s7320_s5 + $0x88] sm:$0xff]  ;;  %v2260_v45 = vld [vmem:[%s7320_s5 + $0x178] sm:$0xff]  ;;  %v2257_v28 = vld [vmem:[%s7320_s5 + $0x160] sm:$0xff] }
 0x766   :  { %v6709_v53 = vpack.c.bf16 %v2234_v47, %v2230_v34  ;;  %v6823_v11 = vpack.c.bf16 %v2260_v45, %v2256_v41  ;;  %v2255_v24 = vld [vmem:[%s7320_s5 + $0x150] sm:$0xff]  ;;  %v6835_v47 = vpack.c.bf16 %v2257_v28, %v2253_v49 }
 0x767   :  { %v2259_v34 = vld [vmem:[%s7320_s5 + $0x170] sm:$0xff] }
 0x768   :  { %4495 = vmatpush1.bf16.msra.mxu0 %v4494_v2  ;;  %4527 = vmatpush1.bf16.msra.mxu1 %v4526_v6  ;;  %v6720_v2 = vpack.c.bf16 %v2236_v56, %v2232_v50  ;;  %v6722_v6 = vpack.c.bf16 %v2233_v63, %v2229_v60  ;;  %v2262_v50 = vld [vmem:[%s7320_s5 + $0x188] sm:$0xff]  ;;  %v2264_v60 = vld [vmem:[%s7320_s5 + $0x198] sm:$0xff]  ;;  %v6848_v63 = vpack.c.bf16 %v2259_v34, %v2255_v24  ;;  %v2275_v15 = vld [vmem:[%s7320_s5 + $0x1f0] sm:$0xff] }
 0x769   :  { %4497 = vmatprep.subr.bf16.mxu0 %v4496_v16  ;;  %4529 = vmatprep.subr.bf16.mxu1 %v4528_v19  ;;  %v6731_v16 = vpack.c.bf16 %v2235_v13, %v2231_v10  ;;  %v2238_v19 = vld [vmem:[%s7320_s5 + $0xc8] sm:$0xff]  ;;  %v2268_v13 = vld [vmem:[%s7320_s5 + $0x1b8] sm:$0xff]  ;;  %v6911_v41 = vpack.c.bf16 %v2275_v15, %v2271_v42 }
 0x76a   :  { %v6745_v29 = vpack.c.bf16 %v2242_v23, %v2238_v19  ;;  %v2266_v56 = vld [vmem:[%s7320_s5 + $0x1a8] sm:$0xff]  ;;  %v2261_v19 = vld [vmem:[%s7320_s5 + $0x180] sm:$0xff] }
 0x76b   :  { %v6850_v10 = vpack.c.bf16 %v2266_v56, %v2262_v50  ;;  %v2265_v23 = vld [vmem:[%s7320_s5 + $0x1a0] sm:$0xff] }
 0x76c   :  { %4499 = vmatpush1.bf16.msra.mxu0 %v4498_v44  ;;  %4531 = vmatpush1.bf16.msra.mxu1 %v4530_v48  ;;  %v6756_v44 = vpack.c.bf16 %v2244_v32, %v2240_v26  ;;  %v6758_v48 = vpack.c.bf16 %v2241_v40, %v2237_v36  ;;  %v6862_v26 = vpack.c.bf16 %v2268_v13, %v2264_v60  ;;  %v2263_v32 = vld [vmem:[%s7320_s5 + $0x190] sm:$0xff] }
 0x76d   :  { %4501 = vmatprep.subr.bf16.mxu0 %v4500_v58  ;;  %4533 = vmatprep.subr.bf16.mxu1 %v4532_v62  ;;  %v2243_v58 = vld [vmem:[%s7320_s5 + $0xf0] sm:$0xff]  ;;  %v2246_v62 = vld [vmem:[%s7320_s5 + $0x108] sm:$0xff]  ;;  %v6871_v40 = vpack.c.bf16 %v2265_v23, %v2261_v19 }
 0x76e   :  { %v6770_v4 = vpack.c.bf16 %v2243_v58, %v2239_v54  ;;  %v2267_v36 = vld [vmem:[%s7320_s5 + $0x1b0] sm:$0xff]  ;;  %v2270_v58 = vld [vmem:[%s7320_s5 + $0x1c8] sm:$0xff] }
 0x76f   :  { %v6875_v54 = vpack.c.bf16 %v2267_v36, %v2263_v32 }
 0x770   :  { %4503 = vmatpush1.bf16.msra.mxu0 %v4502_v18  ;;  %4535 = vmatpush1.bf16.msra.mxu1 %v4534_v22  ;;  %v2252_v18 = vld [vmem:[%s7320_s5 + $0x138] sm:$0xff]  ;;  %v6783_v22 = vpack.c.bf16 %v2250_v9, %v2246_v62  ;;  %v2274_v62 = vld [vmem:[%s7320_s5 + $0x1e8] sm:$0xff] }
 0x771   :  { %v2272_v9 = vld [vmem:[%s7320_s5 + $0x1d8] sm:$0xff] }
 0x773   :  { %2020 = vmatmul.mubr.f32.vlgmr.msra.gmra.mrb[16].mxu0 %v6128_v51  ;;  %2133 = vmatmul.mubr.f32.vlgmr.msra.gmra.mrb[16].mxu1 %v6128_v51  ;;  %v2214_v51 = vld [vmem:[%s7320_s5 + $0x8] sm:$0xff] }
 0x774   :  { %2025 = vmatprep.mubr.f32.mxu0 %v5459_v3  ;;  %2138 = vmatprep.mubr.f32.mxu1 %v5459_v3 }
 0x777   :  { %2026 = vmatmul.mubr.f32.gmra.mrb[18].mxu0 %v6174_v7  ;;  %2139 = vmatmul.mubr.f32.gmra.mrb[18].mxu1 %v6174_v7  ;;  %v2218_v7 = vld [vmem:[%s7320_s5 + $0x28] sm:$0xff] }
 0x778   :  { %2031 = vmatprep.mubr.f32.mxu0 %v5459_v3  ;;  %2144 = vmatprep.mubr.f32.mxu1 %v5459_v3 }
 0x77b   :  { %2032 = vmatmul.mubr.f32.gmra.mrb[20].mxu0 %v6220_v20  ;;  %2145 = vmatmul.mubr.f32.gmra.mrb[20].mxu1 %v6220_v20  ;;  %v2216_v20 = vld [vmem:[%s7320_s5 + $0x18] sm:$0xff] }
 0x77c   :  { %2037 = vmatprep.mubr.f32.mxu0 %v5459_v3  ;;  %2150 = vmatprep.mubr.f32.mxu1 %v5459_v3 }
 0x77f   :  { %2038 = vmatmul.mubr.f32.gmra.mrb[22].mxu0 %v6266_v46  ;;  %2151 = vmatmul.mubr.f32.gmra.mrb[22].mxu1 %v6266_v46  ;;  %v6637_v46 = vpack.c.bf16 %v2218_v7, %v2214_v51  ;;  %v6785_v51 = vpack.c.bf16 %v2252_v18, %v2248_v14  ;;  %v2245_v7 = vld [vmem:[%s7320_s5 + $0x100] sm:$0xff]  ;;  %v6889_v14 = vpack.c.bf16 %v2274_v62, %v2270_v58  ;;  %v2276_v18 = vld [vmem:[%s7320_s5 + $0x1f8] sm:$0xff] }
 0x780   :  { %2043 = vmatprep.mubr.f32.mxu0 %v5459_v3  ;;  %2156 = vmatprep.mubr.f32.mxu1 %v5459_v3 }
 0x781   :  { %4537 = vmatprep.subr.bf16.mxu0 %v6637_v46 }
 0x783   :  { %2044 = vmatmul.mubr.f32.gmra.mrb[24].mxu0 %v6312_v12  ;;  %2157 = vmatmul.mubr.f32.gmra.mrb[24].mxu1 %v6312_v12  ;;  %v2220_v12 = vld [vmem:[%s7320_s5 + $0x38] sm:$0xff] }
 0x784   :  { %2049 = vmatprep.mubr.f32.mxu0 %v5459_v3  ;;  %2162 = vmatprep.mubr.f32.mxu1 %v5459_v3  ;;  %v6648_v27 = vpack.c.bf16 %v2220_v12, %v2216_v20  ;;  %v2249_v20 = vld [vmem:[%s7320_s5 + $0x120] sm:$0xff]  ;;  %v2247_v12 = vld [vmem:[%s7320_s5 + $0x110] sm:$0xff] }
 0x786   :  { %4569 = vmatprep.subr.bf16.mxu1 %v6648_v27 }
 0x787   :  { %2050 = vmatmul.mubr.f32.gmra.mrb[26].mxu0 %v6358_v21  ;;  %2163 = vmatmul.mubr.f32.gmra.mrb[26].mxu1 %v6358_v21  ;;  %v2213_v21 = vld [vmem:[%s7320_s5] sm:$0xff] }
 0x788   :  { %2055 = vmatprep.mubr.f32.mxu0 %v5459_v3  ;;  %2168 = vmatprep.mubr.f32.mxu1 %v5459_v3 }
 0x789   :  { %4571 = vmatpush1.bf16.msra.mxu1 %v6659_v52 }
 0x78a   :  { %4573 = vmatprep.subr.bf16.mxu1 %v6684_v30 }
 0x78b   :  { %2056 = vmatmul.mubr.f32.gmra.mrb[28].mxu0 %v6444_v0  ;;  %2169 = vmatmul.mubr.f32.gmra.mrb[28].mxu1 %v6444_v0  ;;  %v2217_v0 = vld [vmem:[%s7320_s5 + $0x20] sm:$0xff] }
 0x78c   :  { %2061 = vmatprep.mubr.f32.mxu0 %v5459_v3  ;;  %2174 = vmatprep.mubr.f32.mxu1 %v5459_v3  ;;  %v6650_v55 = vpack.c.bf16 %v2217_v0, %v2213_v21  ;;  %v6797_v21 = vpack.c.bf16 %v2249_v20, %v2245_v7  ;;  %v2251_v0 = vld [vmem:[%s7320_s5 + $0x130] sm:$0xff]  ;;  %v2269_v7 = vld [vmem:[%s7320_s5 + $0x1c0] sm:$0xff] }
 0x78d   :  { %4575 = vmatpush1.bf16.msra.mxu1 %v6695_v8  ;;  %v6810_v38 = vpack.c.bf16 %v2251_v0, %v2247_v12  ;;  %v2273_v20 = vld [vmem:[%s7320_s5 + $0x1e0] sm:$0xff]  ;;  %v6900_v12 = vpack.c.bf16 %v2276_v18, %v2272_v9 }
 0x78e   :  { %4539 = vmatpush1.bf16.msra.mxu0 %v6650_v55  ;;  %4577 = vmatprep.subr.bf16.mxu1 %v6720_v2  ;;  %v6902_v0 = vpack.c.bf16 %v2273_v20, %v2269_v7 }
 0x78f   :  { %4541 = vmatprep.subr.bf16.mxu0 %v6673_v5 }
 0x791   :  { %4579 = vmatpush1.bf16.msra.mxu1 %v6731_v16 }
 0x792   :  { %4543 = vmatpush1.bf16.msra.mxu0 %v6686_v17  ;;  %4581 = vmatprep.subr.bf16.mxu1 %v6756_v44 }
 0x793   :  { %4545 = vmatprep.subr.bf16.mxu0 %v6709_v53 }
 0x795   :  { %4583 = vmatpush1.bf16.msra.mxu1 %v6770_v4 }
 0x796   :  { %4547 = vmatpush1.bf16.msra.mxu0 %v6722_v6  ;;  %4585 = vmatprep.subr.bf16.mxu1 %v6785_v51 }
 0x797   :  { %4549 = vmatprep.subr.bf16.mxu0 %v6745_v29 }
 0x799   :  { %4587 = vmatpush1.bf16.msra.mxu1 %v6810_v38 }
 0x79a   :  { %4551 = vmatpush1.bf16.msra.mxu0 %v6758_v48  ;;  %4589 = vmatprep.subr.bf16.mxu1 %v6823_v11 }
 0x79b   :  { %4553 = vmatprep.subr.bf16.mxu0 %v6783_v22 }
 0x79d   :  { %4591 = vmatpush1.bf16.msra.mxu1 %v6848_v63 }
 0x79e   :  { %4555 = vmatpush1.bf16.msra.mxu0 %v6797_v21  ;;  %4593 = vmatprep.subr.bf16.mxu1 %v6862_v26 }
 0x79f   :  { %4557 = vmatprep.subr.bf16.mxu0 %v6812_v57 }
 0x7a1   :  { %4595 = vmatpush1.bf16.msra.mxu1 %v6875_v54 }
 0x7a2   :  { %4559 = vmatpush1.bf16.msra.mxu0 %v6835_v47  ;;  %4597 = vmatprep.subr.bf16.mxu1 %v6900_v12 }
 0x7a3   :  { %4561 = vmatprep.subr.bf16.mxu0 %v6850_v10 }
 0x7a5   :  { %4599 = vmatpush1.bf16.msra.mxu1 %v6911_v41 }
 0x7a6   :  { %4563 = vmatpush1.bf16.msra.mxu0 %v6871_v40  ;;  %4633 = vmatprep.subr.bf16.mxu1 %v6648_v27 }
 0x7a7   :  { %4565 = vmatprep.subr.bf16.mxu0 %v6889_v14 }
 0x7aa   :  { %4567 = vmatpush1.bf16.msra.mxu0 %v6902_v0 }
 0x7ab   :  { %4601 = vmatprep.subr.bf16.mxu0 %v6637_v46 }
 0x826   :  { %v1754_v45 = vpop.f32.mrb[14].mxu0  ;;  %v1825_v49 = vpop.f32.mrb[14].mxu1 }
 0x827   :  { %v5086_v28 = vadd.f32 %v1754_v45, %v6102_v37  ;;  %v1756_v24 = vpop.f32.mrb[15].mxu0  ;;  %v1827_v34 = vpop.f32.mrb[15].mxu1  ;;  %v5102_v23 = vadd.f32 %v1825_v49, %v6119_v1  ;;  %v1933_v49 = vld [vmem:[%s7323_s6] sm:$0xf] }
 0x828   :  { %v5087_v50 = vadd.f32 %v1756_v24, %v6106_v39  ;;  %v5103_v13 = vadd.f32 %v1827_v34, %v6113_v59  ;;  %v6977_v24 = vrot.slane %v1933_v49, %v121_v35  ;;  %v6988_v35 = vrot.slane %v1933_v49, %v125_v61 }
 0x829   :  { %v3812_v56 = vmul.f32 -1.442695, %v5086_v28  ;;  %v6973_v28 = vrot.slane %v1933_v49, %v117_v33 }
 0x82a   :  { %v3813_v60 = vmul.f32 -1.442695, %v5087_v50  ;;  %v3814_v19 = vmul.f32 -1.442695, %v5103_v13 }
 0x82b   :  { %5315 = vpow2.f32 %v3812_v56 }
 0x82c   :  { %5317 = vpow2.f32 %v3813_v60 }
 0x82d   :  { %5319 = vpow2.f32 %v3814_v19 }
 0x82e   :  { %5321 = vtanh.f32 %v5102_v23 }
 0x835   :  { %v5316_v32 = vpop.eup %5315 }
 0x836   :  { %v5318_v36 = vpop.eup %5317  ;;  %v1837_v58 = vadd.f32 1.0, %v5316_v32 }
 0x837   :  { %v1843_v62 = vadd.f32 1.0, %v5318_v36  ;;  %v5320_v37 = vpop.eup %5319  ;;  %v6983_v36 = vrot.slane %v1933_v49, %v129_v43 }
 0x838   :  { %5323 = vrcp.f32 %v1837_v58  ;;  %v5322_v9 = vpop.eup %5321  ;;  %v1850_v20 = vadd.f32 1.0, %v5320_v37 }
 0x839   :  { %5325 = vrcp.f32 %v1843_v62 }
 0x83a   :  { %5327 = vrcp.f32 %v1850_v20  ;;  %v3816_v20 = vld [vmem:[%s7318_s8 + $0x8] sm:$0xff] }
 0x842   :  { %v5324_v39 = vpop.eup %5323 }
 0x843   :  { %v5326_v18 = vpop.eup %5325  ;;  %v1854_v7 = vmul.f32 %v5324_v39, %v5322_v9 }
 0x844   :  { %v1853_v42 = vmul.f32 %v5326_v18, %v6411_v25  ;;  %v5328_v1 = vpop.eup %5327  ;;  %v3815_v25 = vld [vmem:[%s7316_s7 + $0x8] sm:$0xff] }
 0x846   :  { %v1855_v59 = vadd.f32 %v1854_v7, %v1853_v42 }
 0x848   :  { %5329 = vtanh.f32 %v1855_v59  ;;  %1860 = vst [vmem:[%s7321_s13] sm:$0xff] %v1855_v59 }
 0x852   :  { %v5330_v15 = vpop.eup %5329 }
 0x853   :  { %v1857_v45 = vmul.f32 %v5330_v15, %v5328_v1 }
 0x855   :  { %1859 = vst [vmem:[%s7322_s12] sm:$0xff] %v1857_v45  ;;  %2062 = vmatmul.mubr.f32.gmra.mrb[30].mxu0 %v1857_v45  ;;  %2175 = vmatmul.mubr.f32.gmra.mrb[30].mxu1 %v1857_v45 }
 0x856   :  { %2349 = vmatprep.mubr.f32.mxu0 %v5459_v3  ;;  %2420 = vmatprep.mubr.f32.mxu1 %v5459_v3 }
 0x859   :  { %2350 = vmatmul.mubr.f32.vlgmr.msra.gmra.mrb[16].mxu0 %v3815_v25  ;;  %2421 = vmatmul.mubr.f32.vlgmr.msra.gmra.mrb[16].mxu1 %v3815_v25 }
 0x85a   :  { %4603 = vmatpush1.bf16.msra.mxu0 %v6650_v55  ;;  %4635 = vmatpush1.bf16.msra.mxu1 %v6659_v52 }
 0x85b   :  { %4605 = vmatprep.subr.bf16.mxu0 %v6673_v5  ;;  %4637 = vmatprep.subr.bf16.mxu1 %v6684_v30 }
 0x85c   :  { %2524 = vmatprep.mubr.f32.mxu0 %v5459_v3  ;;  %2595 = vmatprep.mubr.f32.mxu1 %v5459_v3 }
 0x85e   :  { %4607 = vmatpush1.bf16.msra.mxu0 %v6686_v17  ;;  %4639 = vmatpush1.bf16.msra.mxu1 %v6695_v8 }
 0x85f   :  { %4609 = vmatprep.subr.bf16.mxu0 %v6709_v53  ;;  %4641 = vmatprep.subr.bf16.mxu1 %v6720_v2 }
 0x862   :  { %4611 = vmatpush1.bf16.msra.mxu0 %v6722_v6  ;;  %4643 = vmatpush1.bf16.msra.mxu1 %v6731_v16 }
 0x863   :  { %4613 = vmatprep.subr.bf16.mxu0 %v6745_v29  ;;  %4645 = vmatprep.subr.bf16.mxu1 %v6756_v44 }
 0x866   :  { %4615 = vmatpush1.bf16.msra.mxu0 %v6758_v48  ;;  %4647 = vmatpush1.bf16.msra.mxu1 %v6770_v4 }
 0x867   :  { %4617 = vmatprep.subr.bf16.mxu0 %v6783_v22  ;;  %4649 = vmatprep.subr.bf16.mxu1 %v6785_v51 }
 0x86a   :  { %4619 = vmatpush1.bf16.msra.mxu0 %v6797_v21  ;;  %4651 = vmatpush1.bf16.msra.mxu1 %v6810_v38 }
 0x86b   :  { %4621 = vmatprep.subr.bf16.mxu0 %v6812_v57  ;;  %4653 = vmatprep.subr.bf16.mxu1 %v6823_v11 }
 0x86e   :  { %4623 = vmatpush1.bf16.msra.mxu0 %v6835_v47  ;;  %4655 = vmatpush1.bf16.msra.mxu1 %v6848_v63 }
 0x86f   :  { %4625 = vmatprep.subr.bf16.mxu0 %v6850_v10  ;;  %4657 = vmatprep.subr.bf16.mxu1 %v6862_v26 }
 0x872   :  { %4627 = vmatpush1.bf16.msra.mxu0 %v6871_v40  ;;  %4659 = vmatpush1.bf16.msra.mxu1 %v6875_v54 }
 0x873   :  { %4629 = vmatprep.subr.bf16.mxu0 %v6889_v14  ;;  %4661 = vmatprep.subr.bf16.mxu1 %v6900_v12 }
 0x876   :  { %4631 = vmatpush1.bf16.msra.mxu0 %v6902_v0  ;;  %4663 = vmatpush1.bf16.msra.mxu1 %v6911_v41 }
 0x877   :  { %4665 = vmatprep.subr.bf16.mxu0 %v6637_v46  ;;  %4697 = vmatprep.subr.bf16.mxu1 %v6648_v27 }
 0x92c   :  { %v2351_v34 = vpop.f32.mrb[16].mxu0  ;;  %v2422_v50 = vpop.f32.mrb[16].mxu1 }
 0x92d   :  { %v5104_v56 = vadd.f32 %v2351_v34, %v6973_v28  ;;  %v2353_v60 = vpop.f32.mrb[17].mxu0  ;;  %v2424_v13 = vpop.f32.mrb[17].mxu1  ;;  %v5120_v62 = vadd.f32 %v2422_v50, %v6988_v35 }
 0x92e   :  { %v5105_v19 = vadd.f32 %v2353_v60, %v6977_v24  ;;  %v5121_v33 = vadd.f32 %v2424_v13, %v6983_v36 }
 0x92f   :  { %v3817_v23 = vmul.f32 -1.442695, %v5104_v56 }
 0x930   :  { %v3818_v32 = vmul.f32 -1.442695, %v5105_v19  ;;  %v3819_v58 = vmul.f32 -1.442695, %v5121_v33 }
 0x931   :  { %5331 = vpow2.f32 %v3817_v23 }
 0x932   :  { %5333 = vpow2.f32 %v3818_v32 }
 0x933   :  { %5335 = vpow2.f32 %v3819_v58 }
 0x934   :  { %5337 = vtanh.f32 %v5120_v62 }
 0x93b   :  { %v5332_v37 = vpop.eup %5331 }
 0x93c   :  { %v5334_v9 = vpop.eup %5333  ;;  %v2434_v39 = vadd.f32 1.0, %v5332_v37 }
 0x93d   :  { %v2440_v18 = vadd.f32 1.0, %v5334_v9  ;;  %v5336_v43 = vpop.eup %5335 }
 0x93e   :  { %5339 = vrcp.f32 %v2434_v39  ;;  %v5338_v7 = vpop.eup %5337  ;;  %v2447_v59 = vadd.f32 1.0, %v5336_v43 }
 0x93f   :  { %5341 = vrcp.f32 %v2440_v18 }
 0x940   :  { %5343 = vrcp.f32 %v2447_v59 }
 0x948   :  { %v5340_v31 = vpop.eup %5339 }
 0x949   :  { %v5342_v61 = vpop.eup %5341  ;;  %v2451_v42 = vmul.f32 %v5340_v31, %v5338_v7 }
 0x94a   :  { %v2450_v1 = vmul.f32 %v5342_v61, %v3816_v20  ;;  %v5344_v45 = vpop.eup %5343 }
 0x94c   :  { %v6994_v15 = vadd.f32 %v2451_v42, %v2450_v1 }
 0x94e   :  { %5345 = vtanh.f32 %v6994_v15 }
 0x958   :  { %v5346_v25 = vpop.eup %5345 }
 0x959   :  { %v2454_v49 = vmul.f32 %v5346_v25, %v5344_v45 }
 0x95b   :  { %2525 = vmatmul.mubr.f32.vlgmr.msra.gmra.mrb[18].mxu0 %v2454_v49  ;;  %2596 = vmatmul.mubr.f32.vlgmr.msra.gmra.mrb[18].mxu1 %v2454_v49 }
 0x95c   :  { %4667 = vmatpush1.bf16.msra.mxu0 %v6650_v55  ;;  %4699 = vmatpush1.bf16.msra.mxu1 %v6659_v52 }
 0x95d   :  { %4669 = vmatprep.subr.bf16.mxu0 %v6673_v5  ;;  %4701 = vmatprep.subr.bf16.mxu1 %v6684_v30 }
 0x95e   :  { %2699 = vmatprep.mubr.f32.mxu0 %v5459_v3  ;;  %2770 = vmatprep.mubr.f32.mxu1 %v5459_v3 }
 0x960   :  { %4671 = vmatpush1.bf16.msra.mxu0 %v6686_v17  ;;  %4703 = vmatpush1.bf16.msra.mxu1 %v6695_v8 }
 0x961   :  { %4673 = vmatprep.subr.bf16.mxu0 %v6709_v53  ;;  %4705 = vmatprep.subr.bf16.mxu1 %v6720_v2 }
 0x964   :  { %4675 = vmatpush1.bf16.msra.mxu0 %v6722_v6  ;;  %4707 = vmatpush1.bf16.msra.mxu1 %v6731_v16 }
 0x965   :  { %4677 = vmatprep.subr.bf16.mxu0 %v6745_v29  ;;  %4709 = vmatprep.subr.bf16.mxu1 %v6756_v44 }
 0x968   :  { %4679 = vmatpush1.bf16.msra.mxu0 %v6758_v48  ;;  %4711 = vmatpush1.bf16.msra.mxu1 %v6770_v4 }
 0x969   :  { %4681 = vmatprep.subr.bf16.mxu0 %v6783_v22  ;;  %4713 = vmatprep.subr.bf16.mxu1 %v6785_v51 }
 0x96c   :  { %4683 = vmatpush1.bf16.msra.mxu0 %v6797_v21  ;;  %4715 = vmatpush1.bf16.msra.mxu1 %v6810_v38 }
 0x96d   :  { %4685 = vmatprep.subr.bf16.mxu0 %v6812_v57  ;;  %4717 = vmatprep.subr.bf16.mxu1 %v6823_v11 }
 0x970   :  { %4687 = vmatpush1.bf16.msra.mxu0 %v6835_v47  ;;  %4719 = vmatpush1.bf16.msra.mxu1 %v6848_v63 }
 0x971   :  { %4689 = vmatprep.subr.bf16.mxu0 %v6850_v10  ;;  %4721 = vmatprep.subr.bf16.mxu1 %v6862_v26 }
 0x974   :  { %4691 = vmatpush1.bf16.msra.mxu0 %v6871_v40  ;;  %4723 = vmatpush1.bf16.msra.mxu1 %v6875_v54 }
 0x975   :  { %4693 = vmatprep.subr.bf16.mxu0 %v6889_v14  ;;  %4725 = vmatprep.subr.bf16.mxu1 %v6900_v12 }
 0x978   :  { %4695 = vmatpush1.bf16.msra.mxu0 %v6902_v0  ;;  %4727 = vmatpush1.bf16.msra.mxu1 %v6911_v41 }
 0x979   :  { %4729 = vmatprep.subr.bf16.mxu0 %v6637_v46  ;;  %4761 = vmatprep.subr.bf16.mxu1 %v6648_v27 }
 0xa2e   :  { %v2526_v34 = vpop.f32.mrb[18].mxu0  ;;  %v2597_v50 = vpop.f32.mrb[18].mxu1 }
 0xa2f   :  { %v5106_v56 = vadd.f32 %v2526_v34, %v6973_v28  ;;  %v2528_v60 = vpop.f32.mrb[19].mxu0  ;;  %v2599_v13 = vpop.f32.mrb[19].mxu1  ;;  %v5122_v62 = vadd.f32 %v2597_v50, %v6988_v35 }
 0xa30   :  { %v5107_v19 = vadd.f32 %v2528_v60, %v6977_v24  ;;  %v5123_v33 = vadd.f32 %v2599_v13, %v6983_v36 }
 0xa31   :  { %v3820_v23 = vmul.f32 -1.442695, %v5106_v56 }
 0xa32   :  { %v3821_v32 = vmul.f32 -1.442695, %v5107_v19  ;;  %v3822_v58 = vmul.f32 -1.442695, %v5123_v33 }
 0xa33   :  { %5347 = vpow2.f32 %v3820_v23 }
 0xa34   :  { %5349 = vpow2.f32 %v3821_v32 }
 0xa35   :  { %5351 = vpow2.f32 %v3822_v58 }
 0xa36   :  { %5353 = vtanh.f32 %v5122_v62 }
 0xa3d   :  { %v5348_v37 = vpop.eup %5347 }
 0xa3e   :  { %v5350_v9 = vpop.eup %5349  ;;  %v2609_v39 = vadd.f32 1.0, %v5348_v37 }
 0xa3f   :  { %v2615_v18 = vadd.f32 1.0, %v5350_v9  ;;  %v5352_v43 = vpop.eup %5351 }
 0xa40   :  { %5355 = vrcp.f32 %v2609_v39  ;;  %v5354_v7 = vpop.eup %5353  ;;  %v2622_v42 = vadd.f32 1.0, %v5352_v43 }
 0xa41   :  { %5357 = vrcp.f32 %v2615_v18 }
 0xa42   :  { %5359 = vrcp.f32 %v2622_v42 }
 0xa4a   :  { %v5356_v20 = vpop.eup %5355 }
 0xa4b   :  { %v5358_v31 = vpop.eup %5357  ;;  %v2626_v61 = vmul.f32 %v5356_v20, %v5354_v7 }
 0xa4c   :  { %v2625_v59 = vmul.f32 %v5358_v31, %v6994_v15  ;;  %v5360_v45 = vpop.eup %5359 }
 0xa4e   :  { %v7036_v1 = vadd.f32 %v2626_v61, %v2625_v59 }
 0xa50   :  { %5361 = vtanh.f32 %v7036_v1 }
 0xa5a   :  { %v5362_v25 = vpop.eup %5361 }
 0xa5b   :  { %v2629_v49 = vmul.f32 %v5362_v25, %v5360_v45 }
 0xa5d   :  { %2700 = vmatmul.mubr.f32.vlgmr.msra.gmra.mrb[20].mxu0 %v2629_v49  ;;  %2771 = vmatmul.mubr.f32.vlgmr.msra.gmra.mrb[20].mxu1 %v2629_v49 }
 0xa5e   :  { %4731 = vmatpush1.bf16.msra.mxu0 %v6650_v55  ;;  %4763 = vmatpush1.bf16.msra.mxu1 %v6659_v52 }
 0xa5f   :  { %4733 = vmatprep.subr.bf16.mxu0 %v6673_v5  ;;  %4765 = vmatprep.subr.bf16.mxu1 %v6684_v30 }
 0xa60   :  { %2874 = vmatprep.mubr.f32.mxu0 %v5459_v3  ;;  %2945 = vmatprep.mubr.f32.mxu1 %v5459_v3 }
 0xa62   :  { %4735 = vmatpush1.bf16.msra.mxu0 %v6686_v17  ;;  %4767 = vmatpush1.bf16.msra.mxu1 %v6695_v8 }
 0xa63   :  { %4737 = vmatprep.subr.bf16.mxu0 %v6709_v53  ;;  %4769 = vmatprep.subr.bf16.mxu1 %v6720_v2 }
 0xa66   :  { %4739 = vmatpush1.bf16.msra.mxu0 %v6722_v6  ;;  %4771 = vmatpush1.bf16.msra.mxu1 %v6731_v16 }
 0xa67   :  { %4741 = vmatprep.subr.bf16.mxu0 %v6745_v29  ;;  %4773 = vmatprep.subr.bf16.mxu1 %v6756_v44 }
 0xa6a   :  { %4743 = vmatpush1.bf16.msra.mxu0 %v6758_v48  ;;  %4775 = vmatpush1.bf16.msra.mxu1 %v6770_v4 }
 0xa6b   :  { %4745 = vmatprep.subr.bf16.mxu0 %v6783_v22  ;;  %4777 = vmatprep.subr.bf16.mxu1 %v6785_v51 }
 0xa6e   :  { %4747 = vmatpush1.bf16.msra.mxu0 %v6797_v21  ;;  %4779 = vmatpush1.bf16.msra.mxu1 %v6810_v38 }
 0xa6f   :  { %4749 = vmatprep.subr.bf16.mxu0 %v6812_v57  ;;  %4781 = vmatprep.subr.bf16.mxu1 %v6823_v11 }
 0xa72   :  { %4751 = vmatpush1.bf16.msra.mxu0 %v6835_v47  ;;  %4783 = vmatpush1.bf16.msra.mxu1 %v6848_v63 }
 0xa73   :  { %4753 = vmatprep.subr.bf16.mxu0 %v6850_v10  ;;  %4785 = vmatprep.subr.bf16.mxu1 %v6862_v26 }
 0xa76   :  { %4755 = vmatpush1.bf16.msra.mxu0 %v6871_v40  ;;  %4787 = vmatpush1.bf16.msra.mxu1 %v6875_v54 }
 0xa77   :  { %4757 = vmatprep.subr.bf16.mxu0 %v6889_v14  ;;  %4789 = vmatprep.subr.bf16.mxu1 %v6900_v12 }
 0xa7a   :  { %4759 = vmatpush1.bf16.msra.mxu0 %v6902_v0  ;;  %4791 = vmatpush1.bf16.msra.mxu1 %v6911_v41 }
 0xa7b   :  { %4793 = vmatprep.subr.bf16.mxu0 %v6637_v46  ;;  %4825 = vmatprep.subr.bf16.mxu1 %v6648_v27 }
 0xb30   :  { %v2701_v15 = vpop.f32.mrb[20].mxu0  ;;  %v2772_v34 = vpop.f32.mrb[20].mxu1 }
 0xb31   :  { %v5108_v50 = vadd.f32 %v2701_v15, %v6973_v28  ;;  %v2703_v56 = vpop.f32.mrb[21].mxu0  ;;  %v2774_v60 = vpop.f32.mrb[21].mxu1  ;;  %v5124_v58 = vadd.f32 %v2772_v34, %v6988_v35 }
 0xb32   :  { %v5109_v13 = vadd.f32 %v2703_v56, %v6977_v24  ;;  %v5125_v32 = vadd.f32 %v2774_v60, %v6983_v36 }
 0xb33   :  { %v3823_v19 = vmul.f32 -1.442695, %v5108_v50 }
 0xb34   :  { %v3824_v23 = vmul.f32 -1.442695, %v5109_v13  ;;  %v3825_v33 = vmul.f32 -1.442695, %v5125_v32 }
 0xb35   :  { %5363 = vpow2.f32 %v3823_v19 }
 0xb36   :  { %5365 = vpow2.f32 %v3824_v23 }
 0xb37   :  { %5367 = vpow2.f32 %v3825_v33 }
 0xb38   :  { %5369 = vtanh.f32 %v5124_v58 }
 0xb3f   :  { %v5364_v62 = vpop.eup %5363 }
 0xb40   :  { %v5366_v37 = vpop.eup %5365  ;;  %v2784_v9 = vadd.f32 1.0, %v5364_v62 }
 0xb41   :  { %v2790_v39 = vadd.f32 1.0, %v5366_v37  ;;  %v5368_v18 = vpop.eup %5367 }
 0xb42   :  { %5371 = vrcp.f32 %v2784_v9  ;;  %v5370_v43 = vpop.eup %5369  ;;  %v2797_v61 = vadd.f32 1.0, %v5368_v18 }
 0xb43   :  { %5373 = vrcp.f32 %v2790_v39 }
 0xb44   :  { %5375 = vrcp.f32 %v2797_v61 }
 0xb4c   :  { %v5372_v7 = vpop.eup %5371 }
 0xb4d   :  { %v5374_v20 = vpop.eup %5373  ;;  %v2801_v31 = vmul.f32 %v5372_v7, %v5370_v43 }
 0xb4e   :  { %v2800_v42 = vmul.f32 %v5374_v20, %v7036_v1  ;;  %v5376_v45 = vpop.eup %5375 }
 0xb50   :  { %v7078_v59 = vadd.f32 %v2801_v31, %v2800_v42 }
 0xb52   :  { %5377 = vtanh.f32 %v7078_v59 }
 0xb5c   :  { %v5378_v25 = vpop.eup %5377 }
 0xb5d   :  { %v2804_v49 = vmul.f32 %v5378_v25, %v5376_v45 }
 0xb5f   :  { %2875 = vmatmul.mubr.f32.vlgmr.msra.gmra.mrb[22].mxu0 %v2804_v49  ;;  %2946 = vmatmul.mubr.f32.vlgmr.msra.gmra.mrb[22].mxu1 %v2804_v49 }
 0xb60   :  { %4795 = vmatpush1.bf16.msra.mxu0 %v6650_v55  ;;  %4827 = vmatpush1.bf16.msra.mxu1 %v6659_v52 }
 0xb61   :  { %4797 = vmatprep.subr.bf16.mxu0 %v6673_v5  ;;  %4829 = vmatprep.subr.bf16.mxu1 %v6684_v30 }
 0xb62   :  { %3049 = vmatprep.mubr.f32.mxu0 %v5459_v3  ;;  %3120 = vmatprep.mubr.f32.mxu1 %v5459_v3 }
 0xb64   :  { %4799 = vmatpush1.bf16.msra.mxu0 %v6686_v17  ;;  %4831 = vmatpush1.bf16.msra.mxu1 %v6695_v8 }
 0xb65   :  { %4801 = vmatprep.subr.bf16.mxu0 %v6709_v53  ;;  %4833 = vmatprep.subr.bf16.mxu1 %v6720_v2 }
 0xb68   :  { %4803 = vmatpush1.bf16.msra.mxu0 %v6722_v6  ;;  %4835 = vmatpush1.bf16.msra.mxu1 %v6731_v16 }
 0xb69   :  { %4805 = vmatprep.subr.bf16.mxu0 %v6745_v29  ;;  %4837 = vmatprep.subr.bf16.mxu1 %v6756_v44 }
 0xb6c   :  { %4807 = vmatpush1.bf16.msra.mxu0 %v6758_v48  ;;  %4839 = vmatpush1.bf16.msra.mxu1 %v6770_v4 }
 0xb6d   :  { %4809 = vmatprep.subr.bf16.mxu0 %v6783_v22  ;;  %4841 = vmatprep.subr.bf16.mxu1 %v6785_v51 }
 0xb70   :  { %4811 = vmatpush1.bf16.msra.mxu0 %v6797_v21  ;;  %4843 = vmatpush1.bf16.msra.mxu1 %v6810_v38 }
 0xb71   :  { %4813 = vmatprep.subr.bf16.mxu0 %v6812_v57  ;;  %4845 = vmatprep.subr.bf16.mxu1 %v6823_v11 }
 0xb74   :  { %4815 = vmatpush1.bf16.msra.mxu0 %v6835_v47  ;;  %4847 = vmatpush1.bf16.msra.mxu1 %v6848_v63 }
 0xb75   :  { %4817 = vmatprep.subr.bf16.mxu0 %v6850_v10  ;;  %4849 = vmatprep.subr.bf16.mxu1 %v6862_v26 }
 0xb78   :  { %4819 = vmatpush1.bf16.msra.mxu0 %v6871_v40  ;;  %4851 = vmatpush1.bf16.msra.mxu1 %v6875_v54 }
 0xb79   :  { %4821 = vmatprep.subr.bf16.mxu0 %v6889_v14  ;;  %4853 = vmatprep.subr.bf16.mxu1 %v6900_v12 }
 0xb7c   :  { %4823 = vmatpush1.bf16.msra.mxu0 %v6902_v0  ;;  %4855 = vmatpush1.bf16.msra.mxu1 %v6911_v41 }
 0xb7d   :  { %4857 = vmatprep.subr.bf16.mxu0 %v6637_v46  ;;  %4889 = vmatprep.subr.bf16.mxu1 %v6648_v27 }
 0xc32   :  { %v2876_v1 = vpop.f32.mrb[22].mxu0  ;;  %v2947_v15 = vpop.f32.mrb[22].mxu1 }
 0xc33   :  { %v5110_v34 = vadd.f32 %v2876_v1, %v6973_v28  ;;  %v2878_v50 = vpop.f32.mrb[23].mxu0  ;;  %v2949_v56 = vpop.f32.mrb[23].mxu1  ;;  %v5126_v33 = vadd.f32 %v2947_v15, %v6988_v35 }
 0xc34   :  { %v5111_v60 = vadd.f32 %v2878_v50, %v6977_v24  ;;  %v5127_v23 = vadd.f32 %v2949_v56, %v6983_v36 }
 0xc35   :  { %v3826_v13 = vmul.f32 -1.442695, %v5110_v34 }
 0xc36   :  { %v3827_v19 = vmul.f32 -1.442695, %v5111_v60  ;;  %v3828_v32 = vmul.f32 -1.442695, %v5127_v23 }
 0xc37   :  { %5379 = vpow2.f32 %v3826_v13 }
 0xc38   :  { %5381 = vpow2.f32 %v3827_v19 }
 0xc39   :  { %5383 = vpow2.f32 %v3828_v32 }
 0xc3a   :  { %5385 = vtanh.f32 %v5126_v33 }
 0xc41   :  { %v5380_v58 = vpop.eup %5379 }
 0xc42   :  { %v5382_v62 = vpop.eup %5381  ;;  %v2959_v37 = vadd.f32 1.0, %v5380_v58 }
 0xc43   :  { %v2965_v9 = vadd.f32 1.0, %v5382_v62  ;;  %v5384_v39 = vpop.eup %5383 }
 0xc44   :  { %5387 = vrcp.f32 %v2959_v37  ;;  %v5386_v18 = vpop.eup %5385  ;;  %v2972_v31 = vadd.f32 1.0, %v5384_v39 }
 0xc45   :  { %5389 = vrcp.f32 %v2965_v9 }
 0xc46   :  { %5391 = vrcp.f32 %v2972_v31 }
 0xc4e   :  { %v5388_v43 = vpop.eup %5387 }
 0xc4f   :  { %v5390_v7 = vpop.eup %5389  ;;  %v2976_v20 = vmul.f32 %v5388_v43, %v5386_v18 }
 0xc50   :  { %v2975_v61 = vmul.f32 %v5390_v7, %v7078_v59  ;;  %v5392_v45 = vpop.eup %5391 }
 0xc52   :  { %v7120_v42 = vadd.f32 %v2976_v20, %v2975_v61 }
 0xc54   :  { %5393 = vtanh.f32 %v7120_v42 }
 0xc5e   :  { %v5394_v25 = vpop.eup %5393 }
 0xc5f   :  { %v2979_v49 = vmul.f32 %v5394_v25, %v5392_v45 }
 0xc61   :  { %3050 = vmatmul.mubr.f32.vlgmr.msra.gmra.mrb[24].mxu0 %v2979_v49  ;;  %3121 = vmatmul.mubr.f32.vlgmr.msra.gmra.mrb[24].mxu1 %v2979_v49 }
 0xc62   :  { %4859 = vmatpush1.bf16.msra.mxu0 %v6650_v55  ;;  %4891 = vmatpush1.bf16.msra.mxu1 %v6659_v52 }
 0xc63   :  { %4861 = vmatprep.subr.bf16.mxu0 %v6673_v5  ;;  %4893 = vmatprep.subr.bf16.mxu1 %v6684_v30 }
 0xc64   :  { %3224 = vmatprep.mubr.f32.mxu0 %v5459_v3  ;;  %3295 = vmatprep.mubr.f32.mxu1 %v5459_v3 }
 0xc66   :  { %4863 = vmatpush1.bf16.msra.mxu0 %v6686_v17  ;;  %4895 = vmatpush1.bf16.msra.mxu1 %v6695_v8 }
 0xc67   :  { %4865 = vmatprep.subr.bf16.mxu0 %v6709_v53  ;;  %4897 = vmatprep.subr.bf16.mxu1 %v6720_v2 }
 0xc6a   :  { %4867 = vmatpush1.bf16.msra.mxu0 %v6722_v6  ;;  %4899 = vmatpush1.bf16.msra.mxu1 %v6731_v16 }
 0xc6b   :  { %4869 = vmatprep.subr.bf16.mxu0 %v6745_v29  ;;  %4901 = vmatprep.subr.bf16.mxu1 %v6756_v44 }
 0xc6e   :  { %4871 = vmatpush1.bf16.msra.mxu0 %v6758_v48  ;;  %4903 = vmatpush1.bf16.msra.mxu1 %v6770_v4 }
 0xc6f   :  { %4873 = vmatprep.subr.bf16.mxu0 %v6783_v22  ;;  %4905 = vmatprep.subr.bf16.mxu1 %v6785_v51 }
 0xc72   :  { %4875 = vmatpush1.bf16.msra.mxu0 %v6797_v21  ;;  %4907 = vmatpush1.bf16.msra.mxu1 %v6810_v38 }
 0xc73   :  { %4877 = vmatprep.subr.bf16.mxu0 %v6812_v57  ;;  %4909 = vmatprep.subr.bf16.mxu1 %v6823_v11 }
 0xc76   :  { %4879 = vmatpush1.bf16.msra.mxu0 %v6835_v47  ;;  %4911 = vmatpush1.bf16.msra.mxu1 %v6848_v63 }
 0xc77   :  { %4881 = vmatprep.subr.bf16.mxu0 %v6850_v10  ;;  %4913 = vmatprep.subr.bf16.mxu1 %v6862_v26 }
 0xc7a   :  { %4883 = vmatpush1.bf16.msra.mxu0 %v6871_v40  ;;  %4915 = vmatpush1.bf16.msra.mxu1 %v6875_v54 }
 0xc7b   :  { %4885 = vmatprep.subr.bf16.mxu0 %v6889_v14  ;;  %4917 = vmatprep.subr.bf16.mxu1 %v6900_v12 }
 0xc7e   :  { %4887 = vmatpush1.bf16.msra.mxu0 %v6902_v0  ;;  %4919 = vmatpush1.bf16.msra.mxu1 %v6911_v41 }
 0xc7f   :  { %4921 = vmatprep.subr.bf16.mxu0 %v6637_v46  ;;  %4953 = vmatprep.subr.bf16.mxu1 %v6648_v27 }
 0xd34   :  { %v3051_v59 = vpop.f32.mrb[24].mxu0  ;;  %v3122_v1 = vpop.f32.mrb[24].mxu1 }
 0xd35   :  { %v5112_v15 = vadd.f32 %v3051_v59, %v6973_v28  ;;  %v3053_v34 = vpop.f32.mrb[25].mxu0  ;;  %v3124_v50 = vpop.f32.mrb[25].mxu1  ;;  %v5128_v32 = vadd.f32 %v3122_v1, %v6988_v35 }
 0xd36   :  { %v5113_v56 = vadd.f32 %v3053_v34, %v6977_v24  ;;  %v5129_v19 = vadd.f32 %v3124_v50, %v6983_v36 }
 0xd37   :  { %v3829_v60 = vmul.f32 -1.442695, %v5112_v15 }
 0xd38   :  { %v3830_v13 = vmul.f32 -1.442695, %v5113_v56  ;;  %v3831_v23 = vmul.f32 -1.442695, %v5129_v19 }
 0xd39   :  { %5395 = vpow2.f32 %v3829_v60 }
 0xd3a   :  { %5397 = vpow2.f32 %v3830_v13 }
 0xd3b   :  { %5399 = vpow2.f32 %v3831_v23 }
 0xd3c   :  { %5401 = vtanh.f32 %v5128_v32 }
 0xd43   :  { %v5396_v33 = vpop.eup %5395 }
 0xd44   :  { %v5398_v58 = vpop.eup %5397  ;;  %v3134_v62 = vadd.f32 1.0, %v5396_v33 }
 0xd45   :  { %v3140_v37 = vadd.f32 1.0, %v5398_v58  ;;  %v5400_v9 = vpop.eup %5399 }
 0xd46   :  { %5403 = vrcp.f32 %v3134_v62  ;;  %v5402_v39 = vpop.eup %5401  ;;  %v3147_v20 = vadd.f32 1.0, %v5400_v9 }
 0xd47   :  { %5405 = vrcp.f32 %v3140_v37 }
 0xd48   :  { %5407 = vrcp.f32 %v3147_v20 }
 0xd50   :  { %v5404_v18 = vpop.eup %5403 }
 0xd51   :  { %v5406_v43 = vpop.eup %5405  ;;  %v3151_v7 = vmul.f32 %v5404_v18, %v5402_v39 }
 0xd52   :  { %v3150_v31 = vmul.f32 %v5406_v43, %v7120_v42  ;;  %v5408_v45 = vpop.eup %5407 }
 0xd54   :  { %v7162_v61 = vadd.f32 %v3151_v7, %v3150_v31 }
 0xd56   :  { %5409 = vtanh.f32 %v7162_v61 }
 0xd60   :  { %v5410_v25 = vpop.eup %5409 }
 0xd61   :  { %v3154_v49 = vmul.f32 %v5410_v25, %v5408_v45  ;;  %v3688_v25 = vld [vmem:[%s7324_s9 + $0x18] sm:$0xff] }
 0xd63   :  { %3225 = vmatmul.mubr.f32.vlgmr.msra.gmra.mrb[26].mxu0 %v3154_v49  ;;  %3296 = vmatmul.mubr.f32.vlgmr.msra.gmra.mrb[26].mxu1 %v3154_v49 }
 0xd64   :  { %4923 = vmatpush1.bf16.msra.mxu0 %v6650_v55  ;;  %4955 = vmatpush1.bf16.msra.mxu1 %v6659_v52 }
 0xd65   :  { %4925 = vmatprep.subr.bf16.mxu0 %v6673_v5  ;;  %4957 = vmatprep.subr.bf16.mxu1 %v6684_v30 }
 0xd66   :  { %3399 = vmatprep.mubr.f32.mxu0 %v5459_v3  ;;  %3470 = vmatprep.mubr.f32.mxu1 %v5459_v3 }
 0xd68   :  { %4927 = vmatpush1.bf16.msra.mxu0 %v6686_v17  ;;  %4959 = vmatpush1.bf16.msra.mxu1 %v6695_v8 }
 0xd69   :  { %4929 = vmatprep.subr.bf16.mxu0 %v6709_v53  ;;  %4961 = vmatprep.subr.bf16.mxu1 %v6720_v2 }
 0xd6c   :  { %4931 = vmatpush1.bf16.msra.mxu0 %v6722_v6  ;;  %4963 = vmatpush1.bf16.msra.mxu1 %v6731_v16 }
 0xd6d   :  { %4933 = vmatprep.subr.bf16.mxu0 %v6745_v29  ;;  %4965 = vmatprep.subr.bf16.mxu1 %v6756_v44 }
 0xd70   :  { %4935 = vmatpush1.bf16.msra.mxu0 %v6758_v48  ;;  %4967 = vmatpush1.bf16.msra.mxu1 %v6770_v4 }
 0xd71   :  { %4937 = vmatprep.subr.bf16.mxu0 %v6783_v22  ;;  %4969 = vmatprep.subr.bf16.mxu1 %v6785_v51 }
 0xd74   :  { %4939 = vmatpush1.bf16.msra.mxu0 %v6797_v21  ;;  %4971 = vmatpush1.bf16.msra.mxu1 %v6810_v38 }
 0xd75   :  { %4941 = vmatprep.subr.bf16.mxu0 %v6812_v57  ;;  %4973 = vmatprep.subr.bf16.mxu1 %v6823_v11 }
 0xd78   :  { %4943 = vmatpush1.bf16.msra.mxu0 %v6835_v47  ;;  %4975 = vmatpush1.bf16.msra.mxu1 %v6848_v63 }
 0xd79   :  { %4945 = vmatprep.subr.bf16.mxu0 %v6850_v10  ;;  %4977 = vmatprep.subr.bf16.mxu1 %v6862_v26 }
 0xd7c   :  { %4947 = vmatpush1.bf16.msra.mxu0 %v6871_v40  ;;  %4979 = vmatpush1.bf16.msra.mxu1 %v6875_v54 }
 0xd7d   :  { %4949 = vmatprep.subr.bf16.mxu0 %v6889_v14  ;;  %4981 = vmatprep.subr.bf16.mxu1 %v6900_v12 }
 0xd80   :  { %4951 = vmatpush1.bf16.msra.mxu0 %v6902_v0  ;;  %4983 = vmatpush1.bf16.msra.mxu1 %v6911_v41 }
 0xd81   :  { %4985 = vmatprep.subr.bf16.mxu0 %v6637_v46  ;;  %5017 = vmatprep.subr.bf16.mxu1 %v6648_v27 }
 0xe36   :  { %v3226_v42 = vpop.f32.mrb[26].mxu0  ;;  %v3297_v59 = vpop.f32.mrb[26].mxu1 }
 0xe37   :  { %v5114_v1 = vadd.f32 %v3226_v42, %v6973_v28  ;;  %v3228_v15 = vpop.f32.mrb[27].mxu0  ;;  %v3299_v34 = vpop.f32.mrb[27].mxu1  ;;  %v5130_v23 = vadd.f32 %v3297_v59, %v6988_v35  ;;  %v3689_v42 = vld [vmem:[%s7324_s9 + $0x20] sm:$0xff]  ;;  %v3690_v59 = vld [vmem:[%s7324_s9 + $0x28] sm:$0xff] }
 0xe38   :  { %v5115_v50 = vadd.f32 %v3228_v15, %v6977_v24  ;;  %v5131_v13 = vadd.f32 %v3299_v34, %v6983_v36  ;;  %v3691_v15 = vld [vmem:[%s7324_s9 + $0x30] sm:$0xff]  ;;  %v3692_v34 = vld [vmem:[%s7324_s9 + $0x38] sm:$0xff] }
 0xe39   :  { %v3832_v56 = vmul.f32 -1.442695, %v5114_v1  ;;  %v5055_v1 = vpack.c.bf16 %v3690_v59, %v3689_v42 }
 0xe3a   :  { %v3833_v60 = vmul.f32 -1.442695, %v5115_v50  ;;  %v3834_v19 = vmul.f32 -1.442695, %v5131_v13  ;;  %v5058_v50 = vpack.c.bf16 %v3692_v34, %v3691_v15 }
 0xe3b   :  { %5411 = vpow2.f32 %v3832_v56  ;;  %v3693_v56 = vld [vmem:[%s7324_s9 + $0x40] sm:$0xff] }
 0xe3c   :  { %5413 = vpow2.f32 %v3833_v60  ;;  %v3694_v60 = vld [vmem:[%s7324_s9 + $0x48] sm:$0xff] }
 0xe3d   :  { %5415 = vpow2.f32 %v3834_v19  ;;  %v5061_v13 = vpack.c.bf16 %v3694_v60, %v3693_v56  ;;  %v3695_v19 = vld [vmem:[%s7324_s9 + $0x50] sm:$0xff] }
 0xe3e   :  { %5417 = vtanh.f32 %v5130_v23  ;;  %v3696_v23 = vld [vmem:[%s7324_s9 + $0x58] sm:$0xff] }
 0xe45   :  { %v5412_v46 = vpop.eup %5411 }
 0xe46   :  { %v5414_v32 = vpop.eup %5413  ;;  %v3309_v27 = vadd.f32 1.0, %v5412_v46  ;;  %v3697_v46 = vld [vmem:[%s7324_s9 + $0x60] sm:$0xff] }
 0xe47   :  { %v3315_v33 = vadd.f32 1.0, %v5414_v32  ;;  %v5416_v58 = vpop.eup %5415  ;;  %v5064_v32 = vpack.c.bf16 %v3696_v23, %v3695_v19 }
 0xe48   :  { %5419 = vrcp.f32 %v3309_v27  ;;  %v5418_v62 = vpop.eup %5417  ;;  %v3322_v18 = vadd.f32 1.0, %v5416_v58  ;;  %v3698_v27 = vld [vmem:[%s7324_s9 + $0x68] sm:$0xff]  ;;  %v3699_v58 = vld [vmem:[%s7324_s9 + $0x70] sm:$0xff] }
 0xe49   :  { %5421 = vrcp.f32 %v3315_v33  ;;  %v5067_v33 = vpack.c.bf16 %v3698_v27, %v3697_v46 }
 0xe4a   :  { %5423 = vrcp.f32 %v3322_v18 }
 0xe52   :  { %v5420_v37 = vpop.eup %5419 }
 0xe53   :  { %v5422_v9 = vpop.eup %5421  ;;  %v3326_v39 = vmul.f32 %v5420_v37, %v5418_v62  ;;  %v3700_v62 = vld [vmem:[%s7324_s9 + $0x78] sm:$0xff] }
 0xe54   :  { %v3325_v43 = vmul.f32 %v5422_v9, %v7162_v61  ;;  %v5424_v20 = vpop.eup %5423  ;;  %v3687_v61 = vld [vmem:[%s7324_s9 + $0x10] sm:$0xff]  ;;  %v5070_v37 = vpack.c.bf16 %v3700_v62, %v3699_v58 }
 0xe55   :  { %v5052_v49 = vpack.c.bf16 %v3688_v25, %v3687_v61 }
 0xe56   :  { %v7204_v7 = vadd.f32 %v3326_v39, %v3325_v43 }
 0xe58   :  { %5425 = vtanh.f32 %v7204_v7 }
 0xe62   :  { %v5426_v31 = vpop.eup %5425 }
 0xe63   :  { %v3329_v45 = vmul.f32 %v5426_v31, %v5424_v20 }
 0xe65   :  { %3400 = vmatmul.mubr.f32.vlgmr.msra.gmra.mrb[28].mxu0 %v3329_v45  ;;  %3471 = vmatmul.mubr.f32.vlgmr.msra.gmra.mrb[28].mxu1 %v3329_v45 }
 0xe66   :  { %4987 = vmatpush1.bf16.msra.mxu0 %v6650_v55  ;;  %5019 = vmatpush1.bf16.msra.mxu1 %v6659_v52 }
 0xe67   :  { %4989 = vmatprep.subr.bf16.mxu0 %v6673_v5  ;;  %5021 = vmatprep.subr.bf16.mxu1 %v6684_v30 }
 0xe68   :  { %3574 = vmatprep.mubr.f32.mxu0 %v5459_v3  ;;  %3645 = vmatprep.mubr.f32.mxu1 %v5459_v3 }
 0xe6a   :  { %4991 = vmatpush1.bf16.msra.mxu0 %v6686_v17  ;;  %5023 = vmatpush1.bf16.msra.mxu1 %v6695_v8 }
 0xe6b   :  { %4993 = vmatprep.subr.bf16.mxu0 %v6709_v53  ;;  %5025 = vmatprep.subr.bf16.mxu1 %v6720_v2 }
 0xe6e   :  { %4995 = vmatpush1.bf16.msra.mxu0 %v6722_v6  ;;  %5027 = vmatpush1.bf16.msra.mxu1 %v6731_v16 }
 0xe6f   :  { %4997 = vmatprep.subr.bf16.mxu0 %v6745_v29  ;;  %5029 = vmatprep.subr.bf16.mxu1 %v6756_v44 }
 0xe72   :  { %4999 = vmatpush1.bf16.msra.mxu0 %v6758_v48  ;;  %5031 = vmatpush1.bf16.msra.mxu1 %v6770_v4 }
 0xe73   :  { %5001 = vmatprep.subr.bf16.mxu0 %v6783_v22  ;;  %5033 = vmatprep.subr.bf16.mxu1 %v6785_v51 }
 0xe76   :  { %5003 = vmatpush1.bf16.msra.mxu0 %v6797_v21  ;;  %5035 = vmatpush1.bf16.msra.mxu1 %v6810_v38 }
 0xe77   :  { %5005 = vmatprep.subr.bf16.mxu0 %v6812_v57  ;;  %5037 = vmatprep.subr.bf16.mxu1 %v6823_v11 }
 0xe7a   :  { %5007 = vmatpush1.bf16.msra.mxu0 %v6835_v47  ;;  %5039 = vmatpush1.bf16.msra.mxu1 %v6848_v63 }
 0xe7b   :  { %5009 = vmatprep.subr.bf16.mxu0 %v6850_v10  ;;  %5041 = vmatprep.subr.bf16.mxu1 %v6862_v26 }
 0xe7e   :  { %5011 = vmatpush1.bf16.msra.mxu0 %v6871_v40  ;;  %5043 = vmatpush1.bf16.msra.mxu1 %v6875_v54 }
 0xe7f   :  { %5013 = vmatprep.subr.bf16.mxu0 %v6889_v14  ;;  %5045 = vmatprep.subr.bf16.mxu1 %v6900_v12  ;;  %v3685_v14 = vld [vmem:[%s7324_s9] sm:$0xff]  ;;  %v3686_v12 = vld [vmem:[%s7324_s9 + $0x8] sm:$0xff] }
 0xe82   :  { %5015 = vmatpush1.bf16.msra.mxu0 %v6902_v0  ;;  %5047 = vmatpush1.bf16.msra.mxu1 %v6911_v41  ;;  %v5049_v0 = vpack.c.bf16 %v3686_v12, %v3685_v14  ;;  %v5460_v41 = vmov 0.0|0.0  }
 0xe83   :  { %5048 = vmatprep.subr.bf16.mxu0 %v5460_v41 }
 0xf38   :  { %v3401_v55 = vpop.f32.mrb[28].mxu0  ;;  %v3472_v52 = vpop.f32.mrb[28].mxu1 }
 0xf39   :  { %v5116_v5 = vadd.f32 %v3401_v55, %v6973_v28  ;;  %v3403_v30 = vpop.f32.mrb[29].mxu0  ;;  %v3474_v17 = vpop.f32.mrb[29].mxu1  ;;  %v5132_v29 = vadd.f32 %v3472_v52, %v6988_v35 }
 0xf3a   :  { %v5117_v8 = vadd.f32 %v3403_v30, %v6977_v24  ;;  %v5133_v6 = vadd.f32 %v3474_v17, %v6983_v36 }
 0xf3b   :  { %v3835_v53 = vmul.f32 -1.442695, %v5116_v5 }
 0xf3c   :  { %v3836_v2 = vmul.f32 -1.442695, %v5117_v8  ;;  %v3837_v16 = vmul.f32 -1.442695, %v5133_v6 }
 0xf3d   :  { %5427 = vpow2.f32 %v3835_v53 }
 0xf3e   :  { %5429 = vpow2.f32 %v3836_v2 }
 0xf3f   :  { %5431 = vpow2.f32 %v3837_v16 }
 0xf40   :  { %5433 = vtanh.f32 %v5132_v29 }
 0xf47   :  { %v5428_v44 = vpop.eup %5427 }
 0xf48   :  { %v5430_v48 = vpop.eup %5429  ;;  %v3484_v4 = vadd.f32 1.0, %v5428_v44 }
 0xf49   :  { %v3490_v22 = vadd.f32 1.0, %v5430_v48  ;;  %v5432_v51 = vpop.eup %5431 }
 0xf4a   :  { %5435 = vrcp.f32 %v3484_v4  ;;  %v5434_v21 = vpop.eup %5433  ;;  %v3497_v47 = vadd.f32 1.0, %v5432_v51  ;;  %v3843_v4 = vld [vmem:[%s7325_s10] ss:$0 sm:$0xff] }
 0xf4b   :  { %5437 = vrcp.f32 %v3490_v22 }
 0xf4c   :  { %5439 = vrcp.f32 %v3497_v47 }
 0xf54   :  { %v5436_v38 = vpop.eup %5435 }
 0xf55   :  { %v5438_v57 = vpop.eup %5437  ;;  %v3501_v11 = vmul.f32 %v5436_v38, %v5434_v21 }
 0xf56   :  { %v3500_v63 = vmul.f32 %v5438_v57, %v7204_v7  ;;  %v5440_v26 = vpop.eup %5439 }
 0xf58   :  { %v7244_v10 = vadd.f32 %v3501_v11, %v3500_v63 }
 0xf5a   :  { %5441 = vtanh.f32 %v7244_v10 }
 0xf64   :  { %v5442_v40 = vpop.eup %5441 }
 0xf65   :  { %v3504_v54 = vmul.f32 %v5442_v40, %v5440_v26 }
 0xf67   :  { %3575 = vmatmul.mubr.f32.vlgmr.msra.gmra.mrb[30].mxu0 %v3504_v54  ;;  %3646 = vmatmul.mubr.f32.vlgmr.msra.gmra.mrb[30].mxu1 %v3504_v54 }
 0xf68   :  { %5050 = vmatpush3.bf16.msra.mxu0 %v5049_v0  ;;  %3893 = vmatprep.mubr.msk.f32.mxu0 %vm5461_vm0, %v5459_v3 }
 0xf69   :  { %5051 = vmatprep.subr.bf16.mxu0 %v5460_v41 }
 0xf6c   :  { %5053 = vmatpush3.bf16.msra.mxu0 %v5052_v49 }
 0xf6d   :  { %5054 = vmatprep.subr.bf16.mxu0 %v5460_v41 }
 0xf70   :  { %5056 = vmatpush3.bf16.msra.mxu0 %v5055_v1 }
 0xf71   :  { %5057 = vmatprep.subr.bf16.mxu0 %v5460_v41 }
 0xf74   :  { %5059 = vmatpush3.bf16.msra.mxu0 %v5058_v50 }
 0xf75   :  { %5060 = vmatprep.subr.bf16.mxu0 %v5460_v41 }
 0xf78   :  { %5062 = vmatpush3.bf16.msra.mxu0 %v5061_v13 }
 0xf79   :  { %5063 = vmatprep.subr.bf16.mxu0 %v5460_v41 }
 0xf7c   :  { %5065 = vmatpush3.bf16.msra.mxu0 %v5064_v32 }
 0xf7d   :  { %5066 = vmatprep.subr.bf16.mxu0 %v5460_v41 }
 0xf80   :  { %5068 = vmatpush3.bf16.msra.mxu0 %v5067_v33 }
 0xf81   :  { %5069 = vmatprep.subr.bf16.mxu0 %v5460_v41 }
 0xf84   :  { %5071 = vmatpush3.bf16.msra.mxu0 %v5070_v37 }
0x103a   :  { %v3576_v9 = vpop.f32.mrb[30].mxu0  ;;  %v3647_v39 = vpop.f32.mrb[30].mxu1 }
0x103b   :  { %v5118_v18 = vadd.f32 %v3576_v9, %v6973_v28  ;;  %v3578_v3 = vpop.f32.mrb[31].mxu0  ;;  %v3649_v43 = vpop.f32.mrb[31].mxu1  ;;  %v5134_v52 = vadd.f32 %v3647_v39, %v6988_v35 }
0x103c   :  { %v5119_v7 = vadd.f32 %v3578_v3, %v6977_v24  ;;  %v5135_v45 = vadd.f32 %v3649_v43, %v6983_v36 }
0x103d   :  { %v3838_v20 = vmul.f32 -1.442695, %v5118_v18 }
0x103e   :  { %v3839_v31 = vmul.f32 -1.442695, %v5119_v7  ;;  %v3840_v55 = vmul.f32 -1.442695, %v5135_v45 }
0x103f   :  { %5443 = vpow2.f32 %v3838_v20 }
0x1040   :  { %5445 = vpow2.f32 %v3839_v31 }
0x1041   :  { %5447 = vpow2.f32 %v3840_v55 }
0x1042   :  { %5449 = vtanh.f32 %v5134_v52 }
0x1049   :  { %v5444_v5 = vpop.eup %5443 }
0x104a   :  { %v5446_v30 = vpop.eup %5445  ;;  %v3659_v17 = vadd.f32 1.0, %v5444_v5 }
0x104b   :  { %v3665_v8 = vadd.f32 1.0, %v5446_v30  ;;  %v5448_v28 = vpop.eup %5447 }
0x104c   :  { %5451 = vrcp.f32 %v3659_v17  ;;  %v5450_v53 = vpop.eup %5449  ;;  %v3672_v16 = vadd.f32 1.0, %v5448_v28 }
0x104d   :  { %5453 = vrcp.f32 %v3665_v8 }
0x104e   :  { %5455 = vrcp.f32 %v3672_v16 }
0x1056   :  { %v5452_v24 = vpop.eup %5451 }
0x1057   :  { %v5454_v2 = vpop.eup %5453  ;;  %v3676_v6 = vmul.f32 %v5452_v24, %v5450_v53 }
0x1058   :  { %v3675_v29 = vmul.f32 %v5454_v2, %v7244_v10  ;;  %v5456_v35 = vpop.eup %5455 }
0x105a   :  { %v3677_v36 = vadd.f32 %v3676_v6, %v3675_v29 }
0x105c   :  { %3842 = vst [vmem:[%s7321_s13 + $0x8] sm:$0xff] %v3677_v36  ;;  %5457 = vtanh.f32 %v3677_v36 }
0x1066   :  { %v5458_v44 = vpop.eup %5457 }
0x1067   :  { %v3679_v48 = vmul.f32 %v5458_v44, %v5456_v35 }
0x1069   :  { %3841 = vst [vmem:[%s7322_s12 + $0x8] sm:$0xff] %v3679_v48  ;;  %3894 = vmatmul.mubr.f32.vlgmr.msra.gmra.mrb[32].mxu0 %v3679_v48 }
0x113c   :  { %v3774_v22 = vpop.f32.mrb[32].mxu0 }
0x113d   :  { %v3775_v51 = vadd.f32 %v3843_v4, %v3774_v22  ;;  %v3895_v21 = vpop.f32.mrb[33].mxu0 }
0x113f   :  { %3778 = vst [vmem:[%s7326_s11] sm:$0xff] %v3775_v51 }

</bundles_post_ra>
